<compile_context>
chip_gen: v7x
topology: tpu7x:2x2x1
jax: 0.10.0
libtpu: 0.0.40
codegen_flags: <defaults>
</compile_context>

<pallas_src>
import jax
import jax.numpy as jnp
from jax.experimental import pallas as pl
from jax.experimental.pallas import tpu as pltpu


POOL = 16        # stand-in spatial reduction matching MixNet-S blocks' extra /16 stride
C_PAD = 256      # pad the 200-channel dim to a lane-friendly multiple of 128
C_OUT_PAD = 128  # pad the 8-wide linear output to a full lane width
N_OUT = 8


# ----------------------------------------------------------------------------
# Fused kernel: one grid step == B batch images, everything stays in VMEM.
# ----------------------------------------------------------------------------
def _fused_net_kernel(p_ref, pool_ref,
                      stem_w_ref, s1_ref, b1_ref,
                      blk_w_ref, sb_ref, bb_ref,
                      head_w_ref, s2_ref, b2_ref,
                      lin_w_ref, lin_b_ref,
                      o_ref):
    b, r, kdim = p_ref.shape          # (B, R, 27)
    p_pos = pool_ref.shape[0]         # P pooled positions per image

    # ---- conv_stem (3x3 s2 via im2col matmul) + bn1 + relu -------------------
    # Batch folded into the row dim: one (B*R, 27) @ (27, 16) matmul.
    patches = p_ref[...].reshape(b * r, kdim)                       # bf16
    stem = jnp.dot(patches, stem_w_ref[...],
                   preferred_element_type=jnp.float32)              # (B*R, 16) f32
    stem = jnp.maximum(stem * s1_ref[...] + b1_ref[...], 0.0)
    stem = stem.astype(jnp.bfloat16)   # carry bf16: halves the 128-lane-padded buffer

    # ---- base.blocks stand-in -----------------------------------------------
    # TODO(synk): the pretrained MixNet-S inverted-residual stack (mixed
    # depthwise convs + SE, 16->200 ch, extra /16 stride) is not reimplemented;
    # this stand-in matches its boundary shapes with a per-image 16x16 window
    # mean-pool (batched pooling matmul) + pointwise 16->200(pad 256) + BN + ReLU.
    stem3 = stem.reshape(b, r, stem.shape[-1])                      # (B, R, 16)
    pool_b = jnp.broadcast_to(pool_ref[...], (b, p_pos, r))         # (B, P, R) bf16
    pooled = jax.lax.dot_general(
        pool_b, stem3,
        dimension_numbers=(((2,), (1,)), ((0,), (0,))),
        preferred_element_type=jnp.float32)                         # (B, P, 16) f32
    pooled = pooled.reshape(b * p_pos, pooled.shape[-1]).astype(jnp.bfloat16)

    blk = jnp.dot(pooled, blk_w_ref[...],
                  preferred_element_type=jnp.float32)               # (B*P, 256)
    blk = jnp.maximum(blk * sb_ref[...] + bb_ref[...], 0.0)
    blk = blk.astype(jnp.bfloat16)

    # ---- conv_head (1x1, 256pad -> 1536) + bn2 + relu -------------------------
    head = jnp.dot(blk, head_w_ref[...],
                   preferred_element_type=jnp.float32)              # (B*P, 1536)
    head = jnp.maximum(head * s2_ref[...] + b2_ref[...], 0.0)

    # ---- linear folded BEFORE the global average pool -------------------------
    # (linear op, bias added after the mean -> mathematically identical to
    #  GAP-then-linear).  Gives an M=B*P matmul and a lane-dense 128-wide store.
    logits = jnp.dot(head.astype(jnp.bfloat16), lin_w_ref[...],
                     preferred_element_type=jnp.float32)            # (B*P, 128)
    logits = jnp.mean(logits.reshape(b, p_pos, logits.shape[-1]), axis=1)  # (B, 128)
    o_ref[...] = jax.nn.sigmoid(logits + lin_b_ref[...])            # dense 128-lane store


def fused_net(patches, pool_mat, stem_w, s1, b1, blk_w, sb, bb,
              head_w, s2, b2, lin_w, lin_b, *, images_per_step=None):
    n, r, kdim = patches.shape
    p = pool_mat.shape[0]
    c_stem = stem_w.shape[1]
    c_blk = blk_w.shape[1]
    c_head = head_w.shape[1]
    c_out = lin_w.shape[1]            # already padded to 128

    if images_per_step is None:
        # Keep per-step VMEM modest across v5e/v6e/v7x.  Raise together with
        # vmem_limit_bytes for big batches; halve on v7x for tiny N so both
        # TensorCores get a grid step.
        images_per_step = max(1, min(n, 8))
    b = images_per_step
    n_pad = pl.cdiv(n, b) * b
    if n_pad != n:
        patches = jnp.pad(patches, ((0, n_pad - n), (0, 0), (0, 0)))
    g = n_pad // b

    rep2 = lambda i: (0, 0)

    # Advisory cost hint so XLA overlaps surrounding ops with this tiny call.
    flops = 2 * n_pad * (r * kdim * c_stem
                         + p * r * c_stem
                         + p * c_stem * c_blk
                         + p * c_blk * c_head
                         + p * c_head * c_out)
    bytes_accessed = (n_pad * r * kdim * 2               # patches (bf16)
                      + p * r * 2
                      + (kdim * c_stem + c_stem * c_blk + c_blk * c_head
                         + c_head * c_out) * 2           # weights (bf16)
                      + (2 * c_stem + 2 * c_blk + 2 * c_head + c_out) * 4
                      + n_pad * c_out * 4)               # output (f32)

    out = pl.pallas_call(
        _fused_net_kernel,
        out_shape=jax.ShapeDtypeStruct((g, b, c_out), jnp.float32),
        grid=(g,),
        in_specs=[
            pl.BlockSpec((b, r, kdim), lambda i: (i, 0, 0)),   # patches (B images/step)
            pl.BlockSpec((p, r), rep2),                        # pooling matrix
            pl.BlockSpec((kdim, c_stem), rep2),                # stem weight
            pl.BlockSpec((1, c_stem), rep2),                   # bn1 scale
            pl.BlockSpec((1, c_stem), rep2),                   # bn1 shift
            pl.BlockSpec((c_stem, c_blk), rep2),               # blocks stand-in weight
            pl.BlockSpec((1, c_blk), rep2),                    # bn_blk scale
            pl.BlockSpec((1, c_blk), rep2),                    # bn_blk shift
            pl.BlockSpec((c_blk, c_head), rep2),               # head weight
            pl.BlockSpec((1, c_head), rep2),                   # bn2 scale
            pl.BlockSpec((1, c_head), rep2),                   # bn2 shift
            pl.BlockSpec((c_head, c_out), rep2),               # linear weight (128-pad)
            pl.BlockSpec((1, c_out), rep2),                    # linear bias   (128-pad)
        ],
        out_specs=pl.BlockSpec((None, b, c_out), lambda i: (i, 0, 0)),
        compiler_params=pltpu.CompilerParams(
            dimension_semantics=("parallel",),                 # megacore on v7x
            vmem_limit_bytes=32 * 1024 * 1024),
        cost_estimate=pl.CostEstimate(
            flops=flops,
            transcendentals=n_pad * c_out,
            bytes_accessed=bytes_accessed),
    )(patches, pool_mat, stem_w, s1, b1, blk_w, sb, bb,
      head_w, s2, b2, lin_w, lin_b)
    return out.reshape(n_pad, c_out)[:n]


# ----------------------------------------------------------------------------
# Glue (plain JAX): im2col, pooling matrix, BN folding, parameter prep.
# ----------------------------------------------------------------------------
def im2col_3x3_s2_pad1(x_nhwc):
    """3x3 stride-2 pad-1 patches. Returns (N, Ho*Wo, 9*C) plus spatial dims."""
    xp = jnp.pad(x_nhwc, ((0, 0), (1, 1), (1, 1), (0, 0)))
    n, hp, wp, c = xp.shape
    ho = (hp - 3) // 2 + 1
    wo = (wp - 3) // 2 + 1
    cols = []
    for dh in range(3):
        for dw in range(3):
            cols.append(xp[:, dh:dh + 2 * ho - 1:2, dw:dw + 2 * wo - 1:2, :])
    patches = jnp.concatenate(cols, axis=-1)                      # (N, Ho, Wo, 9C)
    return patches.reshape(n, ho * wo, 9 * c), (n, ho, wo)


def make_pool_matrix(h1, w1, pool):
    """(H2*W2, H1*W1) mean-pooling matrix over non-overlapping pool x pool windows."""
    h2, w2 = h1 // pool, w1 // pool
    win_id = (jnp.arange(h1) // pool)[:, None] * w2 + (jnp.arange(w1) // pool)[None, :]
    win_id = win_id.reshape(-1)                                   # (H1*W1,)
    mat = (win_id[None, :] == jnp.arange(h2 * w2)[:, None]).astype(jnp.float32)
    return mat / float(pool * pool)                               # (P, R)


def fold_bn(gamma, beta, mean, var, eps=1e-3):
    # TODO(synk): gen-efficientnet mixnet_s uses TF-style BN eps=1e-3; verify
    # against the actual pretrained checkpoint (PyTorch BN default is 1e-5).
    scale = gamma * jax.lax.rsqrt(var + eps)
    shift = beta - mean * scale
    return scale.reshape(1, -1), shift.reshape(1, -1)


def make_params(key):
    """Random parameters with the real model's shapes (blocks stack stand-in)."""
    ks = jax.random.split(key, 4)
    p = {}
    # conv_stem: Conv2d(3, 16, k=3, s=2, p=1, bias=False), flattened to (27, 16).
    # TODO(synk): when loading the real checkpoint, permute (out,in,kh,kw) ->
    # ((kh,kw) outer, cin inner, out) to match the im2col concat order above.
    p["stem_w"] = 0.1 * jax.random.normal(ks[0], (27, 16), jnp.float32)
    p["bn1"] = (jnp.ones(16), jnp.zeros(16), jnp.zeros(16), jnp.ones(16))
    # blocks stand-in pointwise 16 -> 200 (MixNet-S block-stack output width).
    p["blk_w"] = 0.1 * jax.random.normal(ks[1], (16, 200), jnp.float32)
    p["bn_blk"] = (jnp.ones(200), jnp.zeros(200), jnp.zeros(200), jnp.ones(200))
    # conv_head: Conv2d(200, 1536, k=1, bias=False).
    p["head_w"] = 0.05 * jax.random.normal(ks[2], (200, 1536), jnp.float32)
    p["bn2"] = (jnp.ones(1536), jnp.zeros(1536), jnp.zeros(1536), jnp.ones(1536))
    # linear: nn.Linear(1536, 8)
    p["lin_w"] = 0.05 * jax.random.normal(ks[3], (1536, 8), jnp.float32)
    p["lin_b"] = jnp.zeros((1, 8), jnp.float32)
    return p


@jax.jit
def net_forward(x_nchw, params):
    # NCHW -> NHWC
    x = jnp.transpose(x_nchw, (0, 2, 3, 1)).astype(jnp.float32)

    # im2col for conv_stem
    patches, (n, h1, w1) = im2col_3x3_s2_pad1(x)
    assert h1 % POOL == 0 and w1 % POOL == 0, "stand-in pooling needs /16 spatial"
    pool_mat = make_pool_matrix(h1, w1, POOL)

    # Fold BN layers to scale/shift.
    s1, b1 = fold_bn(*params["bn1"])
    sb, bb = fold_bn(*params["bn_blk"])
    s2, b2 = fold_bn(*params["bn2"])

    # Zero-pad the 200-channel dim to 256 (padded channels stay exactly zero).
    c_blk = params["blk_w"].shape[1]
    pad = C_PAD - c_blk
    blk_w_p = jnp.pad(params["blk_w"], ((0, 0), (0, pad)))
    sb_p = jnp.pad(sb, ((0, 0), (0, pad)))
    bb_p = jnp.pad(bb, ((0, 0), (0, pad)))
    head_w_p = jnp.pad(params["head_w"], ((0, pad), (0, 0)))

    # Lane-dense output: pad the 8-wide linear to 128 columns (zeros), slice after.
    opad = C_OUT_PAD - params["lin_w"].shape[1]
    lin_w_p = jnp.pad(params["lin_w"], ((0, 0), (0, opad)))
    lin_b_p = jnp.pad(params["lin_b"], ((0, 0), (0, opad)))

    # bf16 MXU operands, f32 accumulation inside the kernel.
    bf = lambda a: a.astype(jnp.bfloat16)

    out = fused_net(
        bf(patches), bf(pool_mat),
        bf(params["stem_w"]), s1, b1,
        bf(blk_w_p), sb_p, bb_p,
        bf(head_w_p), s2, b2,
        bf(lin_w_p), lin_b_p,
    )
    return out[:, :N_OUT]


def net_forward_ref(x_nchw, params):
    """Pure-JAX f32 reference of the same (stand-in) pipeline."""
    x = jnp.transpose(x_nchw, (0, 2, 3, 1)).astype(jnp.float32)
    patches, (n, h1, w1) = im2col_3x3_s2_pad1(x)
    pool_mat = make_pool_matrix(h1, w1, POOL)
    s1, b1 = fold_bn(*params["bn1"])
    sb, bb = fold_bn(*params["bn_blk"])
    s2, b2 = fold_bn(*params["bn2"])
    stem = jnp.maximum((patches @ params["stem_w"]) * s1 + b1, 0.0)      # (N,R,16)
    pooled = jnp.einsum("pr,nrc->npc", pool_mat, stem)                   # (N,P,16)
    blk = jnp.maximum((pooled @ params["blk_w"]) * sb + bb, 0.0)         # (N,P,200)
    head = jnp.maximum((blk @ params["head_w"]) * s2 + b2, 0.0)          # (N,P,1536)
    feat = jnp.mean(head, axis=1)                                        # (N,1536)
    return jax.nn.sigmoid(feat @ params["lin_w"] + params["lin_b"])      # (N,8)


if __name__ == "__main__":
    key = jax.random.PRNGKey(0)
    kx, kp = jax.random.split(key)
    x = jax.random.normal(kx, (2, 3, 64, 64), jnp.float32)   # NCHW like PyTorch
    params = make_params(kp)

    out = net_forward(x, params)
    out = jax.block_until_ready(out)

    assert out.shape == (2, 8), out.shape
    assert bool(jnp.all((out >= 0.0) & (out <= 1.0)))

    # bf16-MXU / f32-accum kernel vs f32 reference (through the sigmoid).
    ref = net_forward_ref(x, params)
    assert bool(jnp.max(jnp.abs(out - ref)) < 1e-2), float(jnp.max(jnp.abs(out - ref)))

    print("KERNEL_OK")
</pallas_src>

<mosaic_0001>
module attributes {stable_mosaic.version = 11 : i64} {
  func.func @_fused_net_kernel(%arg0: i32, %arg1: memref<2x1024x27xbf16, #tpu.memory_space<vmem>>, %arg2: memref<4x1024xbf16, #tpu.memory_space<vmem>>, %arg3: memref<27x16xbf16, #tpu.memory_space<vmem>>, %arg4: memref<1x16xf32, #tpu.memory_space<vmem>>, %arg5: memref<1x16xf32, #tpu.memory_space<vmem>>, %arg6: memref<16x256xbf16, #tpu.memory_space<vmem>>, %arg7: memref<1x256xf32, #tpu.memory_space<vmem>>, %arg8: memref<1x256xf32, #tpu.memory_space<vmem>>, %arg9: memref<256x1536xbf16, #tpu.memory_space<vmem>>, %arg10: memref<1x1536xf32, #tpu.memory_space<vmem>>, %arg11: memref<1x1536xf32, #tpu.memory_space<vmem>>, %arg12: memref<1536x128xbf16, #tpu.memory_space<vmem>>, %arg13: memref<1x128xf32, #tpu.memory_space<vmem>>, %arg14: memref<1x2x128xf32, #tpu.memory_space<vmem>>) attributes {dimension_semantics = [#tpu.dimension_semantics<parallel>], iteration_bounds = array<i64: 1>, scalar_prefetch = 0 : i64, scratch_operands = 0 : i64, tpu.core_type = #tpu.core_type<tc>, window_params = [{transform_indices = @transform_0, window_bounds = array<i64: 2, 1024, 27>}, {pipeline_mode = #tpu.pipeline_mode<synchronous>, transform_indices = @transform_1, window_bounds = array<i64: 4, 1024>}, {pipeline_mode = #tpu.pipeline_mode<synchronous>, transform_indices = @transform_2, window_bounds = array<i64: 27, 16>}, {pipeline_mode = #tpu.pipeline_mode<synchronous>, transform_indices = @transform_3, window_bounds = array<i64: 1, 16>}, {pipeline_mode = #tpu.pipeline_mode<synchronous>, transform_indices = @transform_4, window_bounds = array<i64: 1, 16>}, {pipeline_mode = #tpu.pipeline_mode<synchronous>, transform_indices = @transform_5, window_bounds = array<i64: 16, 256>}, {pipeline_mode = #tpu.pipeline_mode<synchronous>, transform_indices = @transform_6, window_bounds = array<i64: 1, 256>}, {pipeline_mode = #tpu.pipeline_mode<synchronous>, transform_indices = @transform_7, window_bounds = array<i64: 1, 256>}, {pipeline_mode = #tpu.pipeline_mode<synchronous>, transform_indices = @transform_8, window_bounds = array<i64: 256, 1536>}, {pipeline_mode = #tpu.pipeline_mode<synchronous>, transform_indices = @transform_9, window_bounds = array<i64: 1, 1536>}, {pipeline_mode = #tpu.pipeline_mode<synchronous>, transform_indices = @transform_10, window_bounds = array<i64: 1, 1536>}, {pipeline_mode = #tpu.pipeline_mode<synchronous>, transform_indices = @transform_11, window_bounds = array<i64: 1536, 128>}, {pipeline_mode = #tpu.pipeline_mode<synchronous>, transform_indices = @transform_12, window_bounds = array<i64: 1, 128>}, {transform_indices = @transform_13, window_bounds = array<i64: 1, 2, 128>}]} {
    %c0 = arith.constant 0 : index
    %c0_0 = arith.constant 0 : index
    %c0_1 = arith.constant 0 : index
    %0 = vector.load %arg1[%c0, %c0_0, %c0_1] : memref<2x1024x27xbf16, #tpu.memory_space<vmem>>, vector<2x1024x27xbf16>
    %1 = vector.shape_cast %0 : vector<2x1024x27xbf16> to vector<2048x27xbf16>
    %c0_2 = arith.constant 0 : index
    %c0_3 = arith.constant 0 : index
    %2 = vector.load %arg3[%c0_2, %c0_3] : memref<27x16xbf16, #tpu.memory_space<vmem>>, vector<27x16xbf16>
    %cst = arith.constant dense<0.000000e+00> : vector<2048x16xf32>
    %3 = tpu.matmul %1, %2, %cst {dimension_numbers = #tpu.dot_dimension_numbers<[1], [0], [0], [1], [0, 0, 1, 1], [], []>} : vector<2048x27xbf16>, vector<27x16xbf16>, vector<2048x16xf32> -> vector<2048x16xf32>
    %c0_4 = arith.constant 0 : index
    %c0_5 = arith.constant 0 : index
    %4 = vector.load %arg4[%c0_4, %c0_5] : memref<1x16xf32, #tpu.memory_space<vmem>>, vector<1x16xf32>
    %5 = vector.broadcast %4 : vector<1x16xf32> to vector<2048x16xf32>
    %6 = arith.mulf %3, %5 : vector<2048x16xf32>
    %c0_6 = arith.constant 0 : index
    %c0_7 = arith.constant 0 : index
    %7 = vector.load %arg5[%c0_6, %c0_7] : memref<1x16xf32, #tpu.memory_space<vmem>>, vector<1x16xf32>
    %8 = vector.broadcast %7 : vector<1x16xf32> to vector<2048x16xf32>
    %9 = arith.addf %6, %8 : vector<2048x16xf32>
    %cst_8 = arith.constant 0.000000e+00 : f32
    %10 = vector.broadcast %cst_8 : f32 to vector<2048x16xf32>
    %11 = arith.maximumf %9, %10 : vector<2048x16xf32>
    %12 = arith.truncf %11 : vector<2048x16xf32> to vector<2048x16xbf16>
    %13 = vector.shape_cast %12 : vector<2048x16xbf16> to vector<2x1024x16xbf16>
    %c0_9 = arith.constant 0 : index
    %c0_10 = arith.constant 0 : index
    %14 = vector.load %arg2[%c0_9, %c0_10] : memref<4x1024xbf16, #tpu.memory_space<vmem>>, vector<4x1024xbf16>
    %15 = vector.shape_cast %14 : vector<4x1024xbf16> to vector<1x4x1024xbf16>
    %16 = vector.broadcast %15 : vector<1x4x1024xbf16> to vector<2x4x1024xbf16>
    %cst_11 = arith.constant dense<0.000000e+00> : vector<2x4x16xf32>
    %17 = tpu.matmul %16, %13, %cst_11 {dimension_numbers = #tpu.dot_dimension_numbers<[2], [1], [1], [2], [0, 0, 0, 1, 1, 2], [0], [0]>} : vector<2x4x1024xbf16>, vector<2x1024x16xbf16>, vector<2x4x16xf32> -> vector<2x4x16xf32>
    %18 = vector.shape_cast %17 : vector<2x4x16xf32> to vector<8x16xf32>
    %19 = arith.truncf %18 : vector<8x16xf32> to vector<8x16xbf16>
    %c0_12 = arith.constant 0 : index
    %c0_13 = arith.constant 0 : index
    %20 = vector.load %arg6[%c0_12, %c0_13] : memref<16x256xbf16, #tpu.memory_space<vmem>>, vector<16x256xbf16>
    %cst_14 = arith.constant dense<0.000000e+00> : vector<8x256xf32>
    %21 = tpu.matmul %19, %20, %cst_14 {dimension_numbers = #tpu.dot_dimension_numbers<[1], [0], [0], [1], [0, 0, 1, 1], [], []>} : vector<8x16xbf16>, vector<16x256xbf16>, vector<8x256xf32> -> vector<8x256xf32>
    %c0_15 = arith.constant 0 : index
    %c0_16 = arith.constant 0 : index
    %22 = vector.load %arg7[%c0_15, %c0_16] : memref<1x256xf32, #tpu.memory_space<vmem>>, vector<1x256xf32>
    %23 = vector.broadcast %22 : vector<1x256xf32> to vector<8x256xf32>
    %24 = arith.mulf %21, %23 : vector<8x256xf32>
    %c0_17 = arith.constant 0 : index
    %c0_18 = arith.constant 0 : index
    %25 = vector.load %arg8[%c0_17, %c0_18] : memref<1x256xf32, #tpu.memory_space<vmem>>, vector<1x256xf32>
    %26 = vector.broadcast %25 : vector<1x256xf32> to vector<8x256xf32>
    %27 = arith.addf %24, %26 : vector<8x256xf32>
    %cst_19 = arith.constant 0.000000e+00 : f32
    %28 = vector.broadcast %cst_19 : f32 to vector<8x256xf32>
    %29 = arith.maximumf %27, %28 : vector<8x256xf32>
    %30 = arith.truncf %29 : vector<8x256xf32> to vector<8x256xbf16>
    %c0_20 = arith.constant 0 : index
    %c0_21 = arith.constant 0 : index
    %31 = vector.load %arg9[%c0_20, %c0_21] : memref<256x1536xbf16, #tpu.memory_space<vmem>>, vector<256x1536xbf16>
    %cst_22 = arith.constant dense<0.000000e+00> : vector<8x1536xf32>
    %32 = tpu.matmul %30, %31, %cst_22 {dimension_numbers = #tpu.dot_dimension_numbers<[1], [0], [0], [1], [0, 0, 1, 1], [], []>} : vector<8x256xbf16>, vector<256x1536xbf16>, vector<8x1536xf32> -> vector<8x1536xf32>
    %c0_23 = arith.constant 0 : index
    %c0_24 = arith.constant 0 : index
    %33 = vector.load %arg10[%c0_23, %c0_24] : memref<1x1536xf32, #tpu.memory_space<vmem>>, vector<1x1536xf32>
    %34 = vector.broadcast %33 : vector<1x1536xf32> to vector<8x1536xf32>
    %35 = arith.mulf %32, %34 : vector<8x1536xf32>
    %c0_25 = arith.constant 0 : index
    %c0_26 = arith.constant 0 : index
    %36 = vector.load %arg11[%c0_25, %c0_26] : memref<1x1536xf32, #tpu.memory_space<vmem>>, vector<1x1536xf32>
    %37 = vector.broadcast %36 : vector<1x1536xf32> to vector<8x1536xf32>
    %38 = arith.addf %35, %37 : vector<8x1536xf32>
    %cst_27 = arith.constant 0.000000e+00 : f32
    %39 = vector.broadcast %cst_27 : f32 to vector<8x1536xf32>
    %40 = arith.maximumf %38, %39 : vector<8x1536xf32>
    %41 = arith.truncf %40 : vector<8x1536xf32> to vector<8x1536xbf16>
    %c0_28 = arith.constant 0 : index
    %c0_29 = arith.constant 0 : index
    %42 = vector.load %arg12[%c0_28, %c0_29] : memref<1536x128xbf16, #tpu.memory_space<vmem>>, vector<1536x128xbf16>
    %cst_30 = arith.constant dense<0.000000e+00> : vector<8x128xf32>
    %43 = tpu.matmul %41, %42, %cst_30 {dimension_numbers = #tpu.dot_dimension_numbers<[1], [0], [0], [1], [0, 0, 1, 1], [], []>} : vector<8x1536xbf16>, vector<1536x128xbf16>, vector<8x128xf32> -> vector<8x128xf32>
    %44 = vector.shape_cast %43 : vector<8x128xf32> to vector<2x4x128xf32>
    %cst_31 = arith.constant dense<0.000000e+00> : vector<2x128xf32>
    %45 = vector.multi_reduction <add>, %44, %cst_31 [1] : vector<2x4x128xf32> to vector<2x128xf32>
    %cst_32 = arith.constant 4.000000e+00 : f32
    %46 = vector.broadcast %cst_32 : f32 to vector<2x128xf32>
    %47 = arith.divf %45, %46 : vector<2x128xf32>
    %c0_33 = arith.constant 0 : index
    %c0_34 = arith.constant 0 : index
    %48 = vector.load %arg13[%c0_33, %c0_34] : memref<1x128xf32, #tpu.memory_space<vmem>>, vector<1x128xf32>
    %49 = vector.broadcast %48 : vector<1x128xf32> to vector<2x128xf32>
    %50 = arith.addf %47, %49 : vector<2x128xf32>
    %51 = arith.negf %50 : vector<2x128xf32>
    %52 = math.exp %51 : vector<2x128xf32>
    %cst_35 = arith.constant 1.000000e+00 : f32
    %53 = vector.broadcast %cst_35 : f32 to vector<2x128xf32>
    %54 = arith.addf %53, %52 : vector<2x128xf32>
    %55 = arith.divf %53, %54 : vector<2x128xf32>
    %c0_36 = arith.constant 0 : index
    %c0_37 = arith.constant 0 : index
    %c0_38 = arith.constant 0 : index
    %56 = vector.load %arg14[%c0_36, %c0_37, %c0_38] : memref<1x2x128xf32, #tpu.memory_space<vmem>>, vector<1x2x128xf32>
    %57 = vector.shape_cast %56 : vector<1x2x128xf32> to vector<2x128xf32>
    %58 = vector.shape_cast %55 : vector<2x128xf32> to vector<1x2x128xf32>
    tpu.vector_store %arg14[%c0_36, %c0_37, %c0_38], %58 {strides = array<i32>} : memref<1x2x128xf32, #tpu.memory_space<vmem>>, vector<1x2x128xf32>,
    return
  }
  func.func @transform_0(%arg0: i32) -> (i32, i32, i32) {
    %c0_i32 = arith.constant 0 : i32
    %c0_i32_0 = arith.constant 0 : i32
    %c0_i32_1 = arith.constant 0 : i32
    return %arg0, %c0_i32, %c0_i32_0 : i32, i32, i32
  }
  func.func @transform_1(%arg0: i32) -> (i32, i32) {
    %c0_i32 = arith.constant 0 : i32
    %c0_i32_0 = arith.constant 0 : i32
    %c0_i32_1 = arith.constant 0 : i32
    return %c0_i32, %c0_i32_0 : i32, i32
  }
  func.func @transform_2(%arg0: i32) -> (i32, i32) {
    %c0_i32 = arith.constant 0 : i32
    %c0_i32_0 = arith.constant 0 : i32
    %c0_i32_1 = arith.constant 0 : i32
    return %c0_i32, %c0_i32_0 : i32, i32
  }
  func.func @transform_3(%arg0: i32) -> (i32, i32) {
    %c0_i32 = arith.constant 0 : i32
    %c0_i32_0 = arith.constant 0 : i32
    %c0_i32_1 = arith.constant 0 : i32
    return %c0_i32, %c0_i32_0 : i32, i32
  }
  func.func @transform_4(%arg0: i32) -> (i32, i32) {
    %c0_i32 = arith.constant 0 : i32
    %c0_i32_0 = arith.constant 0 : i32
    %c0_i32_1 = arith.constant 0 : i32
    return %c0_i32, %c0_i32_0 : i32, i32
  }
  func.func @transform_5(%arg0: i32) -> (i32, i32) {
    %c0_i32 = arith.constant 0 : i32
    %c0_i32_0 = arith.constant 0 : i32
    %c0_i32_1 = arith.constant 0 : i32
    return %c0_i32, %c0_i32_0 : i32, i32
  }
  func.func @transform_6(%arg0: i32) -> (i32, i32) {
    %c0_i32 = arith.constant 0 : i32
    %c0_i32_0 = arith.constant 0 : i32
    %c0_i32_1 = arith.constant 0 : i32
    return %c0_i32, %c0_i32_0 : i32, i32
  }
  func.func @transform_7(%arg0: i32) -> (i32, i32) {
    %c0_i32 = arith.constant 0 : i32
    %c0_i32_0 = arith.constant 0 : i32
    %c0_i32_1 = arith.constant 0 : i32
    return %c0_i32, %c0_i32_0 : i32, i32
  }
  func.func @transform_8(%arg0: i32) -> (i32, i32) {
    %c0_i32 = arith.constant 0 : i32
    %c0_i32_0 = arith.constant 0 : i32
    %c0_i32_1 = arith.constant 0 : i32
    return %c0_i32, %c0_i32_0 : i32, i32
  }
  func.func @transform_9(%arg0: i32) -> (i32, i32) {
    %c0_i32 = arith.constant 0 : i32
    %c0_i32_0 = arith.constant 0 : i32
    %c0_i32_1 = arith.constant 0 : i32
    return %c0_i32, %c0_i32_0 : i32, i32
  }
  func.func @transform_10(%arg0: i32) -> (i32, i32) {
    %c0_i32 = arith.constant 0 : i32
    %c0_i32_0 = arith.constant 0 : i32
    %c0_i32_1 = arith.constant 0 : i32
    return %c0_i32, %c0_i32_0 : i32, i32
  }
  func.func @transform_11(%arg0: i32) -> (i32, i32) {
    %c0_i32 = arith.constant 0 : i32
    %c0_i32_0 = arith.constant 0 : i32
    %c0_i32_1 = arith.constant 0 : i32
    return %c0_i32, %c0_i32_0 : i32, i32
  }
  func.func @transform_12(%arg0: i32) -> (i32, i32) {
    %c0_i32 = arith.constant 0 : i32
    %c0_i32_0 = arith.constant 0 : i32
    %c0_i32_1 = arith.constant 0 : i32
    return %c0_i32, %c0_i32_0 : i32, i32
  }
  func.func @transform_13(%arg0: i32) -> (i32, i32, i32) {
    %c0_i32 = arith.constant 0 : i32
    %c0_i32_0 = arith.constant 0 : i32
    %c0_i32_1 = arith.constant 0 : i32
    return %arg0, %c0_i32, %c0_i32_0 : i32, i32, i32
  }
}

</mosaic_0001>

<bundles_post_ra>
// kernel: net_forward.1
= control target key start
LH: loop header
LB: loop body
LE: loop exit
PB: predicated region body
PF: predicated region fallthrough
CT: control target
= control target key end

     0   :  { %vm1342_vm0 = vcmask 1044480   ;;  %vm1343_vm1 = vcmask 1045504   ;;  %v8234_v2 = vmov 65535   ;;  %vm957_vm2 = vcmask 220160   ;;  %s10622_s0 = inlined_call_operand.vmem [shape: bf16[2,1024,27], index: 0, kind: input, shape index: {}]   ;;  %s10623_s1 = inlined_call_operand.vmem [shape: bf16[4,1024], index: 1, kind: input, shape index: {}]   ;;  %s10624_s2 = inlined_call_operand.vmem [shape: bf16[27,16], index: 2, kind: input, shape index: {}]   ;;  %s10625_s3 = inlined_call_operand.vmem [shape: f32[1,16], index: 3, kind: input, shape index: {}]   ;;  %s10626_s4 = inlined_call_operand.vmem [shape: f32[1,16], index: 4, kind: input, shape index: {}]   ;;  %s10627_s5 = inlined_call_operand.vmem [shape: bf16[16,256], index: 5, kind: input, shape index: {}]   ;;  %s10628_s6 = inlined_call_operand.vmem [shape: f32[1,256], index: 6, kind: input, shape index: {}]   ;;  %s10629_s7 = inlined_call_operand.vmem [shape: f32[1,256], index: 7, kind: input, shape index: {}]   ;;  %s10630_s8 = inlined_call_operand.vmem [shape: bf16[256,1536], index: 8, kind: input, shape index: {}]   ;;  %s10631_s9 = inlined_call_operand.vmem [shape: f32[1,1536], index: 9, kind: input, shape index: {}]   ;;  %s10632_s10 = inlined_call_operand.vmem [shape: f32[1,1536], index: 10, kind: input, shape index: {}]   ;;  %s10633_s11 = inlined_call_operand.vmem [shape: bf16[1536,128], index: 11, kind: input, shape index: {}]   ;;  %s10634_s12 = inlined_call_operand.vmem [shape: f32[1,128], index: 12, kind: input, shape index: {}]   ;;  %s10635_s13 = inlined_call_operand.hbm [shape: f32[1,2,128], index: 13, kind: output, shape index: {}]  }
   0x1   :  { %v7677_v0 = vld [vmem:[%s10624_s2] sm:$0xff]   ;;  %v7678_v1 = vld [vmem:[%s10624_s2 + $0x8] sm:$0x3f]   ;;  %v1344_v3 = vsel %vm1342_vm0, 4294967295, %v8234_v2  ;;  %v7681_v8 = vld [vmem:[%s10622_s0 + $0x10] sm:$0xff]   ;;  %v3324_v57 = vlaneseq }
   0x2   :  { %7413 = vmatprep.subr.bf16.mxu0 %v7677_v0  ;;  %v7679_v4 = vld [vmem:[%s10622_s0] sm:$0xff]   ;;  %v1345_v5 = vsel %vm1343_vm1, %v1344_v3, 0  ;;  %v7680_v7 = vld [vmem:[%s10622_s0 + $0x8] sm:$0xff]   ;;  %v7682_v9 = vld [vmem:[%s10622_s0 + $0x18] sm:$0xff]   ;;  %v8235_v55 = vmov 1983009808  }
   0x3   :  { %7414 = vmatpush3.bf16.msra.mxu0 %v7677_v0  ;;  %v1347_v6 = vand.u32 %v7678_v1, %v1345_v5  ;;  %7417 = vmatprep.mubr.msk.bf16.mxu0 %vm957_vm2, %v7679_v4  ;;  %v7683_v10 = vld [vmem:[%s10622_s0 + $0x20] sm:$0xff]   ;;  %v7684_v11 = vld [vmem:[%s10622_s0 + $0x28] sm:$0xff]   ;;  %v7685_v12 = vld [vmem:[%s10622_s0 + $0x30] sm:$0xff]   ;;  %v3322_v56 = vunpack.c.l.s4 %v8235_v55  ;;  %v8508_v59 = vshrl.u32 %v3324_v57, 7 }
   0x4   :  { %v7686_v13 = vld [vmem:[%s10622_s0 + $0x38] sm:$0xff]   ;;  %v7687_v14 = vld [vmem:[%s10622_s0 + $0x40] sm:$0xff]   ;;  %v7688_v15 = vld [vmem:[%s10622_s0 + $0x48] sm:$0xff]  }
   0x5   :  { %7415 = vmatprep.subr.bf16.mxu0 %v1347_v6  ;;  %v7689_v16 = vld [vmem:[%s10622_s0 + $0x50] sm:$0xff]   ;;  %v7690_v17 = vld [vmem:[%s10622_s0 + $0x58] sm:$0xff]   ;;  %v7691_v18 = vld [vmem:[%s10622_s0 + $0x60] sm:$0xff]   ;;  %v3323_v58 = vunpack.c.0.s8 %v3322_v56 }
   0x6   :  { %v7692_v19 = vld [vmem:[%s10622_s0 + $0x68] sm:$0xff]   ;;  %v7693_v20 = vld [vmem:[%s10622_s0 + $0x70] sm:$0xff]   ;;  %v7694_v21 = vld [vmem:[%s10622_s0 + $0x78] sm:$0xff]  }
   0x7   :  { %7416 = vmatpush3.bf16.msra.mxu0 %v1347_v6  ;;  %v7695_v22 = vld [vmem:[%s10622_s0 + $0x80] sm:$0xff]   ;;  %v7696_v23 = vld [vmem:[%s10622_s0 + $0x88] sm:$0xff]   ;;  %v7697_v24 = vld [vmem:[%s10622_s0 + $0x90] sm:$0xff]   ;;  %v8513_v60 = vsub.s32 %v3323_v58, %v8508_v59 }
   0x8   :  { %v7698_v25 = vld [vmem:[%s10622_s0 + $0x98] sm:$0xff]   ;;  %v7699_v26 = vld [vmem:[%s10622_s0 + $0xa0] sm:$0xff]   ;;  %v7700_v27 = vld [vmem:[%s10622_s0 + $0xa8] sm:$0xff]  }
   0x9   :  { %v7701_v28 = vld [vmem:[%s10622_s0 + $0xb0] sm:$0xff]   ;;  %v7702_v29 = vld [vmem:[%s10622_s0 + $0xb8] sm:$0xff]   ;;  %v7703_v30 = vld [vmem:[%s10622_s0 + $0xc0] sm:$0xff]  }
   0xa   :  { %7418 = vmatmul.mubr.msk.bf16.vlgmr.msra.gmra.mrb[0].mxu0 %vm957_vm2, %v7680_v7  ;;  %v7704_v31 = vld [vmem:[%s10622_s0 + $0xc8] sm:$0xff]   ;;  %v7705_v32 = vld [vmem:[%s10622_s0 + $0xd0] sm:$0xff]   ;;  %v7706_v33 = vld [vmem:[%s10622_s0 + $0xd8] sm:$0xff]  }
   0xb   :  { %7421 = vmatprep.mubr.msk.bf16.mxu0 %vm957_vm2, %v7681_v8  ;;  %v7707_v34 = vld [vmem:[%s10622_s0 + $0xe0] sm:$0xff]   ;;  %v7708_v35 = vld [vmem:[%s10622_s0 + $0xe8] sm:$0xff]   ;;  %v7709_v36 = vld [vmem:[%s10622_s0 + $0xf0] sm:$0xff]  }
   0xc   :  { %v7710_v37 = vld [vmem:[%s10622_s0 + $0xf8] sm:$0xff]   ;;  %v7711_v38 = vld [vmem:[%s10622_s0 + $0x100] sm:$0xff]   ;;  %v7712_v39 = vld [vmem:[%s10622_s0 + $0x108] sm:$0xff]  }
   0xd   :  { %v7713_v40 = vld [vmem:[%s10622_s0 + $0x110] sm:$0xff]   ;;  %v7714_v41 = vld [vmem:[%s10622_s0 + $0x118] sm:$0xff]   ;;  %v7715_v42 = vld [vmem:[%s10622_s0 + $0x120] sm:$0xff]  }
   0xe   :  { %v7716_v43 = vld [vmem:[%s10622_s0 + $0x128] sm:$0xff]   ;;  %v7717_v44 = vld [vmem:[%s10622_s0 + $0x130] sm:$0xff]   ;;  %v7718_v45 = vld [vmem:[%s10622_s0 + $0x138] sm:$0xff]  }
   0xf   :  { %v7719_v46 = vld [vmem:[%s10622_s0 + $0x140] sm:$0xff]   ;;  %v7720_v47 = vld [vmem:[%s10622_s0 + $0x148] sm:$0xff]   ;;  %v7721_v48 = vld [vmem:[%s10622_s0 + $0x150] sm:$0xff]  }
  0x10   :  { %v7722_v49 = vld [vmem:[%s10622_s0 + $0x158] sm:$0xff]   ;;  %v7723_v50 = vld [vmem:[%s10622_s0 + $0x160] sm:$0xff]   ;;  %v7724_v51 = vld [vmem:[%s10622_s0 + $0x168] sm:$0xff]  }
  0x11   :  { %v7725_v52 = vld [vmem:[%s10622_s0 + $0x170] sm:$0xff]   ;;  %v7726_v53 = vld [vmem:[%s10622_s0 + $0x178] sm:$0xff]   ;;  %v7727_v54 = vld [vmem:[%s10622_s0 + $0x180] sm:$0xff]  }
  0x12   :  { %7422 = vmatmul.mubr.msk.bf16.gmra.mrb[4].mxu0 %vm957_vm2, %v7682_v9  ;;  %v7728_v61 = vld [vmem:[%s10622_s0 + $0x188] sm:$0xff]   ;;  %v8521_v62 = vld [vmem:[%s10623_s1] sm:$0xff]  ;;  %v7729_v0 = vld [vmem:[%s10622_s0 + $0x190] sm:$0xff]  }
  0x13   :  { %7425 = vmatprep.mubr.msk.bf16.mxu0 %vm957_vm2, %v7683_v10  ;;  %v8525_v63 = vrot.slane %v8521_v62, %v8513_v60  ;;  %v7730_v2 = vld [vmem:[%s10622_s0 + $0x198] sm:$0xff]   ;;  %v7731_v3 = vld [vmem:[%s10622_s0 + $0x1a0] sm:$0xff]   ;;  %v7732_v4 = vld [vmem:[%s10622_s0 + $0x1a8] sm:$0xff]  }
  0x14   :  { %v7733_v5 = vld [vmem:[%s10622_s0 + $0x1b0] sm:$0xff]   ;;  %v8554_v6 = vld [vmem:[%s10625_s3] ss:$0 sm:$0xff] }
  0x15   :  { %v8532_v1 = vcombine.high %v8525_v63, %v8525_v63  ;;  %v8560_v7 = vld [vmem:[%s10626_s4] ss:$0 sm:$0xff] }
  0x17   :  { %3394 = vmatprep.mubr.bf16.mxu1 %v8532_v1 }
  0x1a   :  { %7426 = vmatmul.mubr.msk.bf16.gmra.mrb[8].mxu0 %vm957_vm2, %v7684_v11  ;;  %v7734_v11 = vld [vmem:[%s10622_s0 + $0x1b8] sm:$0xff]  }
  0x1b   :  { %7429 = vmatprep.mubr.msk.bf16.mxu0 %vm957_vm2, %v7685_v12 }
  0x22   :  { %7430 = vmatmul.mubr.msk.bf16.gmra.mrb[12].mxu0 %vm957_vm2, %v7686_v13 }
  0x23   :  { %7433 = vmatprep.mubr.msk.bf16.mxu0 %vm957_vm2, %v7687_v14  ;;  %v7735_v14 = vld [vmem:[%s10622_s0 + $0x1c0] sm:$0xff]  }
  0x2a   :  { %7434 = vmatmul.mubr.msk.bf16.gmra.mrb[16].mxu0 %vm957_vm2, %v7688_v15 }
  0x2b   :  { %7437 = vmatprep.mubr.msk.bf16.mxu0 %vm957_vm2, %v7689_v16 }
  0x32   :  { %7438 = vmatmul.mubr.msk.bf16.gmra.mrb[20].mxu0 %vm957_vm2, %v7690_v17 }
  0x33   :  { %7441 = vmatprep.mubr.msk.bf16.mxu0 %vm957_vm2, %v7691_v18 }
  0x3a   :  { %7442 = vmatmul.mubr.msk.bf16.gmra.mrb[24].mxu0 %vm957_vm2, %v7692_v19 }
  0x3b   :  { %7445 = vmatprep.mubr.msk.bf16.mxu0 %vm957_vm2, %v7693_v20 }
  0x42   :  { %7446 = vmatmul.mubr.msk.bf16.gmra.mrb[28].mxu0 %vm957_vm2, %v7694_v21 }
  0x43   :  { %7449 = vmatprep.mubr.msk.bf16.mxu0 %vm957_vm2, %v7695_v22 }
  0x4a   :  { %7450 = vmatmul.mubr.msk.bf16.gmra.mrb[32].mxu0 %vm957_vm2, %v7696_v23 }
  0x4b   :  { %7453 = vmatprep.mubr.msk.bf16.mxu0 %vm957_vm2, %v7697_v24 }
  0x52   :  { %7454 = vmatmul.mubr.msk.bf16.gmra.mrb[36].mxu0 %vm957_vm2, %v7698_v25 }
  0x53   :  { %7457 = vmatprep.mubr.msk.bf16.mxu0 %vm957_vm2, %v7699_v26 }
  0x5a   :  { %7458 = vmatmul.mubr.msk.bf16.gmra.mrb[40].mxu0 %vm957_vm2, %v7700_v27 }
  0x5b   :  { %7461 = vmatprep.mubr.msk.bf16.mxu0 %vm957_vm2, %v7701_v28 }
  0x62   :  { %7462 = vmatmul.mubr.msk.bf16.gmra.mrb[44].mxu0 %vm957_vm2, %v7702_v29  ;;  %v7736_v29 = vld [vmem:[%s10622_s0 + $0x1c8] sm:$0xff]  }
  0x63   :  { %7465 = vmatprep.mubr.msk.bf16.mxu0 %vm957_vm2, %v7703_v30 }
  0x6a   :  { %7466 = vmatmul.mubr.msk.bf16.gmra.mrb[48].mxu0 %vm957_vm2, %v7704_v31 }
  0x6b   :  { %7469 = vmatprep.mubr.msk.bf16.mxu0 %vm957_vm2, %v7705_v32 }
  0x72   :  { %7470 = vmatmul.mubr.msk.bf16.gmra.mrb[52].mxu0 %vm957_vm2, %v7706_v33  ;;  %v7737_v33 = vld [vmem:[%s10622_s0 + $0x1d0] sm:$0xff]  }
  0x73   :  { %7473 = vmatprep.mubr.msk.bf16.mxu0 %vm957_vm2, %v7707_v34 }
  0x7a   :  { %7474 = vmatmul.mubr.msk.bf16.gmra.mrb[56].mxu0 %vm957_vm2, %v7708_v35 }
  0x7b   :  { %7477 = vmatprep.mubr.msk.bf16.mxu0 %vm957_vm2, %v7709_v36 }
  0x82   :  { %7478 = vmatmul.mubr.msk.bf16.gmra.mrb[60].mxu0 %vm957_vm2, %v7710_v37 }
  0x83   :  { %7481 = vmatprep.mubr.msk.bf16.mxu0 %vm957_vm2, %v7711_v38 }
  0x8a   :  { %7482 = vmatmul.mubr.msk.bf16.gmra.mrb[64].mxu0 %vm957_vm2, %v7712_v39 }
  0x8b   :  { %7485 = vmatprep.mubr.msk.bf16.mxu0 %vm957_vm2, %v7713_v40 }
  0x92   :  { %7486 = vmatmul.mubr.msk.bf16.gmra.mrb[68].mxu0 %vm957_vm2, %v7714_v41 }
  0x93   :  { %7489 = vmatprep.mubr.msk.bf16.mxu0 %vm957_vm2, %v7715_v42 }
  0x9a   :  { %7490 = vmatmul.mubr.msk.bf16.gmra.mrb[72].mxu0 %vm957_vm2, %v7716_v43 }
  0x9b   :  { %7493 = vmatprep.mubr.msk.bf16.mxu0 %vm957_vm2, %v7717_v44 }
  0xa2   :  { %7494 = vmatmul.mubr.msk.bf16.gmra.mrb[76].mxu0 %vm957_vm2, %v7718_v45 }
  0xa3   :  { %7497 = vmatprep.mubr.msk.bf16.mxu0 %vm957_vm2, %v7719_v46 }
  0xaa   :  { %7498 = vmatmul.mubr.msk.bf16.gmra.mrb[80].mxu0 %vm957_vm2, %v7720_v47 }
  0xab   :  { %7501 = vmatprep.mubr.msk.bf16.mxu0 %vm957_vm2, %v7721_v48 }
  0xb2   :  { %7502 = vmatmul.mubr.msk.bf16.gmra.mrb[84].mxu0 %vm957_vm2, %v7722_v49  ;;  %v7738_v49 = vld [vmem:[%s10622_s0 + $0x1d8] sm:$0xff]  }
  0xb3   :  { %7505 = vmatprep.mubr.msk.bf16.mxu0 %vm957_vm2, %v7723_v50 }
  0xba   :  { %7506 = vmatmul.mubr.msk.bf16.gmra.mrb[88].mxu0 %vm957_vm2, %v7724_v51 }
  0xbb   :  { %7509 = vmatprep.mubr.msk.bf16.mxu0 %vm957_vm2, %v7725_v52 }
  0xc2   :  { %7510 = vmatmul.mubr.msk.bf16.gmra.mrb[92].mxu0 %vm957_vm2, %v7726_v53  ;;  %v7739_v53 = vld [vmem:[%s10622_s0 + $0x1e0] sm:$0xff]  }
  0xc3   :  { %7513 = vmatprep.mubr.msk.bf16.mxu0 %vm957_vm2, %v7727_v54 }
  0xca   :  { %7514 = vmatmul.mubr.msk.bf16.gmra.mrb[96].mxu0 %vm957_vm2, %v7728_v61 }
  0xcb   :  { %7517 = vmatprep.mubr.msk.bf16.mxu0 %vm957_vm2, %v7729_v0 }
  0xd2   :  { %7518 = vmatmul.mubr.msk.bf16.gmra.mrb[100].mxu0 %vm957_vm2, %v7730_v2 }
  0xd3   :  { %7521 = vmatprep.mubr.msk.bf16.mxu0 %vm957_vm2, %v7731_v3 }
  0xda   :  { %7522 = vmatmul.mubr.msk.bf16.gmra.mrb[104].mxu0 %vm957_vm2, %v7732_v4 }
  0xdb   :  { %7525 = vmatprep.mubr.msk.bf16.mxu0 %vm957_vm2, %v7733_v5 }
  0xdd   :  { %v7419_v8 = vpop.f32.mrb[0].mxu0 }
  0xde   :  { %v2415_v9 = vmul.f32 %v7419_v8, %v8554_v6  ;;  %v1383_v10 = vpop.f32.mrb[1].mxu0 }
  0xdf   :  { %v2413_v12 = vmul.f32 %v8554_v6, %v1383_v10  ;;  %v7420_v13 = vpop.f32.mrb[2].mxu0 }
  0xe0   :  { %v2678_v15 = vadd.f32 %v8560_v7, %v2415_v9  ;;  %v2416_v16 = vmul.f32 %v7420_v13, %v8554_v6  ;;  %v1386_v17 = vpop.f32.mrb[3].mxu0 }
  0xe1   :  { %v2414_v18 = vmul.f32 %v8554_v6, %v1386_v17  ;;  %v2676_v19 = vadd.f32 %v8560_v7, %v2413_v12  ;;  %v7740_v12 = vld [vmem:[%s10622_s0 + $0x1e8] sm:$0xff]  }
  0xe2   :  { %v2679_v20 = vadd.f32 %v8560_v7, %v2416_v16  ;;  %7526 = vmatmul.mubr.msk.bf16.gmra.mrb[108].mxu0 %vm957_vm2, %v7734_v11  ;;  %v2934_v22 = vmax.f32 %v2678_v15, 0.0  ;;  %v7741_v16 = vld [vmem:[%s10622_s0 + $0x1f0] sm:$0xff]  }
  0xe3   :  { %7529 = vmatprep.mubr.msk.bf16.mxu0 %vm957_vm2, %v7735_v14  ;;  %v2677_v21 = vadd.f32 %v8560_v7, %v2414_v18  ;;  %v2932_v23 = vmax.f32 %v2676_v19, 0.0 }
  0xe4   :  { %v2935_v24 = vmax.f32 %v2679_v20, 0.0 }
  0xe5   :  { %v7423_v25 = vpop.f32.mrb[4].mxu0  ;;  %v2933_v26 = vmax.f32 %v2677_v21, 0.0 }
  0xe6   :  { %v2419_v27 = vmul.f32 %v7423_v25, %v8554_v6  ;;  %v1399_v28 = vpop.f32.mrb[5].mxu0  ;;  %v8583_v30 = vpack.c.bf16 %v2935_v24, %v2934_v22 }
  0xe7   :  { %v2417_v31 = vmul.f32 %v8554_v6, %v1399_v28  ;;  %v7424_v32 = vpop.f32.mrb[6].mxu0  ;;  %v8589_v34 = vpack.c.bf16 %v2933_v26, %v2932_v23 }
  0xe8   :  { %v2682_v35 = vadd.f32 %v8560_v7, %v2419_v27  ;;  %v2420_v36 = vmul.f32 %v7424_v32, %v8554_v6  ;;  %v1402_v37 = vpop.f32.mrb[7].mxu0 }
  0xe9   :  { %v2680_v38 = vadd.f32 %v8560_v7, %v2417_v31  ;;  %v2418_v39 = vmul.f32 %v8554_v6, %v1402_v37 }
  0xea   :  { %v2683_v40 = vadd.f32 %v8560_v7, %v2420_v36  ;;  %7530 = vmatmul.mubr.msk.bf16.gmra.mrb[112].mxu0 %vm957_vm2, %v7736_v29  ;;  %v2938_v42 = vmax.f32 %v2682_v35, 0.0 }
  0xeb   :  { %v2681_v41 = vadd.f32 %v8560_v7, %v2418_v39  ;;  %7533 = vmatprep.mubr.msk.bf16.mxu0 %vm957_vm2, %v7737_v33  ;;  %v2936_v43 = vmax.f32 %v2680_v38, 0.0  ;;  %v7742_v33 = vld [vmem:[%s10622_s0 + $0x1f8] sm:$0xff]   ;;  %v7743_v38 = vld [vmem:[%s10622_s0 + $0x200] sm:$0xff]  }
  0xec   :  { %v2939_v44 = vmax.f32 %v2683_v40, 0.0 }
  0xed   :  { %v7427_v45 = vpop.f32.mrb[8].mxu0  ;;  %v2937_v46 = vmax.f32 %v2681_v41, 0.0 }
  0xee   :  { %v2423_v47 = vmul.f32 %v7427_v45, %v8554_v6  ;;  %v1415_v48 = vpop.f32.mrb[9].mxu0  ;;  %v8603_v50 = vpack.c.bf16 %v2939_v44, %v2938_v42 }
  0xef   :  { %v2421_v51 = vmul.f32 %v8554_v6, %v1415_v48  ;;  %v7428_v52 = vpop.f32.mrb[10].mxu0  ;;  %v8609_v54 = vpack.c.bf16 %v2937_v46, %v2936_v43 }
  0xf0   :  { %v2686_v55 = vadd.f32 %v8560_v7, %v2423_v47  ;;  %v2424_v56 = vmul.f32 %v7428_v52, %v8554_v6  ;;  %v1418_v57 = vpop.f32.mrb[11].mxu0 }
  0xf1   :  { %v2684_v58 = vadd.f32 %v8560_v7, %v2421_v51  ;;  %v2422_v61 = vmul.f32 %v8554_v6, %v1418_v57 }
  0xf2   :  { %v2687_v0 = vadd.f32 %v8560_v7, %v2424_v56  ;;  %7534 = vmatmul.mubr.msk.bf16.gmra.mrb[116].mxu0 %vm957_vm2, %v7738_v49  ;;  %v2942_v3 = vmax.f32 %v2686_v55, 0.0 }
  0xf3   :  { %v2685_v2 = vadd.f32 %v8560_v7, %v2422_v61  ;;  %7537 = vmatprep.mubr.msk.bf16.mxu0 %vm957_vm2, %v7739_v53  ;;  %v2940_v4 = vmax.f32 %v2684_v58, 0.0 }
  0xf4   :  { %v2943_v5 = vmax.f32 %v2687_v0, 0.0 }
  0xf5   :  { %v7431_v8 = vpop.f32.mrb[12].mxu0  ;;  %v2941_v9 = vmax.f32 %v2685_v2, 0.0 }
  0xf6   :  { %v2427_v10 = vmul.f32 %v7431_v8, %v8554_v6  ;;  %v1431_v11 = vpop.f32.mrb[13].mxu0  ;;  %v8623_v13 = vpack.c.bf16 %v2943_v5, %v2942_v3 }
  0xf7   :  { %v2425_v14 = vmul.f32 %v8554_v6, %v1431_v11  ;;  %v7432_v15 = vpop.f32.mrb[14].mxu0  ;;  %v8629_v17 = vpack.c.bf16 %v2941_v9, %v2940_v4 }
  0xf8   :  { %v2690_v18 = vadd.f32 %v8560_v7, %v2427_v10  ;;  %v2428_v19 = vmul.f32 %v7432_v15, %v8554_v6  ;;  %v1434_v20 = vpop.f32.mrb[15].mxu0 }
  0xf9   :  { %v2688_v21 = vadd.f32 %v8560_v7, %v2425_v14  ;;  %v2426_v22 = vmul.f32 %v8554_v6, %v1434_v20 }
  0xfa   :  { %v2691_v23 = vadd.f32 %v8560_v7, %v2428_v19  ;;  %7538 = vmatmul.mubr.msk.bf16.gmra.mrb[120].mxu0 %vm957_vm2, %v7740_v12  ;;  %v2946_v25 = vmax.f32 %v2690_v18, 0.0 }
  0xfb   :  { %v2689_v24 = vadd.f32 %v8560_v7, %v2426_v22  ;;  %7541 = vmatprep.mubr.msk.bf16.mxu0 %vm957_vm2, %v7741_v16  ;;  %v2944_v26 = vmax.f32 %v2688_v21, 0.0 }
  0xfc   :  { %v2947_v27 = vmax.f32 %v2691_v23, 0.0 }
  0xfd   :  { %v7435_v28 = vpop.f32.mrb[16].mxu0  ;;  %v2945_v29 = vmax.f32 %v2689_v24, 0.0 }
  0xfe   :  { %v2431_v31 = vmul.f32 %v7435_v28, %v8554_v6  ;;  %v1447_v32 = vpop.f32.mrb[17].mxu0  ;;  %v8643_v35 = vpack.c.bf16 %v2947_v27, %v2946_v25 }
  0xff   :  { %v2429_v36 = vmul.f32 %v8554_v6, %v1447_v32  ;;  %v7436_v37 = vpop.f32.mrb[18].mxu0  ;;  %v8649_v39 = vpack.c.bf16 %v2945_v29, %v2944_v26 }
 0x100   :  { %v2694_v40 = vadd.f32 %v8560_v7, %v2431_v31  ;;  %v2432_v41 = vmul.f32 %v7436_v37, %v8554_v6  ;;  %v1450_v42 = vpop.f32.mrb[19].mxu0 }
 0x101   :  { %18 = vsyncpa [#allocation3], 0  ;;  %v2430_v43 = vmul.f32 %v8554_v6, %v1450_v42  ;;  %v2692_v44 = vadd.f32 %v8560_v7, %v2429_v36  ;;  %v7744_v56 = vld [vmem:[%s10622_s0 + $0x208] sm:$0xff]   ;;  %v7745_v2 = vld [vmem:[%s10622_s0 + $0x210] sm:$0xff]   ;;  %vm3699_vm3 = vcmask 130048   ;;  %vm6361_vm4 = vcmask 1043456  }
 0x102   :  { %v2695_v45 = vadd.f32 %v8560_v7, %v2432_v41  ;;  %7542 = vmatmul.mubr.msk.bf16.gmra.mrb[124].mxu0 %vm957_vm2, %v7742_v33  ;;  %v2950_v47 = vmax.f32 %v2694_v40, 0.0  ;;  %v7746_v21 = vld [vmem:[%s10622_s0 + $0x218] sm:$0xff]   ;;  %v7747_v25 = vld [vmem:[%s10622_s0 + $0x220] sm:$0xff]   ;;  %vm6403_vm5 = vcmask 1041409  }
 0x103   :  { %7545 = vmatprep.mubr.msk.bf16.mxu0 %vm957_vm2, %v7743_v38  ;;  %v2693_v46 = vadd.f32 %v8560_v7, %v2430_v43  ;;  %v2948_v51 = vmax.f32 %v2692_v44, 0.0  ;;  %v7748_v43 = vld [vmem:[%s10622_s0 + $0x228] sm:$0xff]  }
 0x104   :  { %v2951_v48 = vmax.f32 %v2695_v45, 0.0 }
 0x105   :  { %v7439_v49 = vpop.f32.mrb[20].mxu0  ;;  %v2949_v52 = vmax.f32 %v2693_v46, 0.0 }
 0x106   :  { %v2435_v53 = vmul.f32 %v7439_v49, %v8554_v6  ;;  %v1463_v55 = vpop.f32.mrb[21].mxu0  ;;  %v3197_v57 = vpack.c.bf16 %v2951_v48, %v2950_v47  ;;  %v7749_v47 = vld [vmem:[%s10622_s0 + $0x230] sm:$0xff]  }
 0x107   :  { %v2433_v58 = vmul.f32 %v8554_v6, %v1463_v55  ;;  %v7440_v61 = vpop.f32.mrb[22].mxu0  ;;  %v3196_v0 = vpack.c.bf16 %v2949_v52, %v2948_v51 }
 0x108   :  { %v2698_v3 = vadd.f32 %v8560_v7, %v2435_v53  ;;  %v2436_v4 = vmul.f32 %v7440_v61, %v8554_v6  ;;  %v1466_v5 = vpop.f32.mrb[23].mxu0 }
 0x109   :  { %v2696_v8 = vadd.f32 %v8560_v7, %v2433_v58  ;;  %v2434_v9 = vmul.f32 %v8554_v6, %v1466_v5  ;;  %7105 = vmatprep.subr.bf16.mxu1 %v3196_v0  ;;  %v3320_v5 = vcombine.high %v8521_v62, %v8521_v62 }
 0x10a   :  { %v2699_v10 = vadd.f32 %v8560_v7, %v2436_v4  ;;  %7546 = vmatmul.mubr.msk.bf16.gmra.mrb[128].mxu0 %vm957_vm2, %v7744_v56  ;;  %7106 = vmatpush3.bf16.msra.mxu1 %v8589_v34  ;;  %v2954_v12 = vmax.f32 %v2698_v3, 0.0  ;;  %v7750_v4 = vld [vmem:[%s10622_s0 + $0x238] sm:$0xff]  }
 0x10b   :  { %v2697_v11 = vadd.f32 %v8560_v7, %v2434_v9  ;;  %7107 = vmatprep.subr.bf16.mxu1 %v3197_v57  ;;  %7549 = vmatprep.mubr.msk.bf16.mxu0 %vm957_vm2, %v7745_v2  ;;  %v2952_v15 = vmax.f32 %v2696_v8, 0.0 }
 0x10c   :  { %v2955_v14 = vmax.f32 %v2699_v10, 0.0 }
 0x10d   :  { %v2953_v16 = vmax.f32 %v2697_v11, 0.0  ;;  %v7443_v18 = vpop.f32.mrb[24].mxu0  ;;  %v7751_v11 = vld [vmem:[%s10622_s0 + $0x240] sm:$0xff]  }
 0x10e   :  { %v2439_v19 = vmul.f32 %v7443_v18, %v8554_v6  ;;  %v1479_v20 = vpop.f32.mrb[25].mxu0  ;;  %7108 = vmatpush3.bf16.msra.mxu1 %v8583_v30  ;;  %v3199_v34 = vpack.c.bf16 %v2955_v14, %v2954_v12  ;;  %v8731_v18 = vrot.slane %v3320_v5, %v8513_v60 }
 0x10f   :  { %v2437_v22 = vmul.f32 %v8554_v6, %v1479_v20  ;;  %v7444_v23 = vpop.f32.mrb[26].mxu0  ;;  %v3198_v24 = vpack.c.bf16 %v2953_v16, %v2952_v15 }
 0x110   :  { %v2702_v26 = vadd.f32 %v8560_v7, %v2439_v19  ;;  %v2440_v27 = vmul.f32 %v7444_v23, %v8554_v6  ;;  %v1482_v28 = vpop.f32.mrb[27].mxu0 }
 0x111   :  { %v2700_v30 = vadd.f32 %v8560_v7, %v2437_v22  ;;  %v2438_v29 = vmul.f32 %v8554_v6, %v1482_v28  ;;  %7109 = vmatprep.subr.bf16.mxu1 %v3198_v24 }
 0x112   :  { %v2703_v31 = vadd.f32 %v8560_v7, %v2440_v27  ;;  %7550 = vmatmul.mubr.msk.bf16.gmra.mrb[132].mxu0 %vm957_vm2, %v7746_v21  ;;  %7110 = vmatpush3.bf16.msra.mxu1 %v8609_v54  ;;  %v2958_v33 = vmax.f32 %v2702_v26, 0.0  ;;  %v8744_v27 = vcombine.high %v8731_v18, %v8731_v18 }
 0x113   :  { %v2701_v32 = vadd.f32 %v8560_v7, %v2438_v29  ;;  %7111 = vmatprep.subr.bf16.mxu1 %v3199_v34  ;;  %7553 = vmatprep.mubr.msk.bf16.mxu0 %vm957_vm2, %v7747_v25  ;;  %v2956_v37 = vmax.f32 %v2700_v30, 0.0 }
 0x114   :  { %v2959_v36 = vmax.f32 %v2703_v31, 0.0  ;;  %v7753_v31 = vld [vmem:[%s10622_s0 + $0x250] sm:$0xff]  }
 0x115   :  { %v2957_v38 = vmax.f32 %v2701_v32, 0.0  ;;  %v7447_v40 = vpop.f32.mrb[28].mxu0 }
 0x116   :  { %v2443_v41 = vmul.f32 %v7447_v40, %v8554_v6  ;;  %v1495_v42 = vpop.f32.mrb[29].mxu0  ;;  %7112 = vmatpush3.bf16.msra.mxu1 %v8603_v50  ;;  %v3201_v54 = vpack.c.bf16 %v2959_v36, %v2958_v33 }
 0x117   :  { %v2441_v44 = vmul.f32 %v8554_v6, %v1495_v42  ;;  %v7448_v45 = vpop.f32.mrb[30].mxu0  ;;  %v3200_v46 = vpack.c.bf16 %v2957_v38, %v2956_v37 }
 0x118   :  { %v2706_v48 = vadd.f32 %v8560_v7, %v2443_v41  ;;  %v2444_v49 = vmul.f32 %v7448_v45, %v8554_v6  ;;  %v1498_v51 = vpop.f32.mrb[31].mxu0 }
 0x119   :  { %v2704_v50 = vadd.f32 %v8560_v7, %v2441_v44  ;;  %v2442_v52 = vmul.f32 %v8554_v6, %v1498_v51  ;;  %7113 = vmatprep.subr.bf16.mxu1 %v3200_v46 }
 0x11a   :  { %v2707_v53 = vadd.f32 %v8560_v7, %v2444_v49  ;;  %7554 = vmatmul.mubr.msk.bf16.gmra.mrb[136].mxu0 %vm957_vm2, %v7748_v43  ;;  %7114 = vmatpush3.bf16.msra.mxu1 %v8629_v17  ;;  %v2962_v56 = vmax.f32 %v2706_v48, 0.0  ;;  %v7754_v48 = vld [vmem:[%s10622_s0 + $0x258] sm:$0xff]  }
 0x11b   :  { %v2705_v55 = vadd.f32 %v8560_v7, %v2442_v52  ;;  %7115 = vmatprep.subr.bf16.mxu1 %v3201_v54  ;;  %7557 = vmatprep.mubr.msk.bf16.mxu0 %vm957_vm2, %v7749_v47  ;;  %v2960_v58 = vmax.f32 %v2704_v50, 0.0  ;;  %v7755_v52 = vld [vmem:[%s10622_s0 + $0x260] sm:$0xff]  }
 0x11c   :  { %v2963_v57 = vmax.f32 %v2707_v53, 0.0 }
 0x11d   :  { %v2961_v61 = vmax.f32 %v2705_v55, 0.0  ;;  %v7451_v0 = vpop.f32.mrb[32].mxu0 }
 0x11e   :  { %v2447_v2 = vmul.f32 %v7451_v0, %v8554_v6  ;;  %v1511_v3 = vpop.f32.mrb[33].mxu0  ;;  %7116 = vmatpush3.bf16.msra.mxu1 %v8623_v13  ;;  %v3203_v17 = vpack.c.bf16 %v2963_v57, %v2962_v56 }
 0x11f   :  { %v2445_v8 = vmul.f32 %v8554_v6, %v1511_v3  ;;  %v7452_v9 = vpop.f32.mrb[34].mxu0  ;;  %v3202_v10 = vpack.c.bf16 %v2961_v61, %v2960_v58 }
 0x120   :  { %v2710_v12 = vadd.f32 %v8560_v7, %v2447_v2  ;;  %v2448_v13 = vmul.f32 %v7452_v9, %v8554_v6  ;;  %v1514_v14 = vpop.f32.mrb[35].mxu0 }
 0x121   :  { %v2708_v15 = vadd.f32 %v8560_v7, %v2445_v8  ;;  %v2446_v16 = vmul.f32 %v8554_v6, %v1514_v14  ;;  %7117 = vmatprep.subr.bf16.mxu1 %v3202_v10 }
 0x122   :  { %v2711_v62 = vadd.f32 %v8560_v7, %v2448_v13  ;;  %7558 = vmatmul.mubr.msk.bf16.gmra.mrb[140].mxu0 %vm957_vm2, %v7750_v4  ;;  %7118 = vmatpush3.bf16.msra.mxu1 %v8649_v39  ;;  %v2966_v20 = vmax.f32 %v2710_v12, 0.0  ;;  %v7752_v39 = vld [vmem:[%s10622_s0 + $0x248] sm:$0xff]  }
 0x123   :  { %v2709_v19 = vadd.f32 %v8560_v7, %v2446_v16  ;;  %7119 = vmatprep.subr.bf16.mxu1 %v3203_v17  ;;  %7561 = vmatprep.mubr.msk.bf16.mxu0 %vm957_vm2, %v7751_v11  ;;  %v2964_v34 = vmax.f32 %v2708_v15, 0.0  ;;  %v7756_v11 = vld [vmem:[%s10622_s0 + $0x268] sm:$0xff]   ;;  %v7757_v15 = vld [vmem:[%s10622_s0 + $0x270] sm:$0xff]  }
 0x124   :  { %v2967_v21 = vmax.f32 %v2711_v62, 0.0 }
 0x125   :  { %v2965_v22 = vmax.f32 %v2709_v19, 0.0  ;;  %v7455_v23 = vpop.f32.mrb[36].mxu0 }
 0x126   :  { %v8735_v24 = vpack.c.bf16 %v2967_v21, %v2966_v20  ;;  %v2451_v25 = vmul.f32 %v7455_v23, %v8554_v6  ;;  %v1527_v26 = vpop.f32.mrb[37].mxu0  ;;  %7120 = vmatpush3.bf16.msra.mxu1 %v8643_v35 }
 0x127   :  { %v8746_v28 = vpack.c.bf16 %v2965_v22, %v2964_v34  ;;  %v2449_v30 = vmul.f32 %v8554_v6, %v1527_v26  ;;  %v7456_v29 = vpop.f32.mrb[38].mxu0 }
 0x128   :  { %v2714_v32 = vadd.f32 %v8560_v7, %v2451_v25  ;;  %v2452_v35 = vmul.f32 %v7456_v29, %v8554_v6  ;;  %v1530_v33 = vpop.f32.mrb[39].mxu0 }
 0x129   :  { %v2712_v36 = vadd.f32 %v8560_v7, %v2449_v30  ;;  %v2450_v37 = vmul.f32 %v8554_v6, %v1530_v33  ;;  %3395 = vmatmul.mubr.bf16.vlgmr.msra.gmra.mrb[0].mxu1 %v8525_v63 }
 0x12a   :  { %v2715_v38 = vadd.f32 %v8560_v7, %v2452_v35  ;;  %7562 = vmatmul.mubr.msk.bf16.gmra.mrb[144].mxu0 %vm957_vm2, %v7752_v39  ;;  %3434 = vmatprep.mubr.bf16.mxu1 %v8744_v27  ;;  %v2970_v41 = vmax.f32 %v2714_v32, 0.0  ;;  %v7758_v35 = vld [vmem:[%s10622_s0 + $0x278] sm:$0xff]  }
 0x12b   :  { %v2713_v40 = vadd.f32 %v8560_v7, %v2450_v37  ;;  %7565 = vmatprep.mubr.msk.bf16.mxu0 %vm957_vm2, %v7753_v31  ;;  %v2968_v43 = vmax.f32 %v2712_v36, 0.0 }
 0x12c   :  { %v2971_v42 = vmax.f32 %v2715_v38, 0.0  ;;  %v7759_v38 = vld [vmem:[%s10622_s0 + $0x280] sm:$0xff]  }
 0x12d   :  { %v2969_v54 = vmax.f32 %v2713_v40, 0.0  ;;  %v7459_v44 = vpop.f32.mrb[40].mxu0 }
 0x12e   :  { %v8762_v45 = vpack.c.bf16 %v2971_v42, %v2970_v41  ;;  %v2455_v46 = vmul.f32 %v7459_v44, %v8554_v6  ;;  %v1543_v47 = vpop.f32.mrb[41].mxu0 }
 0x12f   :  { %v8768_v49 = vpack.c.bf16 %v2969_v54, %v2968_v43  ;;  %v2453_v51 = vmul.f32 %v8554_v6, %v1543_v47  ;;  %v7460_v50 = vpop.f32.mrb[42].mxu0 }
 0x130   :  { %v2718_v53 = vadd.f32 %v8560_v7, %v2455_v46  ;;  %v2456_v55 = vmul.f32 %v7460_v50, %v8554_v6  ;;  %v1546_v56 = vpop.f32.mrb[43].mxu0 }
 0x131   :  { %v2716_v57 = vadd.f32 %v8560_v7, %v2453_v51  ;;  %v2454_v58 = vmul.f32 %v8554_v6, %v1546_v56  ;;  %v7761_v56 = vld [vmem:[%s10622_s0 + $0x288] sm:$0xff]  }
 0x132   :  { %v2719_v61 = vadd.f32 %v8560_v7, %v2456_v55  ;;  %7566 = vmatmul.mubr.msk.bf16.gmra.mrb[148].mxu0 %vm957_vm2, %v7754_v48  ;;  %v2974_v2 = vmax.f32 %v2718_v53, 0.0 }
 0x133   :  { %v2717_v0 = vadd.f32 %v8560_v7, %v2454_v58  ;;  %7569 = vmatprep.mubr.msk.bf16.mxu0 %vm957_vm2, %v7755_v52  ;;  %v2972_v4 = vmax.f32 %v2716_v57, 0.0 }
 0x134   :  { %v2975_v3 = vmax.f32 %v2719_v61, 0.0 }
 0x135   :  { %v2973_v17 = vmax.f32 %v2717_v0, 0.0  ;;  %v7463_v5 = vpop.f32.mrb[44].mxu0 }
 0x136   :  { %v8782_v8 = vpack.c.bf16 %v2975_v3, %v2974_v2  ;;  %v2459_v9 = vmul.f32 %v7463_v5, %v8554_v6  ;;  %v1559_v10 = vpop.f32.mrb[45].mxu0  ;;  %v7762_v2 = vld [vmem:[%s10622_s0 + $0x290] sm:$0xff]  }
 0x137   :  { %v8788_v12 = vpack.c.bf16 %v2973_v17, %v2972_v4  ;;  %v2457_v13 = vmul.f32 %v8554_v6, %v1559_v10  ;;  %v7464_v14 = vpop.f32.mrb[46].mxu0 }
 0x138   :  { %v2722_v16 = vadd.f32 %v8560_v7, %v2459_v9  ;;  %v2460_v62 = vmul.f32 %v7464_v14, %v8554_v6  ;;  %v1562_v19 = vpop.f32.mrb[47].mxu0 }
 0x139   :  { %v2720_v20 = vadd.f32 %v8560_v7, %v2457_v13  ;;  %v2458_v21 = vmul.f32 %v8554_v6, %v1562_v19 }
 0x13a   :  { %v2723_v34 = vadd.f32 %v8560_v7, %v2460_v62  ;;  %7570 = vmatmul.mubr.msk.bf16.gmra.mrb[152].mxu0 %vm957_vm2, %v7756_v11  ;;  %v2978_v23 = vmax.f32 %v2722_v16, 0.0 }
 0x13b   :  { %v2721_v22 = vadd.f32 %v8560_v7, %v2458_v21  ;;  %7573 = vmatprep.mubr.msk.bf16.mxu0 %vm957_vm2, %v7757_v15  ;;  %v2976_v26 = vmax.f32 %v2720_v20, 0.0  ;;  %v7763_v21 = vld [vmem:[%s10622_s0 + $0x298] sm:$0xff]  }
 0x13c   :  { %v2979_v25 = vmax.f32 %v2723_v34, 0.0 }
 0x13d   :  { %v2977_v39 = vmax.f32 %v2721_v22, 0.0  ;;  %v7467_v30 = vpop.f32.mrb[48].mxu0 }
 0x13e   :  { %v8802_v29 = vpack.c.bf16 %v2979_v25, %v2978_v23  ;;  %v2463_v31 = vmul.f32 %v7467_v30, %v8554_v6  ;;  %v1575_v32 = vpop.f32.mrb[49].mxu0  ;;  %v7764_v25 = vld [vmem:[%s10622_s0 + $0x2a0] sm:$0xff]  }
 0x13f   :  { %v8808_v33 = vpack.c.bf16 %v2977_v39, %v2976_v26  ;;  %v2461_v36 = vmul.f32 %v8554_v6, %v1575_v32  ;;  %v7468_v37 = vpop.f32.mrb[50].mxu0 }
 0x140   :  { %v2726_v40 = vadd.f32 %v8560_v7, %v2463_v31  ;;  %v2464_v41 = vmul.f32 %v7468_v37, %v8554_v6  ;;  %v1578_v42 = vpop.f32.mrb[51].mxu0 }
 0x141   :  { %v2724_v43 = vadd.f32 %v8560_v7, %v2461_v36  ;;  %v2462_v54 = vmul.f32 %v8554_v6, %v1578_v42 }
 0x142   :  { %v2727_v44 = vadd.f32 %v8560_v7, %v2464_v41  ;;  %7574 = vmatmul.mubr.msk.bf16.gmra.mrb[156].mxu0 %vm957_vm2, %v7758_v35  ;;  %v2982_v47 = vmax.f32 %v2726_v40, 0.0 }
 0x143   :  { %v2725_v46 = vadd.f32 %v8560_v7, %v2462_v54  ;;  %7577 = vmatprep.mubr.msk.bf16.mxu0 %vm957_vm2, %v7759_v38  ;;  %v2980_v51 = vmax.f32 %v2724_v43, 0.0  ;;  %v7765_v54 = vld [vmem:[%s10622_s0 + $0x2a8] sm:$0xff]  }
 0x144   :  { %v2983_v48 = vmax.f32 %v2727_v44, 0.0 }
 0x145   :  { %v2981_v50 = vmax.f32 %v2725_v46, 0.0  ;;  %v7471_v52 = vpop.f32.mrb[52].mxu0 }
 0x146   :  { %v2467_v53 = vmul.f32 %v7471_v52, %v8554_v6  ;;  %v1591_v55 = vpop.f32.mrb[53].mxu0  ;;  %v3213_v57 = vpack.c.bf16 %v2983_v48, %v2982_v47  ;;  %v7766_v48 = vld [vmem:[%s10622_s0 + $0x2b0] sm:$0xff]  }
 0x147   :  { %v2465_v58 = vmul.f32 %v8554_v6, %v1591_v55  ;;  %v7472_v61 = vpop.f32.mrb[54].mxu0  ;;  %v3212_v0 = vpack.c.bf16 %v2981_v50, %v2980_v51 }
 0x148   :  { %v2730_v3 = vadd.f32 %v8560_v7, %v2467_v53  ;;  %v2468_v4 = vmul.f32 %v7472_v61, %v8554_v6  ;;  %v1594_v17 = vpop.f32.mrb[55].mxu0 }
 0x149   :  { %v2728_v5 = vadd.f32 %v8560_v7, %v2465_v58  ;;  %v2466_v9 = vmul.f32 %v8554_v6, %v1594_v17  ;;  %7127 = vmatprep.subr.bf16.mxu1 %v3212_v0  ;;  %v7767_v17 = vld [vmem:[%s10622_s0 + $0x2b8] sm:$0xff]  }
 0x14a   :  { %v2731_v10 = vadd.f32 %v8560_v7, %v2468_v4  ;;  %7578 = vmatmul.mubr.msk.bf16.gmra.mrb[160].mxu0 %vm957_vm2, %v7761_v56  ;;  %7128 = vmatpush3.bf16.msra.mxu1 %v8746_v28  ;;  %v2986_v13 = vmax.f32 %v2730_v3, 0.0 }
 0x14b   :  { %v2729_v11 = vadd.f32 %v8560_v7, %v2466_v9  ;;  %7129 = vmatprep.subr.bf16.mxu1 %v3213_v57  ;;  %7581 = vmatprep.mubr.msk.bf16.mxu0 %vm957_vm2, %v7762_v2  ;;  %v2984_v15 = vmax.f32 %v2728_v5, 0.0 }
 0x14c   :  { %v2987_v14 = vmax.f32 %v2731_v10, 0.0 }
 0x14d   :  { %v2985_v16 = vmax.f32 %v2729_v11, 0.0  ;;  %v7475_v62 = vpop.f32.mrb[56].mxu0  ;;  %v7768_v11 = vld [vmem:[%s10622_s0 + $0x2c0] sm:$0xff]  }
 0x14e   :  { %v2471_v19 = vmul.f32 %v7475_v62, %v8554_v6  ;;  %v1607_v20 = vpop.f32.mrb[57].mxu0  ;;  %7130 = vmatpush3.bf16.msra.mxu1 %v8735_v24  ;;  %v3215_v28 = vpack.c.bf16 %v2987_v14, %v2986_v13  ;;  %v8887_v13 = vld [vmem:[%s10623_s1 + $0x8] sm:$0xff] }
 0x14f   :  { %v2469_v34 = vmul.f32 %v8554_v6, %v1607_v20  ;;  %v7476_v22 = vpop.f32.mrb[58].mxu0  ;;  %v3214_v23 = vpack.c.bf16 %v2985_v16, %v2984_v15  ;;  %v8898_v20 = vrot.slane %v8887_v13, %v8513_v60 }
 0x150   :  { %v2734_v26 = vadd.f32 %v8560_v7, %v2471_v19  ;;  %v2472_v39 = vmul.f32 %v7476_v22, %v8554_v6  ;;  %v1610_v30 = vpop.f32.mrb[59].mxu0 }
 0x151   :  { %v2732_v24 = vadd.f32 %v8560_v7, %v2469_v34  ;;  %v2470_v31 = vmul.f32 %v8554_v6, %v1610_v30  ;;  %7131 = vmatprep.subr.bf16.mxu1 %v3214_v23 }
 0x152   :  { %v2735_v32 = vadd.f32 %v8560_v7, %v2472_v39  ;;  %7582 = vmatmul.mubr.msk.bf16.gmra.mrb[164].mxu0 %vm957_vm2, %v7763_v21  ;;  %7132 = vmatpush3.bf16.msra.mxu1 %v8768_v49  ;;  %v2990_v36 = vmax.f32 %v2734_v26, 0.0 }
 0x153   :  { %v2733_v35 = vadd.f32 %v8560_v7, %v2470_v31  ;;  %7133 = vmatprep.subr.bf16.mxu1 %v3215_v28  ;;  %7585 = vmatprep.mubr.msk.bf16.mxu0 %vm957_vm2, %v7764_v25  ;;  %v2988_v38 = vmax.f32 %v2732_v24, 0.0  ;;  %v8911_v24 = vcombine.high %v8898_v20, %v8898_v20 }
 0x154   :  { %v2991_v37 = vmax.f32 %v2735_v32, 0.0 }
 0x155   :  { %v2989_v40 = vmax.f32 %v2733_v35, 0.0  ;;  %v7479_v41 = vpop.f32.mrb[60].mxu0 }
 0x156   :  { %v2475_v42 = vmul.f32 %v7479_v41, %v8554_v6  ;;  %v1623_v43 = vpop.f32.mrb[61].mxu0  ;;  %7134 = vmatpush3.bf16.msra.mxu1 %v8762_v45  ;;  %v3217_v49 = vpack.c.bf16 %v2991_v37, %v2990_v36  ;;  %v7770_v36 = vld [vmem:[%s10622_s0 + $0x2d0] sm:$0xff]  }
 0x157   :  { %v2473_v44 = vmul.f32 %v8554_v6, %v1623_v43  ;;  %v7480_v46 = vpop.f32.mrb[62].mxu0  ;;  %v3216_v47 = vpack.c.bf16 %v2989_v40, %v2988_v38  ;;  %v8935_v43 = vld [vmem:[%s10626_s4] ss:$0 sm:$0xff] }
 0x158   :  { %v2738_v51 = vadd.f32 %v8560_v7, %v2475_v42  ;;  %v2476_v50 = vmul.f32 %v7480_v46, %v8554_v6  ;;  %v1626_v52 = vpop.f32.mrb[63].mxu0 }
 0x159   :  { %v2736_v45 = vadd.f32 %v8560_v7, %v2473_v44  ;;  %v2474_v53 = vmul.f32 %v8554_v6, %v1626_v52  ;;  %7135 = vmatprep.subr.bf16.mxu1 %v3216_v47  ;;  %v7771_v52 = vld [vmem:[%s10622_s0 + $0x2d8] sm:$0xff]  }
 0x15a   :  { %v2739_v55 = vadd.f32 %v8560_v7, %v2476_v50  ;;  %7586 = vmatmul.mubr.msk.bf16.gmra.mrb[168].mxu0 %vm957_vm2, %v7765_v54  ;;  %7136 = vmatpush3.bf16.msra.mxu1 %v8788_v12  ;;  %v2994_v57 = vmax.f32 %v2738_v51, 0.0 }
 0x15b   :  { %v2737_v56 = vadd.f32 %v8560_v7, %v2474_v53  ;;  %7137 = vmatprep.subr.bf16.mxu1 %v3217_v49  ;;  %7589 = vmatprep.mubr.msk.bf16.mxu0 %vm957_vm2, %v7766_v48  ;;  %v2992_v61 = vmax.f32 %v2736_v45, 0.0 }
 0x15c   :  { %v2995_v58 = vmax.f32 %v2739_v55, 0.0 }
 0x15d   :  { %v2993_v0 = vmax.f32 %v2737_v56, 0.0  ;;  %v7483_v2 = vpop.f32.mrb[64].mxu0  ;;  %v7772_v56 = vld [vmem:[%s10622_s0 + $0x2e0] sm:$0xff]  }
 0x15e   :  { %v2479_v3 = vmul.f32 %v7483_v2, %v8554_v6  ;;  %v1639_v4 = vpop.f32.mrb[65].mxu0  ;;  %7138 = vmatpush3.bf16.msra.mxu1 %v8782_v8  ;;  %v3219_v12 = vpack.c.bf16 %v2995_v58, %v2994_v57 }
 0x15f   :  { %v2477_v5 = vmul.f32 %v8554_v6, %v1639_v4  ;;  %v7484_v9 = vpop.f32.mrb[66].mxu0  ;;  %v3218_v10 = vpack.c.bf16 %v2993_v0, %v2992_v61 }
 0x160   :  { %v2742_v8 = vadd.f32 %v8560_v7, %v2479_v3  ;;  %v2480_v14 = vmul.f32 %v7484_v9, %v8554_v6  ;;  %v1642_v15 = vpop.f32.mrb[67].mxu0 }
 0x161   :  { %v2740_v16 = vadd.f32 %v8560_v7, %v2477_v5  ;;  %v2478_v62 = vmul.f32 %v8554_v6, %v1642_v15  ;;  %7139 = vmatprep.subr.bf16.mxu1 %v3218_v10  ;;  %v7773_v15 = vld [vmem:[%s10622_s0 + $0x2e8] sm:$0xff]  }
 0x162   :  { %v2743_v19 = vadd.f32 %v8560_v7, %v2480_v14  ;;  %7590 = vmatmul.mubr.msk.bf16.gmra.mrb[172].mxu0 %vm957_vm2, %v7767_v17  ;;  %7140 = vmatpush3.bf16.msra.mxu1 %v8808_v33  ;;  %v2998_v28 = vmax.f32 %v2742_v8, 0.0  ;;  %v7769_v33 = vld [vmem:[%s10622_s0 + $0x2c8] sm:$0xff]  }
 0x163   :  { %v2741_v21 = vadd.f32 %v8560_v7, %v2478_v62  ;;  %7141 = vmatprep.subr.bf16.mxu1 %v3219_v12  ;;  %7593 = vmatprep.mubr.msk.bf16.mxu0 %vm957_vm2, %v7768_v11  ;;  %v2996_v22 = vmax.f32 %v2740_v16, 0.0 }
 0x164   :  { %v2999_v34 = vmax.f32 %v2743_v19, 0.0 }
 0x165   :  { %v2997_v23 = vmax.f32 %v2741_v21, 0.0  ;;  %v7487_v25 = vpop.f32.mrb[68].mxu0  ;;  %v7774_v21 = vld [vmem:[%s10622_s0 + $0x2f0] sm:$0xff]  }
 0x166   :  { %v8902_v26 = vpack.c.bf16 %v2999_v34, %v2998_v28  ;;  %v2483_v39 = vmul.f32 %v7487_v25, %v8554_v6  ;;  %v1655_v30 = vpop.f32.mrb[69].mxu0  ;;  %7142 = vmatpush3.bf16.msra.mxu1 %v8802_v29  ;;  %v8923_v29 = vld [vmem:[%s10625_s3] ss:$0 sm:$0xff] }
 0x167   :  { %v8913_v31 = vpack.c.bf16 %v2997_v23, %v2996_v22  ;;  %v2481_v32 = vmul.f32 %v8554_v6, %v1655_v30  ;;  %v7488_v35 = vpop.f32.mrb[70].mxu0 }
 0x168   :  { %v2746_v37 = vadd.f32 %v8560_v7, %v2483_v39  ;;  %v2484_v38 = vmul.f32 %v8923_v29, %v7488_v35  ;;  %v1658_v40 = vpop.f32.mrb[71].mxu0 }
 0x169   :  { %v2744_v41 = vadd.f32 %v8560_v7, %v2481_v32  ;;  %v2482_v42 = vmul.f32 %v8923_v29, %v1658_v40  ;;  %3435 = vmatmul.mubr.bf16.vlgmr.msra.gmra.mrb[4].mxu1 %v8731_v18 }
 0x16a   :  { %v2747_v6 = vadd.f32 %v8560_v7, %v2484_v38  ;;  %7594 = vmatmul.mubr.msk.bf16.gmra.mrb[176].mxu0 %vm957_vm2, %v7769_v33  ;;  %3474 = vmatprep.mubr.bf16.mxu1 %v8911_v24  ;;  %v3002_v49 = vmax.f32 %v2746_v37, 0.0 }
 0x16b   :  { %v2745_v54 = vadd.f32 %v8935_v43, %v2482_v42  ;;  %7597 = vmatprep.mubr.msk.bf16.mxu0 %vm957_vm2, %v7770_v36  ;;  %v3000_v46 = vmax.f32 %v2744_v41, 0.0  ;;  %v7775_v42 = vld [vmem:[%s10622_s0 + $0x2f8] sm:$0xff]  }
 0x16c   :  { %v3003_v44 = vmax.f32 %v2747_v6, 0.0 }
 0x16d   :  { %v3001_v47 = vmax.f32 %v2745_v54, 0.0  ;;  %v7491_v48 = vpop.f32.mrb[72].mxu0 }
 0x16e   :  { %v8939_v51 = vpack.c.bf16 %v3003_v44, %v3002_v49  ;;  %v2487_v7 = vmul.f32 %v8923_v29, %v7491_v48  ;;  %v1671_v50 = vpop.f32.mrb[73].mxu0  ;;  %v7776_v44 = vld [vmem:[%s10622_s0 + $0x300] sm:$0xff]  }
 0x16f   :  { %v8945_v45 = vpack.c.bf16 %v3001_v47, %v3000_v46  ;;  %v2485_v53 = vmul.f32 %v8923_v29, %v1671_v50  ;;  %v7492_v55 = vpop.f32.mrb[74].mxu0 }
 0x170   :  { %v2750_v57 = vadd.f32 %v8935_v43, %v2487_v7  ;;  %v2488_v58 = vmul.f32 %v8923_v29, %v7492_v55  ;;  %v1674_v61 = vpop.f32.mrb[75].mxu0 }
 0x171   :  { %v2748_v0 = vadd.f32 %v8935_v43, %v2485_v53  ;;  %v2486_v2 = vmul.f32 %v8923_v29, %v1674_v61 }
 0x172   :  { %v2751_v3 = vadd.f32 %v8935_v43, %v2488_v58  ;;  %7598 = vmatmul.mubr.msk.bf16.gmra.mrb[180].mxu0 %vm957_vm2, %v7771_v52  ;;  %v3006_v17 = vmax.f32 %v2750_v57, 0.0 }
 0x173   :  { %v2749_v4 = vadd.f32 %v8935_v43, %v2486_v2  ;;  %7601 = vmatprep.mubr.msk.bf16.mxu0 %vm957_vm2, %v7772_v56  ;;  %v3004_v5 = vmax.f32 %v2748_v0, 0.0 }
 0x174   :  { %v3007_v12 = vmax.f32 %v2751_v3, 0.0  ;;  %v7777_v3 = vld [vmem:[%s10622_s0 + $0x308] sm:$0xff]  }
 0x175   :  { %v3005_v9 = vmax.f32 %v2749_v4, 0.0  ;;  %v7495_v10 = vpop.f32.mrb[76].mxu0 }
 0x176   :  { %v8959_v11 = vpack.c.bf16 %v3007_v12, %v3006_v17  ;;  %v2491_v8 = vmul.f32 %v8923_v29, %v7495_v10  ;;  %v1687_v14 = vpop.f32.mrb[77].mxu0 }
 0x177   :  { %v8965_v16 = vpack.c.bf16 %v3005_v9, %v3004_v5  ;;  %v2489_v62 = vmul.f32 %v8923_v29, %v1687_v14  ;;  %v7496_v19 = vpop.f32.mrb[78].mxu0  ;;  %v7778_v9 = vld [vmem:[%s10622_s0 + $0x310] sm:$0xff]  }
 0x178   :  { %v2754_v28 = vadd.f32 %v8935_v43, %v2491_v8  ;;  %v2492_v34 = vmul.f32 %v8923_v29, %v7496_v19  ;;  %v1690_v22 = vpop.f32.mrb[79].mxu0 }
 0x179   :  { %v2752_v23 = vadd.f32 %v8935_v43, %v2489_v62  ;;  %v2490_v25 = vmul.f32 %v8923_v29, %v1690_v22 }
 0x17a   :  { %v2755_v39 = vadd.f32 %v8935_v43, %v2492_v34  ;;  %7602 = vmatmul.mubr.msk.bf16.gmra.mrb[184].mxu0 %vm957_vm2, %v7773_v15  ;;  %v3010_v33 = vmax.f32 %v2754_v28, 0.0 }
 0x17b   :  { %v2753_v30 = vadd.f32 %v8935_v43, %v2490_v25  ;;  %7605 = vmatprep.mubr.msk.bf16.mxu0 %vm957_vm2, %v7774_v21  ;;  %v3008_v35 = vmax.f32 %v2752_v23, 0.0 }
 0x17c   :  { %v3011_v32 = vmax.f32 %v2755_v39, 0.0 }
 0x17d   :  { %v3009_v36 = vmax.f32 %v2753_v30, 0.0  ;;  %v7499_v37 = vpop.f32.mrb[80].mxu0 }
 0x17e   :  { %v8979_v38 = vpack.c.bf16 %v3011_v32, %v3010_v33  ;;  %v2495_v40 = vmul.f32 %v8923_v29, %v7499_v37  ;;  %v1703_v41 = vpop.f32.mrb[81].mxu0  ;;  %v7779_v33 = vld [vmem:[%s10622_s0 + $0x318] sm:$0xff]   ;;  %v7780_v37 = vld [vmem:[%s10622_s0 + $0x320] sm:$0xff]  }
 0x17f   :  { %v8985_v6 = vpack.c.bf16 %v3009_v36, %v3008_v35  ;;  %v2493_v54 = vmul.f32 %v8923_v29, %v1703_v41  ;;  %v7500_v49 = vpop.f32.mrb[82].mxu0 }
 0x180   :  { %v2758_v46 = vadd.f32 %v8935_v43, %v2495_v40  ;;  %v2496_v47 = vmul.f32 %v8923_v29, %v7500_v49  ;;  %v1706_v48 = vpop.f32.mrb[83].mxu0 }
 0x181   :  { %v2756_v7 = vadd.f32 %v8935_v43, %v2493_v54  ;;  %v2494_v50 = vmul.f32 %v8923_v29, %v1706_v48 }
 0x182   :  { %v2759_v52 = vadd.f32 %v8935_v43, %v2496_v47  ;;  %7606 = vmatmul.mubr.msk.bf16.gmra.mrb[188].mxu0 %vm957_vm2, %v7775_v42  ;;  %v3014_v55 = vmax.f32 %v2758_v46, 0.0 }
 0x183   :  { %v2757_v53 = vadd.f32 %v8935_v43, %v2494_v50  ;;  %7609 = vmatprep.mubr.msk.bf16.mxu0 %vm957_vm2, %v7776_v44  ;;  %v3012_v57 = vmax.f32 %v2756_v7, 0.0 }
 0x184   :  { %v3015_v56 = vmax.f32 %v2759_v52, 0.0 }
 0x185   :  { %v3013_v58 = vmax.f32 %v2757_v53, 0.0  ;;  %v7503_v61 = vpop.f32.mrb[84].mxu0 }
 0x186   :  { %v2499_v0 = vmul.f32 %v8923_v29, %v7503_v61  ;;  %v1719_v2 = vpop.f32.mrb[85].mxu0  ;;  %v3229_v4 = vpack.c.bf16 %v3015_v56, %v3014_v55  ;;  %v7781_v55 = vld [vmem:[%s10622_s0 + $0x328] sm:$0xff]   ;;  %v7782_v61 = vld [vmem:[%s10622_s0 + $0x330] sm:$0xff]  }
 0x187   :  { %v2497_v17 = vmul.f32 %v8923_v29, %v1719_v2  ;;  %v7504_v12 = vpop.f32.mrb[86].mxu0  ;;  %v3228_v5 = vpack.c.bf16 %v3013_v58, %v3012_v57 }
 0x188   :  { %v2762_v10 = vadd.f32 %v8935_v43, %v2499_v0  ;;  %v2500_v8 = vmul.f32 %v8923_v29, %v7504_v12  ;;  %v1722_v14 = vpop.f32.mrb[87].mxu0 }
 0x189   :  { %v2760_v15 = vadd.f32 %v8935_v43, %v2497_v17  ;;  %v2498_v62 = vmul.f32 %v8923_v29, %v1722_v14  ;;  %7149 = vmatprep.subr.bf16.mxu1 %v3228_v5 }
 0x18a   :  { %v2763_v19 = vadd.f32 %v8935_v43, %v2500_v8  ;;  %7610 = vmatmul.mubr.msk.bf16.gmra.mrb[192].mxu0 %vm957_vm2, %v7777_v3  ;;  %7150 = vmatpush3.bf16.msra.mxu1 %v8913_v31  ;;  %v3018_v28 = vmax.f32 %v2762_v10, 0.0 }
 0x18b   :  { %v2761_v21 = vadd.f32 %v8935_v43, %v2498_v62  ;;  %7151 = vmatprep.subr.bf16.mxu1 %v3229_v4  ;;  %7613 = vmatprep.mubr.msk.bf16.mxu0 %vm957_vm2, %v7778_v9  ;;  %v3016_v22 = vmax.f32 %v2760_v15, 0.0 }
 0x18c   :  { %v3019_v34 = vmax.f32 %v2763_v19, 0.0  ;;  %v7783_v19 = vld [vmem:[%s10622_s0 + $0x338] sm:$0xff]  }
 0x18d   :  { %v3017_v23 = vmax.f32 %v2761_v21, 0.0  ;;  %v7507_v25 = vpop.f32.mrb[88].mxu0  ;;  %v3337_v21 = vcombine.high %v8887_v13, %v8887_v13 }
 0x18e   :  { %v2503_v39 = vmul.f32 %v8923_v29, %v7507_v25  ;;  %v1735_v30 = vpop.f32.mrb[89].mxu0  ;;  %7152 = vmatpush3.bf16.msra.mxu1 %v8902_v26  ;;  %v3231_v31 = vpack.c.bf16 %v3019_v34, %v3018_v28 }
 0x18f   :  { %v2501_v32 = vmul.f32 %v8923_v29, %v1735_v30  ;;  %v7508_v35 = vpop.f32.mrb[90].mxu0  ;;  %v3230_v36 = vpack.c.bf16 %v3017_v23, %v3016_v22  ;;  %v7784_v23 = vld [vmem:[%s10622_s0 + $0x340] sm:$0xff]  }
 0x190   :  { %v2766_v40 = vadd.f32 %v8935_v43, %v2503_v39  ;;  %v2504_v41 = vmul.f32 %v8923_v29, %v7508_v35  ;;  %v1738_v42 = vpop.f32.mrb[91].mxu0 }
 0x191   :  { %v2764_v26 = vadd.f32 %v8935_v43, %v2501_v32  ;;  %v2502_v54 = vmul.f32 %v8923_v29, %v1738_v42  ;;  %7153 = vmatprep.subr.bf16.mxu1 %v3230_v36 }
 0x192   :  { %v2767_v49 = vadd.f32 %v8935_v43, %v2504_v41  ;;  %7614 = vmatmul.mubr.msk.bf16.gmra.mrb[196].mxu0 %vm957_vm2, %v7779_v33  ;;  %7154 = vmatpush3.bf16.msra.mxu1 %v8945_v45  ;;  %v3022_v46 = vmax.f32 %v2766_v40, 0.0 }
 0x193   :  { %v2765_v44 = vadd.f32 %v8935_v43, %v2502_v54  ;;  %7155 = vmatprep.subr.bf16.mxu1 %v3231_v31  ;;  %7617 = vmatprep.mubr.msk.bf16.mxu0 %vm957_vm2, %v7780_v37  ;;  %v3020_v48 = vmax.f32 %v2764_v26, 0.0  ;;  %v9071_v31 = vrot.slane %v3337_v21, %v8513_v60  ;;  %v7785_v60 = vld [vmem:[%s10622_s0 + $0x348] sm:$0xff]  }
 0x194   :  { %v3023_v47 = vmax.f32 %v2767_v49, 0.0 }
 0x195   :  { %v3021_v7 = vmax.f32 %v2765_v44, 0.0  ;;  %v7511_v50 = vpop.f32.mrb[92].mxu0 }
 0x196   :  { %v2507_v52 = vmul.f32 %v8923_v29, %v7511_v50  ;;  %v1751_v53 = vpop.f32.mrb[93].mxu0  ;;  %7156 = vmatpush3.bf16.msra.mxu1 %v8939_v51  ;;  %v3233_v45 = vpack.c.bf16 %v3023_v47, %v3022_v46  ;;  %v7786_v47 = vld [vmem:[%s10622_s0 + $0x350] sm:$0xff]  }
 0x197   :  { %v2505_v56 = vmul.f32 %v8923_v29, %v1751_v53  ;;  %v7512_v57 = vpop.f32.mrb[94].mxu0  ;;  %v3232_v58 = vpack.c.bf16 %v3021_v7, %v3020_v48 }
 0x198   :  { %v2770_v0 = vadd.f32 %v8935_v43, %v2507_v52  ;;  %v2508_v2 = vmul.f32 %v8923_v29, %v7512_v57  ;;  %v1754_v3 = vpop.f32.mrb[95].mxu0 }
 0x199   :  { %v2768_v51 = vadd.f32 %v8935_v43, %v2505_v56  ;;  %v2506_v4 = vmul.f32 %v8923_v29, %v1754_v3  ;;  %7157 = vmatprep.subr.bf16.mxu1 %v3232_v58 }
 0x19a   :  { %v2771_v17 = vadd.f32 %v8935_v43, %v2508_v2  ;;  %7618 = vmatmul.mubr.msk.bf16.gmra.mrb[200].mxu0 %vm957_vm2, %v7781_v55  ;;  %7158 = vmatpush3.bf16.msra.mxu1 %v8965_v16  ;;  %v3026_v5 = vmax.f32 %v2770_v0, 0.0 }
 0x19b   :  { %v2769_v12 = vadd.f32 %v8935_v43, %v2506_v4  ;;  %7159 = vmatprep.subr.bf16.mxu1 %v3233_v45  ;;  %7621 = vmatprep.mubr.msk.bf16.mxu0 %vm957_vm2, %v7782_v61  ;;  %v3024_v10 = vmax.f32 %v2768_v51, 0.0  ;;  %v7787_v51 = vld [vmem:[%s10622_s0 + $0x358] sm:$0xff]  }
 0x19c   :  { %v3027_v9 = vmax.f32 %v2771_v17, 0.0 }
 0x19d   :  { %v3025_v8 = vmax.f32 %v2769_v12, 0.0  ;;  %v7515_v14 = vpop.f32.mrb[96].mxu0 }
 0x19e   :  { %v2511_v15 = vmul.f32 %v8923_v29, %v7515_v14  ;;  %v1767_v62 = vpop.f32.mrb[97].mxu0  ;;  %7160 = vmatpush3.bf16.msra.mxu1 %v8959_v11  ;;  %v3235_v16 = vpack.c.bf16 %v3027_v9, %v3026_v5  ;;  %v7788_v5 = vld [vmem:[%s10622_s0 + $0x360] sm:$0xff]  }
 0x19f   :  { %v2509_v28 = vmul.f32 %v8923_v29, %v1767_v62  ;;  %v7516_v34 = vpop.f32.mrb[98].mxu0  ;;  %v3234_v22 = vpack.c.bf16 %v3025_v8, %v3024_v10 }
 0x1a0   :  { %v2774_v25 = vadd.f32 %v8935_v43, %v2511_v15  ;;  %v2512_v11 = vmul.f32 %v8923_v29, %v7516_v34  ;;  %v1770_v39 = vpop.f32.mrb[99].mxu0 }
 0x1a1   :  { %v2772_v30 = vadd.f32 %v8935_v43, %v2509_v28  ;;  %v2510_v33 = vmul.f32 %v8923_v29, %v1770_v39  ;;  %7161 = vmatprep.subr.bf16.mxu1 %v3234_v22  ;;  %v7789_v39 = vld [vmem:[%s10622_s0 + $0x368] sm:$0xff]  }
 0x1a2   :  { %v2775_v13 = vadd.f32 %v8935_v43, %v2512_v11  ;;  %7622 = vmatmul.mubr.msk.bf16.gmra.mrb[204].mxu0 %vm957_vm2, %v7783_v19  ;;  %7162 = vmatpush3.bf16.msra.mxu1 %v8985_v6  ;;  %v3030_v35 = vmax.f32 %v2774_v25, 0.0  ;;  %v9084_v6 = vcombine.high %v9071_v31, %v9071_v31 }
 0x1a3   :  { %v2773_v32 = vadd.f32 %v8935_v43, %v2510_v33  ;;  %7163 = vmatprep.subr.bf16.mxu1 %v3235_v16  ;;  %7625 = vmatprep.mubr.msk.bf16.mxu0 %vm957_vm2, %v7784_v23  ;;  %v3028_v37 = vmax.f32 %v2772_v30, 0.0 }
 0x1a4   :  { %v3031_v36 = vmax.f32 %v2775_v13, 0.0 }
 0x1a5   :  { %v3029_v40 = vmax.f32 %v2773_v32, 0.0  ;;  %v7519_v41 = vpop.f32.mrb[100].mxu0  ;;  %v7790_v32 = vld [vmem:[%s10622_s0 + $0x370] sm:$0xff]  }
 0x1a6   :  { %v9075_v42 = vpack.c.bf16 %v3031_v36, %v3030_v35  ;;  %v2515_v26 = vmul.f32 %v8923_v29, %v7519_v41  ;;  %v1783_v54 = vpop.f32.mrb[101].mxu0  ;;  %7164 = vmatpush3.bf16.msra.mxu1 %v8979_v38 }
 0x1a7   :  { %v9086_v49 = vpack.c.bf16 %v3029_v40, %v3028_v37  ;;  %v2513_v44 = vmul.f32 %v8923_v29, %v1783_v54  ;;  %v7520_v46 = vpop.f32.mrb[102].mxu0 }
 0x1a8   :  { %v2778_v48 = vadd.f32 %v8935_v43, %v2515_v26  ;;  %v2516_v38 = vmul.f32 %v8923_v29, %v7520_v46  ;;  %v1786_v7 = vpop.f32.mrb[103].mxu0 }
 0x1a9   :  { %v2776_v50 = vadd.f32 %v8935_v43, %v2513_v44  ;;  %v2514_v52 = vmul.f32 %v8923_v29, %v1786_v7  ;;  %3475 = vmatmul.mubr.bf16.vlgmr.msra.gmra.mrb[8].mxu1 %v8898_v20 }
 0x1aa   :  { %v2779_v53 = vadd.f32 %v8935_v43, %v2516_v38  ;;  %7626 = vmatmul.mubr.msk.bf16.gmra.mrb[208].mxu0 %vm957_vm2, %v7785_v60  ;;  %3514 = vmatprep.mubr.bf16.mxu1 %v9084_v6  ;;  %v3034_v45 = vmax.f32 %v2778_v48, 0.0 }
 0x1ab   :  { %v2777_v55 = vadd.f32 %v8935_v43, %v2514_v52  ;;  %7629 = vmatprep.mubr.msk.bf16.mxu0 %vm957_vm2, %v7786_v47  ;;  %v3032_v57 = vmax.f32 %v2776_v50, 0.0  ;;  %v7791_v52 = vld [vmem:[%s10622_s0 + $0x378] sm:$0xff]  }
 0x1ac   :  { %v3035_v56 = vmax.f32 %v2779_v53, 0.0 }
 0x1ad   :  { %v3033_v58 = vmax.f32 %v2777_v55, 0.0  ;;  %v7523_v61 = vpop.f32.mrb[104].mxu0 }
 0x1ae   :  { %v9102_v0 = vpack.c.bf16 %v3035_v56, %v3034_v45  ;;  %v2519_v2 = vmul.f32 %v8923_v29, %v7523_v61  ;;  %v1799_v3 = vpop.f32.mrb[105].mxu0  ;;  %v7792_v56 = vld [vmem:[%s10622_s0 + $0x380] sm:$0xff]  }
 0x1af   :  { %v9108_v4 = vpack.c.bf16 %v3033_v58, %v3032_v57  ;;  %v2517_v17 = vmul.f32 %v8923_v29, %v1799_v3  ;;  %v7524_v12 = vpop.f32.mrb[106].mxu0 }
 0x1b0   :  { %v2782_v9 = vadd.f32 %v8935_v43, %v2519_v2  ;;  %v2520_v10 = vmul.f32 %v8923_v29, %v7524_v12  ;;  %v1802_v8 = vpop.f32.mrb[107].mxu0 }
 0x1b1   :  { %v2780_v14 = vadd.f32 %v8935_v43, %v2517_v17  ;;  %v2518_v15 = vmul.f32 %v8923_v29, %v1802_v8 }
 0x1b2   :  { %v2783_v62 = vadd.f32 %v8935_v43, %v2520_v10  ;;  %7630 = vmatmul.mubr.msk.bf16.gmra.mrb[212].mxu0 %vm957_vm2, %v7787_v51  ;;  %v3038_v16 = vmax.f32 %v2782_v9, 0.0 }
 0x1b3   :  { %v2781_v19 = vadd.f32 %v8935_v43, %v2518_v15  ;;  %7633 = vmatprep.mubr.msk.bf16.mxu0 %vm957_vm2, %v7788_v5  ;;  %v3036_v28 = vmax.f32 %v2780_v14, 0.0 }
 0x1b4   :  { %v3039_v21 = vmax.f32 %v2783_v62, 0.0  ;;  %v7793_v62 = vld [vmem:[%s10622_s0 + $0x388] sm:$0xff]  }
 0x1b5   :  { %v3037_v34 = vmax.f32 %v2781_v19, 0.0  ;;  %v7527_v22 = vpop.f32.mrb[108].mxu0 }
 0x1b6   :  { %v9122_v23 = vpack.c.bf16 %v3039_v21, %v3038_v16  ;;  %v2523_v25 = vmul.f32 %v8923_v29, %v7527_v22  ;;  %v1815_v11 = vpop.f32.mrb[109].mxu0 }
 0x1b7   :  { %v9128_v30 = vpack.c.bf16 %v3037_v34, %v3036_v28  ;;  %v2521_v33 = vmul.f32 %v8923_v29, %v1815_v11  ;;  %v7528_v13 = vpop.f32.mrb[110].mxu0  ;;  %v7794_v34 = vld [vmem:[%s10622_s0 + $0x390] sm:$0xff]  }
 0x1b8   :  { %v2786_v35 = vadd.f32 %v8935_v43, %v2523_v25  ;;  %v2524_v36 = vmul.f32 %v8923_v29, %v7528_v13  ;;  %v1818_v37 = vpop.f32.mrb[111].mxu0 }
 0x1b9   :  { %v2784_v40 = vadd.f32 %v8935_v43, %v2521_v33  ;;  %v2522_v41 = vmul.f32 %v8923_v29, %v1818_v37 }
 0x1ba   :  { %v2787_v26 = vadd.f32 %v8935_v43, %v2524_v36  ;;  %7634 = vmatmul.mubr.msk.bf16.gmra.mrb[216].mxu0 %vm957_vm2, %v7789_v39  ;;  %v3042_v60 = vmax.f32 %v2786_v35, 0.0 }
 0x1bb   :  { %v2785_v54 = vadd.f32 %v8935_v43, %v2522_v41  ;;  %7637 = vmatprep.mubr.msk.bf16.mxu0 %vm957_vm2, %v7790_v32  ;;  %v3040_v46 = vmax.f32 %v2784_v40, 0.0 }
 0x1bc   :  { %v3043_v44 = vmax.f32 %v2787_v26, 0.0 }
 0x1bd   :  { %v3041_v47 = vmax.f32 %v2785_v54, 0.0  ;;  %v7531_v48 = vpop.f32.mrb[112].mxu0 }
 0x1be   :  { %v9142_v38 = vpack.c.bf16 %v3043_v44, %v3042_v60  ;;  %v2527_v7 = vmul.f32 %v8923_v29, %v7531_v48  ;;  %v1831_v50 = vpop.f32.mrb[113].mxu0  ;;  %v7795_v60 = vld [vmem:[%s10622_s0 + $0x398] sm:$0xff]   ;;  %v7796_v48 = vld [vmem:[%s10622_s0 + $0x3a0] sm:$0xff]  }
 0x1bf   :  { %v9148_v53 = vpack.c.bf16 %v3041_v47, %v3040_v46  ;;  %v2525_v55 = vmul.f32 %v8923_v29, %v1831_v50  ;;  %v7532_v45 = vpop.f32.mrb[114].mxu0 }
 0x1c0   :  { %v2790_v57 = vadd.f32 %v8935_v43, %v2527_v7  ;;  %v2528_v58 = vmul.f32 %v8923_v29, %v7532_v45  ;;  %v1834_v61 = vpop.f32.mrb[115].mxu0 }
 0x1c1   :  { %v2788_v2 = vadd.f32 %v8935_v43, %v2525_v55  ;;  %v2526_v3 = vmul.f32 %v8923_v29, %v1834_v61 }
 0x1c2   :  { %v2791_v51 = vadd.f32 %v8935_v43, %v2528_v58  ;;  %7638 = vmatmul.mubr.msk.bf16.gmra.mrb[220].mxu0 %vm957_vm2, %v7791_v52  ;;  %v3046_v12 = vmax.f32 %v2790_v57, 0.0 }
 0x1c3   :  { %v2789_v17 = vadd.f32 %v8935_v43, %v2526_v3  ;;  %7641 = vmatprep.mubr.msk.bf16.mxu0 %vm957_vm2, %v7792_v56  ;;  %v3044_v9 = vmax.f32 %v2788_v2, 0.0 }
 0x1c4   :  { %v3047_v5 = vmax.f32 %v2791_v51, 0.0 }
 0x1c5   :  { %v3045_v10 = vmax.f32 %v2789_v17, 0.0  ;;  %v7535_v8 = vpop.f32.mrb[116].mxu0 }
 0x1c6   :  { %v2531_v14 = vmul.f32 %v8923_v29, %v7535_v8  ;;  %v1847_v15 = vpop.f32.mrb[117].mxu0  ;;  %v3245_v19 = vpack.c.bf16 %v3047_v5, %v3046_v12  ;;  %v7797_v12 = vld [vmem:[%s10622_s0 + $0x3a8] sm:$0xff]   ;;  %v7798_v8 = vld [vmem:[%s10622_s0 + $0x3b0] sm:$0xff]  }
 0x1c7   :  { %v2529_v16 = vmul.f32 %v8923_v29, %v1847_v15  ;;  %v7536_v21 = vpop.f32.mrb[118].mxu0  ;;  %v3244_v28 = vpack.c.bf16 %v3045_v10, %v3044_v9 }
 0x1c8   :  { %v2794_v22 = vadd.f32 %v8935_v43, %v2531_v14  ;;  %v2532_v25 = vmul.f32 %v8923_v29, %v7536_v21  ;;  %v1850_v11 = vpop.f32.mrb[119].mxu0 }
 0x1c9   :  { %v2792_v39 = vadd.f32 %v8935_v43, %v2529_v16  ;;  %v2530_v33 = vmul.f32 %v8923_v29, %v1850_v11  ;;  %7171 = vmatprep.subr.bf16.mxu1 %v3244_v28 }
 0x1ca   :  { %v2795_v13 = vadd.f32 %v8935_v43, %v2532_v25  ;;  %7642 = vmatmul.mubr.msk.bf16.gmra.mrb[224].mxu0 %vm957_vm2, %v7793_v62  ;;  %7172 = vmatpush3.bf16.msra.mxu1 %v9086_v49  ;;  %v3050_v35 = vmax.f32 %v2794_v22, 0.0 }
 0x1cb   :  { %v2793_v32 = vadd.f32 %v8935_v43, %v2530_v33  ;;  %7173 = vmatprep.subr.bf16.mxu1 %v3245_v19  ;;  %7645 = vmatprep.mubr.msk.bf16.mxu0 %vm957_vm2, %v7794_v34  ;;  %v3048_v37 = vmax.f32 %v2792_v39, 0.0 }
 0x1cc   :  { %v3051_v36 = vmax.f32 %v2795_v13, 0.0  ;;  %v7799_v13 = vld [vmem:[%s10622_s0 + $0x3b8] sm:$0xff]  }
 0x1cd   :  { %v3049_v40 = vmax.f32 %v2793_v32, 0.0  ;;  %v7539_v41 = vpop.f32.mrb[120].mxu0 }
 0x1ce   :  { %v2535_v26 = vmul.f32 %v8923_v29, %v7539_v41  ;;  %v1863_v54 = vpop.f32.mrb[121].mxu0  ;;  %7174 = vmatpush3.bf16.msra.mxu1 %v9075_v42  ;;  %v3247_v49 = vpack.c.bf16 %v3051_v36, %v3050_v35 }
 0x1cf   :  { %v2533_v44 = vmul.f32 %v8923_v29, %v1863_v54  ;;  %v7540_v46 = vpop.f32.mrb[122].mxu0  ;;  %v3246_v47 = vpack.c.bf16 %v3049_v40, %v3048_v37  ;;  %v7800_v37 = vld [vmem:[%s10622_s0 + $0x3c0] sm:$0xff]  }
 0x1d0   :  { %v2798_v7 = vadd.f32 %v8935_v43, %v2535_v26  ;;  %v2536_v50 = vmul.f32 %v8923_v29, %v7540_v46  ;;  %v1866_v52 = vpop.f32.mrb[123].mxu0 }
 0x1d1   :  { %v2796_v42 = vadd.f32 %v8935_v43, %v2533_v44  ;;  %v2534_v55 = vmul.f32 %v8923_v29, %v1866_v52  ;;  %7175 = vmatprep.subr.bf16.mxu1 %v3246_v47 }
 0x1d2   :  { %v2799_v45 = vadd.f32 %v8935_v43, %v2536_v50  ;;  %7646 = vmatmul.mubr.msk.bf16.gmra.mrb[228].mxu0 %vm957_vm2, %v7795_v60  ;;  %7176 = vmatpush3.bf16.msra.mxu1 %v9108_v4  ;;  %v3054_v57 = vmax.f32 %v2798_v7, 0.0 }
 0x1d3   :  { %v2797_v56 = vadd.f32 %v8935_v43, %v2534_v55  ;;  %7177 = vmatprep.subr.bf16.mxu1 %v3247_v49  ;;  %7649 = vmatprep.mubr.msk.bf16.mxu0 %vm957_vm2, %v7796_v48  ;;  %v3052_v61 = vmax.f32 %v2796_v42, 0.0 }
 0x1d4   :  { %v3055_v58 = vmax.f32 %v2799_v45, 0.0 }
 0x1d5   :  { %v3053_v2 = vmax.f32 %v2797_v56, 0.0  ;;  %v7543_v3 = vpop.f32.mrb[124].mxu0 }
 0x1d6   :  { %v2539_v51 = vmul.f32 %v8923_v29, %v7543_v3  ;;  %v1879_v17 = vpop.f32.mrb[125].mxu0  ;;  %7178 = vmatpush3.bf16.msra.mxu1 %v9102_v0  ;;  %v3249_v4 = vpack.c.bf16 %v3055_v58, %v3054_v57  ;;  %v7802_v57 = vld [vmem:[%s10622_s0 + $0x3d0] sm:$0xff]  }
 0x1d7   :  { %v2537_v5 = vmul.f32 %v8923_v29, %v1879_v17  ;;  %v7544_v9 = vpop.f32.mrb[126].mxu0  ;;  %v3248_v10 = vpack.c.bf16 %v3053_v2, %v3052_v61 }
 0x1d8   :  { %v2802_v14 = vadd.f32 %v8935_v43, %v2539_v51  ;;  %v2540_v15 = vmul.f32 %v8923_v29, %v7544_v9  ;;  %v1882_v62 = vpop.f32.mrb[127].mxu0 }
 0x1d9   :  { %v2800_v0 = vadd.f32 %v8935_v43, %v2537_v5  ;;  %v2538_v19 = vmul.f32 %v8923_v29, %v1882_v62  ;;  %7179 = vmatprep.subr.bf16.mxu1 %v3248_v10  ;;  %v7803_v62 = vld [vmem:[%s10622_s0 + $0x3d8] sm:$0xff]  }
 0x1da   :  { %v2803_v16 = vadd.f32 %v8935_v43, %v2540_v15  ;;  %7650 = vmatmul.mubr.msk.bf16.gmra.mrb[232].mxu0 %vm957_vm2, %v7797_v12  ;;  %7180 = vmatpush3.bf16.msra.mxu1 %v9128_v30  ;;  %v3058_v28 = vmax.f32 %v2802_v14, 0.0 }
 0x1db   :  { %v2801_v21 = vadd.f32 %v8935_v43, %v2538_v19  ;;  %7181 = vmatprep.subr.bf16.mxu1 %v3249_v4  ;;  %7653 = vmatprep.mubr.msk.bf16.mxu0 %vm957_vm2, %v7798_v8  ;;  %v3056_v22 = vmax.f32 %v2800_v0, 0.0 }
 0x1dc   :  { %v3059_v34 = vmax.f32 %v2803_v16, 0.0  ;;  %v7804_v16 = vld [vmem:[%s10622_s0 + $0x3e0] sm:$0xff]  }
 0x1dd   :  { %v3057_v25 = vmax.f32 %v2801_v21, 0.0  ;;  %v7547_v11 = vpop.f32.mrb[128].mxu0 }
 0x1de   :  { %v2543_v39 = vmul.f32 %v8923_v29, %v7547_v11  ;;  %v1895_v33 = vpop.f32.mrb[129].mxu0  ;;  %7182 = vmatpush3.bf16.msra.mxu1 %v9122_v23  ;;  %v3251_v30 = vpack.c.bf16 %v3059_v34, %v3058_v28 }
 0x1df   :  { %v2541_v32 = vmul.f32 %v8923_v29, %v1895_v33  ;;  %v7548_v35 = vpop.f32.mrb[130].mxu0  ;;  %v3250_v36 = vpack.c.bf16 %v3057_v25, %v3056_v22 }
 0x1e0   :  { %v2806_v40 = vadd.f32 %v8935_v43, %v2543_v39  ;;  %v2544_v41 = vmul.f32 %v8923_v29, %v7548_v35  ;;  %v1898_v26 = vpop.f32.mrb[131].mxu0 }
 0x1e1   :  { %v2804_v23 = vadd.f32 %v8935_v43, %v2541_v32  ;;  %v2542_v54 = vmul.f32 %v8923_v29, %v1898_v26  ;;  %7183 = vmatprep.subr.bf16.mxu1 %v3250_v36 }
 0x1e2   :  { %v2807_v60 = vadd.f32 %v8935_v43, %v2544_v41  ;;  %7654 = vmatmul.mubr.msk.bf16.gmra.mrb[236].mxu0 %vm957_vm2, %v7799_v13  ;;  %7184 = vmatpush3.bf16.msra.mxu1 %v9148_v53  ;;  %v3062_v44 = vmax.f32 %v2806_v40, 0.0  ;;  %v7801_v53 = vld [vmem:[%s10622_s0 + $0x3c8] sm:$0xff]  }
 0x1e3   :  { %v2805_v49 = vadd.f32 %v8935_v43, %v2542_v54  ;;  %7185 = vmatprep.subr.bf16.mxu1 %v3251_v30  ;;  %7657 = vmatprep.mubr.msk.bf16.mxu0 %vm957_vm2, %v7800_v37  ;;  %v3060_v47 = vmax.f32 %v2804_v23, 0.0  ;;  %v7805_v41 = vld [vmem:[%s10622_s0 + $0x3e8] sm:$0xff]  }
 0x1e4   :  { %v3063_v46 = vmax.f32 %v2807_v60, 0.0  ;;  %v7806_v60 = vld [vmem:[%s10622_s0 + $0x3f0] sm:$0xff]  }
 0x1e5   :  { %v3061_v48 = vmax.f32 %v2805_v49, 0.0  ;;  %v7551_v7 = vpop.f32.mrb[132].mxu0 }
 0x1e6   :  { %v9233_v50 = vpack.c.bf16 %v3063_v46, %v3062_v44  ;;  %v2547_v52 = vmul.f32 %v8923_v29, %v7551_v7  ;;  %v1911_v42 = vpop.f32.mrb[133].mxu0  ;;  %7186 = vmatpush3.bf16.msra.mxu1 %v9142_v38 }
 0x1e7   :  { %v9240_v55 = vpack.c.bf16 %v3061_v48, %v3060_v47  ;;  %v2545_v45 = vmul.f32 %v8923_v29, %v1911_v42  ;;  %v7552_v56 = vpop.f32.mrb[134].mxu0 }
 0x1e8   :  { %v2810_v58 = vadd.f32 %v8935_v43, %v2547_v52  ;;  %v2548_v61 = vmul.f32 %v8923_v29, %v7552_v56  ;;  %v1914_v2 = vpop.f32.mrb[135].mxu0 }
 0x1e9   :  { %v2808_v38 = vadd.f32 %v8935_v43, %v2545_v45  ;;  %v2546_v3 = vmul.f32 %v8923_v29, %v1914_v2  ;;  %3515 = vmatmul.mubr.bf16.vlgmr.msra.gmra.mrb[12].mxu1 %v9071_v31 }
 0x1ea   :  { %v2811_v51 = vadd.f32 %v8935_v43, %v2548_v61  ;;  %7658 = vmatmul.mubr.msk.bf16.gmra.mrb[240].mxu0 %vm957_vm2, %v7801_v53  ;;  %3554 = vmatprep.mubr.bf16.mxu1 %v8532_v1  ;;  %v3066_v12 = vmax.f32 %v2810_v58, 0.0 }
 0x1eb   :  { %v2809_v17 = vadd.f32 %v8935_v43, %v2546_v3  ;;  %7661 = vmatprep.mubr.msk.bf16.mxu0 %vm957_vm2, %v7802_v57  ;;  %v3064_v5 = vmax.f32 %v2808_v38, 0.0  ;;  %v7807_v38 = vld [vmem:[%s10622_s0 + $0x3f8] sm:$0xff]  }
 0x1ec   :  { %v3067_v4 = vmax.f32 %v2811_v51, 0.0 }
 0x1ed   :  { %v3065_v9 = vmax.f32 %v2809_v17, 0.0  ;;  %v7555_v10 = vpop.f32.mrb[136].mxu0 }
 0x1ee   :  { %v9256_v8 = vpack.c.bf16 %v3067_v4, %v3066_v12  ;;  %v2551_v14 = vmul.f32 %v8923_v29, %v7555_v10  ;;  %v1927_v15 = vpop.f32.mrb[137].mxu0 }
 0x1ef   :  { %v9262_v0 = vpack.c.bf16 %v3065_v9, %v3064_v5  ;;  %v2549_v1 = vmul.f32 %v8923_v29, %v1927_v15  ;;  %v7556_v19 = vpop.f32.mrb[138].mxu0 }
 0x1f0   :  { %v2814_v21 = vadd.f32 %v8935_v43, %v2551_v14  ;;  %v2552_v28 = vmul.f32 %v8923_v29, %v7556_v19  ;;  %v1930_v34 = vpop.f32.mrb[139].mxu0 }
 0x1f1   :  { %v2812_v22 = vadd.f32 %v8935_v43, %v2549_v1  ;;  %v2550_v25 = vmul.f32 %v8923_v29, %v1930_v34 }
 0x1f2   :  { %v2815_v11 = vadd.f32 %v8935_v43, %v2552_v28  ;;  %7662 = vmatmul.mubr.msk.bf16.gmra.mrb[244].mxu0 %vm957_vm2, %v7803_v62  ;;  %v3070_v33 = vmax.f32 %v2814_v21, 0.0 }
 0x1f3   :  { %v2813_v39 = vadd.f32 %v8935_v43, %v2550_v25  ;;  %7665 = vmatprep.mubr.msk.bf16.mxu0 %vm957_vm2, %v7804_v16  ;;  %v3068_v30 = vmax.f32 %v2812_v22, 0.0 }
 0x1f4   :  { %v3071_v13 = vmax.f32 %v2815_v11, 0.0 }
 0x1f5   :  { %v3069_v32 = vmax.f32 %v2813_v39, 0.0  ;;  %v7559_v35 = vpop.f32.mrb[140].mxu0 }
 0x1f6   :  { %v9276_v36 = vpack.c.bf16 %v3071_v13, %v3070_v33  ;;  %v2555_v37 = vmul.f32 %v8923_v29, %v7559_v35  ;;  %v1943_v40 = vpop.f32.mrb[141].mxu0 }
 0x1f7   :  { %v9282_v26 = vpack.c.bf16 %v3069_v32, %v3068_v30  ;;  %v2553_v23 = vmul.f32 %v8923_v29, %v1943_v40  ;;  %v7560_v54 = vpop.f32.mrb[142].mxu0 }
 0x1f8   :  { %v2818_v49 = vadd.f32 %v8935_v43, %v2555_v37  ;;  %v2556_v44 = vmul.f32 %v8923_v29, %v7560_v54  ;;  %v1946_v46 = vpop.f32.mrb[143].mxu0 }
 0x1f9   :  { %v2816_v47 = vadd.f32 %v8935_v43, %v2553_v23  ;;  %v2554_v48 = vmul.f32 %v8923_v29, %v1946_v46 }
 0x1fa   :  { %v2819_v7 = vadd.f32 %v8935_v43, %v2556_v44  ;;  %7666 = vmatmul.mubr.msk.bf16.gmra.mrb[248].mxu0 %vm957_vm2, %v7805_v41  ;;  %v3074_v42 = vmax.f32 %v2818_v49, 0.0 }
 0x1fb   :  { %v2817_v52 = vadd.f32 %v8935_v43, %v2554_v48  ;;  %7669 = vmatprep.mubr.msk.bf16.mxu0 %vm957_vm2, %v7806_v60  ;;  %v3072_v45 = vmax.f32 %v2816_v47, 0.0 }
 0x1fc   :  { %v3075_v53 = vmax.f32 %v2819_v7, 0.0 }
 0x1fd   :  { %v3073_v56 = vmax.f32 %v2817_v52, 0.0  ;;  %v7563_v57 = vpop.f32.mrb[144].mxu0 }
 0x1fe   :  { %v9296_v58 = vpack.c.bf16 %v3075_v53, %v3074_v42  ;;  %v2559_v61 = vmul.f32 %v8923_v29, %v7563_v57  ;;  %v1959_v2 = vpop.f32.mrb[145].mxu0 }
 0x1ff   :  { %v9302_v3 = vpack.c.bf16 %v3073_v56, %v3072_v45  ;;  %v2557_v51 = vmul.f32 %v8923_v29, %v1959_v2  ;;  %v7564_v17 = vpop.f32.mrb[146].mxu0 }
 0x200   :  { %v2822_v12 = vadd.f32 %v8935_v43, %v2559_v61  ;;  %v2560_v4 = vmul.f32 %v8923_v29, %v7564_v17  ;;  %v1962_v5 = vpop.f32.mrb[147].mxu0 }
 0x201   :  { %v2820_v9 = vadd.f32 %v8935_v43, %v2557_v51  ;;  %v2558_v10 = vmul.f32 %v8923_v29, %v1962_v5 }
 0x202   :  { %v2823_v14 = vadd.f32 %v8935_v43, %v2560_v4  ;;  %7670 = vmatmul.mubr.msk.bf16.gmra.mrb[252].mxu0 %vm957_vm2, %v7807_v38  ;;  %v3078_v62 = vmax.f32 %v2822_v12, 0.0  ;;  %v9334_v12 = vld [vmem:[%s10625_s3] ss:$0 sm:$0xff] }
 0x203   :  { %v2821_v15 = vadd.f32 %v8935_v43, %v2558_v10  ;;  %v3076_v19 = vmax.f32 %v2820_v9, 0.0  ;;  %v9342_v10 = vld [vmem:[%s10626_s4] ss:$0 sm:$0xff] }
 0x204   :  { %v3079_v1 = vmax.f32 %v2823_v14, 0.0 }
 0x205   :  { %v3077_v16 = vmax.f32 %v2821_v15, 0.0  ;;  %v7567_v21 = vpop.f32.mrb[148].mxu0 }
 0x206   :  { %v2563_v28 = vmul.f32 %v8923_v29, %v7567_v21  ;;  %v1975_v34 = vpop.f32.mrb[149].mxu0  ;;  %v3261_v22 = vpack.c.bf16 %v3079_v1, %v3078_v62 }
 0x207   :  { %v2561_v25 = vmul.f32 %v8923_v29, %v1975_v34  ;;  %v7568_v11 = vpop.f32.mrb[150].mxu0  ;;  %v3260_v39 = vpack.c.bf16 %v3077_v16, %v3076_v19 }
 0x208   :  { %v2826_v33 = vadd.f32 %v8935_v43, %v2563_v28  ;;  %v2564_v13 = vmul.f32 %v8923_v29, %v7568_v11  ;;  %v1978_v30 = vpop.f32.mrb[151].mxu0 }
 0x209   :  { %v2824_v32 = vadd.f32 %v8935_v43, %v2561_v25  ;;  %v2562_v35 = vmul.f32 %v8923_v29, %v1978_v30  ;;  %7193 = vmatprep.subr.bf16.mxu1 %v3260_v39 }
 0x20a   :  { %v2827_v37 = vadd.f32 %v8935_v43, %v2564_v13  ;;  %7194 = vmatpush3.bf16.msra.mxu1 %v9240_v55  ;;  %v3082_v41 = vmax.f32 %v2826_v33, 0.0 }
 0x20b   :  { %v2825_v40 = vadd.f32 %v8935_v43, %v2562_v35  ;;  %7195 = vmatprep.subr.bf16.mxu1 %v3261_v22  ;;  %v3080_v54 = vmax.f32 %v2824_v32, 0.0 }
 0x20c   :  { %v3083_v23 = vmax.f32 %v2827_v37, 0.0 }
 0x20d   :  { %v3081_v60 = vmax.f32 %v2825_v40, 0.0  ;;  %v7571_v49 = vpop.f32.mrb[152].mxu0 }
 0x20e   :  { %v2567_v44 = vmul.f32 %v8923_v29, %v7571_v49  ;;  %v1991_v46 = vpop.f32.mrb[153].mxu0  ;;  %7196 = vmatpush3.bf16.msra.mxu1 %v9233_v50  ;;  %v3263_v47 = vpack.c.bf16 %v3083_v23, %v3082_v41 }
 0x20f   :  { %v2565_v48 = vmul.f32 %v8923_v29, %v1991_v46  ;;  %v7572_v7 = vpop.f32.mrb[154].mxu0  ;;  %v3262_v52 = vpack.c.bf16 %v3081_v60, %v3080_v54 }
 0x210   :  { %v2830_v55 = vadd.f32 %v8935_v43, %v2567_v44  ;;  %v2568_v42 = vmul.f32 %v8923_v29, %v7572_v7  ;;  %v1994_v53 = vpop.f32.mrb[155].mxu0 }
 0x211   :  { %v2828_v45 = vadd.f32 %v8935_v43, %v2565_v48  ;;  %v2566_v56 = vmul.f32 %v8923_v29, %v1994_v53  ;;  %7197 = vmatprep.subr.bf16.mxu1 %v3262_v52 }
 0x212   :  { %v2831_v57 = vadd.f32 %v8935_v43, %v2568_v42  ;;  %7198 = vmatpush3.bf16.msra.mxu1 %v9262_v0  ;;  %v3086_v61 = vmax.f32 %v2830_v55, 0.0 }
 0x213   :  { %v2829_v50 = vadd.f32 %v8935_v43, %v2566_v56  ;;  %7199 = vmatprep.subr.bf16.mxu1 %v3263_v47  ;;  %v3084_v38 = vmax.f32 %v2828_v45, 0.0 }
 0x214   :  { %v3087_v2 = vmax.f32 %v2831_v57, 0.0 }
 0x215   :  { %v3085_v51 = vmax.f32 %v2829_v50, 0.0  ;;  %v7575_v17 = vpop.f32.mrb[156].mxu0 }
 0x216   :  { %v2571_v29 = vmul.f32 %v9334_v12, %v7575_v17  ;;  %v2007_v4 = vpop.f32.mrb[157].mxu0  ;;  %7200 = vmatpush3.bf16.msra.mxu1 %v9256_v8  ;;  %v3265_v5 = vpack.c.bf16 %v3087_v2, %v3086_v61 }
 0x217   :  { %v2569_v0 = vmul.f32 %v9334_v12, %v2007_v4  ;;  %v7576_v43 = vpop.f32.mrb[158].mxu0  ;;  %v3264_v9 = vpack.c.bf16 %v3085_v51, %v3084_v38 }
 0x218   :  { %v2834_v14 = vadd.f32 %v9342_v10, %v2571_v29  ;;  %v2572_v15 = vmul.f32 %v9334_v12, %v7576_v43  ;;  %v2010_v62 = vpop.f32.mrb[159].mxu0 }
 0x219   :  { %v2832_v1 = vadd.f32 %v9342_v10, %v2569_v0  ;;  %v2570_v19 = vmul.f32 %v9334_v12, %v2010_v62  ;;  %7201 = vmatprep.subr.bf16.mxu1 %v3264_v9 }
 0x21a   :  { %v2835_v8 = vadd.f32 %v9342_v10, %v2572_v15  ;;  %7202 = vmatpush3.bf16.msra.mxu1 %v9282_v26  ;;  %v3090_v21 = vmax.f32 %v2834_v14, 0.0 }
 0x21b   :  { %v2833_v16 = vadd.f32 %v9342_v10, %v2570_v19  ;;  %7203 = vmatprep.subr.bf16.mxu1 %v3265_v5  ;;  %v3088_v34 = vmax.f32 %v2832_v1, 0.0 }
 0x21c   :  { %v3091_v28 = vmax.f32 %v2835_v8, 0.0 }
 0x21d   :  { %v3089_v22 = vmax.f32 %v2833_v16, 0.0  ;;  %v7579_v25 = vpop.f32.mrb[160].mxu0 }
 0x21e   :  { %v2575_v11 = vmul.f32 %v9334_v12, %v7579_v25  ;;  %v2023_v39 = vpop.f32.mrb[161].mxu0  ;;  %7204 = vmatpush3.bf16.msra.mxu1 %v9276_v36  ;;  %v3267_v33 = vpack.c.bf16 %v3091_v28, %v3090_v21 }
 0x21f   :  { %v2573_v13 = vmul.f32 %v9334_v12, %v2023_v39  ;;  %v7580_v30 = vpop.f32.mrb[162].mxu0  ;;  %v3266_v32 = vpack.c.bf16 %v3089_v22, %v3088_v34 }
 0x220   :  { %v2838_v26 = vadd.f32 %v9342_v10, %v2575_v11  ;;  %v2576_v35 = vmul.f32 %v9334_v12, %v7580_v30  ;;  %v2026_v37 = vpop.f32.mrb[163].mxu0 }
 0x221   :  { %v2836_v40 = vadd.f32 %v9342_v10, %v2573_v13  ;;  %v2574_v41 = vmul.f32 %v9334_v12, %v2026_v37  ;;  %7205 = vmatprep.subr.bf16.mxu1 %v3266_v32 }
 0x222   :  { %v2839_v23 = vadd.f32 %v9342_v10, %v2576_v35  ;;  %7206 = vmatpush3.bf16.msra.mxu1 %v9302_v3  ;;  %v3094_v54 = vmax.f32 %v2838_v26, 0.0 }
 0x223   :  { %v2837_v36 = vadd.f32 %v9342_v10, %v2574_v41  ;;  %7207 = vmatprep.subr.bf16.mxu1 %v3267_v33  ;;  %v3092_v49 = vmax.f32 %v2836_v40, 0.0 }
 0x224   :  { %v3095_v60 = vmax.f32 %v2839_v23, 0.0 }
 0x225   :  { %v3093_v44 = vmax.f32 %v2837_v36, 0.0  ;;  %v7583_v46 = vpop.f32.mrb[164].mxu0 }
 0x226   :  { %v9361_v47 = vpack.c.bf16 %v3095_v60, %v3094_v54  ;;  %v2579_v48 = vmul.f32 %v9334_v12, %v7583_v46  ;;  %v2039_v7 = vpop.f32.mrb[165].mxu0  ;;  %7208 = vmatpush3.bf16.msra.mxu1 %v9296_v58 }
 0x227   :  { %v9365_v52 = vpack.c.bf16 %v3093_v44, %v3092_v49  ;;  %v2577_v55 = vmul.f32 %v9334_v12, %v2039_v7  ;;  %v7584_v3 = vpop.f32.mrb[166].mxu0 }
 0x228   :  { %v2842_v42 = vadd.f32 %v9342_v10, %v2579_v48  ;;  %v2580_v53 = vmul.f32 %v9334_v12, %v7584_v3  ;;  %v2042_v45 = vpop.f32.mrb[167].mxu0 }
 0x229   :  { %v2840_v56 = vadd.f32 %v9342_v10, %v2577_v55  ;;  %v2578_v57 = vmul.f32 %v9334_v12, %v2042_v45  ;;  %3555 = vmatmul.mubr.bf16.vlgmr.msra.gmra.mrb[16].mxu1 %v8525_v63 }
 0x22a   :  { %v2843_v50 = vadd.f32 %v9342_v10, %v2580_v53  ;;  %3594 = vmatprep.mubr.bf16.mxu1 %v8744_v27  ;;  %v3098_v61 = vmax.f32 %v2842_v42, 0.0 }
 0x22b   :  { %v2841_v58 = vadd.f32 %v9342_v10, %v2578_v57  ;;  %v3096_v38 = vmax.f32 %v2840_v56, 0.0 }
 0x22c   :  { %v3099_v2 = vmax.f32 %v2843_v50, 0.0 }
 0x22d   :  { %v3097_v51 = vmax.f32 %v2841_v58, 0.0  ;;  %v7587_v17 = vpop.f32.mrb[168].mxu0 }
 0x22e   :  { %v9376_v29 = vpack.c.bf16 %v3099_v2, %v3098_v61  ;;  %v2583_v4 = vmul.f32 %v9334_v12, %v7587_v17  ;;  %v2055_v5 = vpop.f32.mrb[169].mxu0 }
 0x22f   :  { %v9379_v0 = vpack.c.bf16 %v3097_v51, %v3096_v38  ;;  %v2581_v63 = vmul.f32 %v9334_v12, %v2055_v5  ;;  %v7588_v43 = vpop.f32.mrb[170].mxu0 }
 0x230   :  { %v2846_v9 = vadd.f32 %v9342_v10, %v2583_v4  ;;  %v2584_v27 = vmul.f32 %v9334_v12, %v7588_v43  ;;  %v2058_v14 = vpop.f32.mrb[171].mxu0 }
 0x231   :  { %v2844_v15 = vadd.f32 %v9342_v10, %v2581_v63  ;;  %v2582_v62 = vmul.f32 %v9334_v12, %v2058_v14 }
 0x232   :  { %v2847_v1 = vadd.f32 %v9342_v10, %v2584_v27  ;;  %v3102_v8 = vmax.f32 %v2846_v9, 0.0 }
 0x233   :  { %v2845_v19 = vadd.f32 %v9342_v10, %v2582_v62  ;;  %v3100_v21 = vmax.f32 %v2844_v15, 0.0 }
 0x234   :  { %v3103_v16 = vmax.f32 %v2847_v1, 0.0 }
 0x235   :  { %v3101_v28 = vmax.f32 %v2845_v19, 0.0  ;;  %v7591_v34 = vpop.f32.mrb[172].mxu0 }
 0x236   :  { %v9388_v22 = vpack.c.bf16 %v3103_v16, %v3102_v8  ;;  %v2587_v25 = vmul.f32 %v9334_v12, %v7591_v34  ;;  %v2071_v11 = vpop.f32.mrb[173].mxu0 }
 0x237   :  { %v9391_v39 = vpack.c.bf16 %v3101_v28, %v3100_v21  ;;  %v2585_v33 = vmul.f32 %v9334_v12, %v2071_v11  ;;  %v7592_v13 = vpop.f32.mrb[174].mxu0 }
 0x238   :  { %v2850_v30 = vadd.f32 %v9342_v10, %v2587_v25  ;;  %v2588_v32 = vmul.f32 %v9334_v12, %v7592_v13  ;;  %v2074_v26 = vpop.f32.mrb[175].mxu0 }
 0x239   :  { %v2848_v35 = vadd.f32 %v9342_v10, %v2585_v33  ;;  %v2586_v37 = vmul.f32 %v9334_v12, %v2074_v26 }
 0x23a   :  { %v2851_v40 = vadd.f32 %v9342_v10, %v2588_v32  ;;  %v3106_v23 = vmax.f32 %v2850_v30, 0.0 }
 0x23b   :  { %v2849_v41 = vadd.f32 %v9342_v10, %v2586_v37  ;;  %v3104_v54 = vmax.f32 %v2848_v35, 0.0 }
 0x23c   :  { %v3107_v36 = vmax.f32 %v2851_v40, 0.0 }
 0x23d   :  { %v3105_v60 = vmax.f32 %v2849_v41, 0.0  ;;  %v7595_v49 = vpop.f32.mrb[176].mxu0 }
 0x23e   :  { %v9400_v44 = vpack.c.bf16 %v3107_v36, %v3106_v23  ;;  %v2591_v46 = vmul.f32 %v9334_v12, %v7595_v49  ;;  %v2087_v48 = vpop.f32.mrb[177].mxu0  ;;  %v7121_v49 = vpop.f32.mrb[0].mxu1 }
 0x23f   :  { %v9403_v7 = vpack.c.bf16 %v3105_v60, %v3104_v54  ;;  %v2589_v55 = vmul.f32 %v9334_v12, %v2087_v48  ;;  %v7596_v3 = vpop.f32.mrb[178].mxu0 }
 0x240   :  { %v2854_v42 = vadd.f32 %v9342_v10, %v2591_v46  ;;  %v2592_v53 = vmul.f32 %v9334_v12, %v7596_v3  ;;  %v2090_v45 = vpop.f32.mrb[179].mxu0  ;;  %v7122_v3 = vpop.f32.mrb[1].mxu1 }
 0x241   :  { %v2852_v56 = vadd.f32 %v9342_v10, %v2589_v55  ;;  %v2590_v57 = vmul.f32 %v9334_v12, %v2090_v45 }
 0x242   :  { %v2855_v50 = vadd.f32 %v9342_v10, %v2592_v53  ;;  %v3110_v61 = vmax.f32 %v2854_v42, 0.0 }
 0x243   :  { %v2853_v58 = vadd.f32 %v9342_v10, %v2590_v57  ;;  %v3108_v38 = vmax.f32 %v2852_v56, 0.0  ;;  %v7124_v56 = vpop.f32.mrb[2].mxu1 }
 0x244   :  { %v3111_v2 = vmax.f32 %v2855_v50, 0.0  ;;  %v7814_v56 = vld [vmem:[%s10630_s8 + $0x7c] ss:$48 sps:$4 sm:$0xff]  }
 0x245   :  { %v3109_v51 = vmax.f32 %v2853_v58, 0.0  ;;  %v7599_v17 = vpop.f32.mrb[180].mxu0  ;;  %v7125_v58 = vpop.f32.mrb[3].mxu1 }
 0x246   :  { %v2595_v4 = vmul.f32 %v9334_v12, %v7599_v17  ;;  %v2103_v5 = vpop.f32.mrb[181].mxu0  ;;  %v3277_v63 = vpack.c.bf16 %v3111_v2, %v3110_v61 }
 0x247   :  { %v2593_v43 = vmul.f32 %v9334_v12, %v2103_v5  ;;  %v7600_v9 = vpop.f32.mrb[182].mxu0  ;;  %v3276_v27 = vpack.c.bf16 %v3109_v51, %v3108_v38  ;;  %v7143_v51 = vpop.f32.mrb[4].mxu1 }
 0x248   :  { %v2858_v14 = vadd.f32 %v9342_v10, %v2595_v4  ;;  %v2596_v15 = vmul.f32 %v9334_v12, %v7600_v9  ;;  %v2106_v62 = vpop.f32.mrb[183].mxu0  ;;  %v7144_v5 = vpop.f32.mrb[5].mxu1 }
 0x249   :  { %v2856_v1 = vadd.f32 %v9342_v10, %v2593_v43  ;;  %v2594_v19 = vmul.f32 %v9334_v12, %v2106_v62  ;;  %7215 = vmatprep.subr.bf16.mxu1 %v3276_v27  ;;  %v7146_v43 = vpop.f32.mrb[6].mxu1 }
 0x24a   :  { %v2859_v8 = vadd.f32 %v9342_v10, %v2596_v15  ;;  %7216 = vmatpush3.bf16.msra.mxu1 %v9365_v52  ;;  %v3114_v21 = vmax.f32 %v2858_v14, 0.0  ;;  %v7147_v27 = vpop.f32.mrb[7].mxu1 }
 0x24b   :  { %v2857_v16 = vadd.f32 %v9342_v10, %v2594_v19  ;;  %7217 = vmatprep.subr.bf16.mxu1 %v3277_v63  ;;  %v3112_v34 = vmax.f32 %v2856_v1, 0.0  ;;  %v7123_v63 = vadd.f32 %v7122_v3, %v7121_v49 }
 0x24c   :  { %v3115_v28 = vmax.f32 %v2859_v8, 0.0  ;;  %v7145_v8 = vadd.f32 %v7144_v5, %v7143_v51 }
 0x24d   :  { %v3113_v25 = vmax.f32 %v2857_v16, 0.0  ;;  %v7603_v11 = vpop.f32.mrb[184].mxu0 }
 0x24e   :  { %v2599_v33 = vmul.f32 %v9334_v12, %v7603_v11  ;;  %v2119_v13 = vpop.f32.mrb[185].mxu0  ;;  %7218 = vmatpush3.bf16.msra.mxu1 %v9361_v47  ;;  %v3279_v30 = vpack.c.bf16 %v3115_v28, %v3114_v21  ;;  %v9444_v11 = vadd.f32 %v7145_v8, %v7123_v63 }
 0x24f   :  { %v2597_v32 = vmul.f32 %v9334_v12, %v2119_v13  ;;  %v7604_v26 = vpop.f32.mrb[186].mxu0  ;;  %v3278_v35 = vpack.c.bf16 %v3113_v25, %v3112_v34 }
 0x250   :  { %v2862_v52 = vadd.f32 %v9342_v10, %v2599_v33  ;;  %v2600_v37 = vmul.f32 %v9334_v12, %v7604_v26  ;;  %v2122_v40 = vpop.f32.mrb[187].mxu0 }
 0x251   :  { %v2860_v41 = vadd.f32 %v9342_v10, %v2597_v32  ;;  %v2598_v23 = vmul.f32 %v9334_v12, %v2122_v40  ;;  %7219 = vmatprep.subr.bf16.mxu1 %v3278_v35 }
 0x252   :  { %v2863_v36 = vadd.f32 %v9342_v10, %v2600_v37  ;;  %7220 = vmatpush3.bf16.msra.mxu1 %v9379_v0  ;;  %v3118_v54 = vmax.f32 %v2862_v52, 0.0 }
 0x253   :  { %v2861_v47 = vadd.f32 %v9342_v10, %v2598_v23  ;;  %7221 = vmatprep.subr.bf16.mxu1 %v3279_v30  ;;  %v3116_v46 = vmax.f32 %v2860_v41, 0.0 }
 0x254   :  { %v3119_v60 = vmax.f32 %v2863_v36, 0.0 }
 0x255   :  { %v3117_v48 = vmax.f32 %v2861_v47, 0.0  ;;  %v7607_v55 = vpop.f32.mrb[188].mxu0 }
 0x256   :  { %v2603_v42 = vmul.f32 %v9334_v12, %v7607_v55  ;;  %v2135_v53 = vpop.f32.mrb[189].mxu0  ;;  %7222 = vmatpush3.bf16.msra.mxu1 %v9376_v29  ;;  %v3281_v45 = vpack.c.bf16 %v3119_v60, %v3118_v54 }
 0x257   :  { %v2601_v57 = vmul.f32 %v9334_v12, %v2135_v53  ;;  %v7608_v0 = vpop.f32.mrb[190].mxu0  ;;  %v3280_v50 = vpack.c.bf16 %v3117_v48, %v3116_v46  ;;  %v7811_v53 = vld [vmem:[%s10630_s8 + $0x1c] ss:$48 sps:$4 sm:$0xff]  }
 0x258   :  { %v2866_v61 = vadd.f32 %v9342_v10, %v2603_v42  ;;  %v2604_v2 = vmul.f32 %v9334_v12, %v7608_v0  ;;  %v2138_v38 = vpop.f32.mrb[191].mxu0  ;;  %5051 = vmatprep.subr.bf16.mxu0 %v7811_v53 }
 0x259   :  { %v2864_v17 = vadd.f32 %v9342_v10, %v2601_v57  ;;  %v2602_v4 = vmul.f32 %v9334_v12, %v2138_v38  ;;  %7223 = vmatprep.subr.bf16.mxu1 %v3280_v50  ;;  %v7812_v50 = vld [vmem:[%s10630_s8 + $0x78] ss:$48 sps:$4 sm:$0xff]  }
 0x25a   :  { %v2867_v29 = vadd.f32 %v9342_v10, %v2604_v2  ;;  %7224 = vmatpush3.bf16.msra.mxu1 %v9391_v39  ;;  %v3122_v14 = vmax.f32 %v2866_v61, 0.0 }
 0x25b   :  { %v2865_v9 = vadd.f32 %v9342_v10, %v2602_v4  ;;  %7225 = vmatprep.subr.bf16.mxu1 %v3281_v45  ;;  %v3120_v62 = vmax.f32 %v2864_v17, 0.0 }
 0x25c   :  { %v3123_v15 = vmax.f32 %v2867_v29, 0.0 }
 0x25d   :  { %v3121_v1 = vmax.f32 %v2865_v9, 0.0  ;;  %v7611_v19 = vpop.f32.mrb[192].mxu0 }
 0x25e   :  { %v2607_v16 = vmul.f32 %v9334_v12, %v7611_v19  ;;  %v2151_v21 = vpop.f32.mrb[193].mxu0  ;;  %7226 = vmatpush3.bf16.msra.mxu1 %v9388_v22  ;;  %v3283_v28 = vpack.c.bf16 %v3123_v15, %v3122_v14 }
 0x25f   :  { %v2605_v39 = vmul.f32 %v9334_v12, %v2151_v21  ;;  %v7612_v34 = vpop.f32.mrb[194].mxu0  ;;  %v3282_v25 = vpack.c.bf16 %v3121_v1, %v3120_v62 }
 0x260   :  { %v2870_v33 = vadd.f32 %v9342_v10, %v2607_v16  ;;  %v2608_v13 = vmul.f32 %v9334_v12, %v7612_v34  ;;  %v2154_v30 = vpop.f32.mrb[195].mxu0 }
 0x261   :  { %v2868_v32 = vadd.f32 %v9342_v10, %v2605_v39  ;;  %v2606_v26 = vmul.f32 %v9334_v12, %v2154_v30  ;;  %7227 = vmatprep.subr.bf16.mxu1 %v3282_v25 }
 0x262   :  { %v2871_v35 = vadd.f32 %v9342_v10, %v2608_v13  ;;  %7228 = vmatpush3.bf16.msra.mxu1 %v9403_v7  ;;  %v3126_v52 = vmax.f32 %v2870_v33, 0.0 }
 0x263   :  { %v2869_v22 = vadd.f32 %v9342_v10, %v2606_v26  ;;  %7229 = vmatprep.subr.bf16.mxu1 %v3283_v28  ;;  %v3124_v40 = vmax.f32 %v2868_v32, 0.0 }
 0x264   :  { %v3127_v37 = vmax.f32 %v2871_v35, 0.0 }
 0x265   :  { %v3125_v41 = vmax.f32 %v2869_v22, 0.0  ;;  %v7615_v23 = vpop.f32.mrb[196].mxu0 }
 0x266   :  { %v9453_v36 = vpack.c.bf16 %v3127_v37, %v3126_v52  ;;  %v2611_v47 = vmul.f32 %v9334_v12, %v7615_v23  ;;  %v2167_v54 = vpop.f32.mrb[197].mxu0  ;;  %7230 = vmatpush3.bf16.msra.mxu1 %v9400_v44  ;;  %v7809_v44 = vld [vmem:[%s10630_s8 + $0x18] ss:$48 sps:$4 sm:$0xff]  }
 0x267   :  { %v9457_v60 = vpack.c.bf16 %v3125_v41, %v3124_v40  ;;  %v2609_v49 = vmul.f32 %v9334_v12, %v2167_v54  ;;  %v7616_v7 = vpop.f32.mrb[198].mxu0  ;;  %5052 = vmatpush1.bf16.msra.mxu0 %v7809_v44 }
 0x268   :  { %v2874_v46 = vadd.f32 %v9342_v10, %v2611_v47  ;;  %v2612_v48 = vmul.f32 %v9334_v12, %v7616_v7  ;;  %v2170_v55 = vpop.f32.mrb[199].mxu0  ;;  %5053 = vmatprep.subr.bf16.mxu0 %v7814_v56 }
 0x269   :  { %v2872_v3 = vadd.f32 %v9342_v10, %v2609_v49  ;;  %v2610_v42 = vmul.f32 %v9334_v12, %v2170_v55  ;;  %3595 = vmatmul.mubr.bf16.vlgmr.msra.gmra.mrb[20].mxu1 %v8731_v18 }
 0x26a   :  { %v2875_v45 = vadd.f32 %v9342_v10, %v2612_v48  ;;  %3634 = vmatprep.mubr.bf16.mxu1 %v8911_v24  ;;  %v3130_v18 = vmax.f32 %v2874_v46, 0.0 }
 0x26b   :  { %v2873_v57 = vadd.f32 %v9342_v10, %v2610_v42  ;;  %v3128_v58 = vmax.f32 %v2872_v3, 0.0  ;;  %5054 = vmatpush1.bf16.msra.mxu0 %v7812_v50 }
 0x26c   :  { %v3131_v0 = vmax.f32 %v2875_v45, 0.0 }
 0x26d   :  { %v3129_v61 = vmax.f32 %v2873_v57, 0.0  ;;  %v7619_v2 = vpop.f32.mrb[200].mxu0 }
 0x26e   :  { %v9480_v38 = vpack.c.bf16 %v3131_v0, %v3130_v18  ;;  %v2615_v24 = vmul.f32 %v9334_v12, %v7619_v2  ;;  %v2183_v51 = vpop.f32.mrb[201].mxu0 }
 0x26f   :  { %v9483_v17 = vpack.c.bf16 %v3129_v61, %v3128_v58  ;;  %v2613_v4 = vmul.f32 %v9334_v12, %v2183_v51  ;;  %v7620_v5 = vpop.f32.mrb[202].mxu0 }
 0x270   :  { %v2878_v29 = vadd.f32 %v9342_v10, %v2615_v24  ;;  %v2616_v63 = vmul.f32 %v9334_v12, %v7620_v5  ;;  %v2186_v43 = vpop.f32.mrb[203].mxu0 }
 0x271   :  { %v2876_v9 = vadd.f32 %v9342_v10, %v2613_v4  ;;  %v2614_v27 = vmul.f32 %v9334_v12, %v2186_v43 }
 0x272   :  { %v2879_v14 = vadd.f32 %v9342_v10, %v2616_v63  ;;  %v3134_v62 = vmax.f32 %v2878_v29, 0.0 }
 0x273   :  { %v2877_v15 = vadd.f32 %v9342_v10, %v2614_v27  ;;  %v3132_v19 = vmax.f32 %v2876_v9, 0.0 }
 0x274   :  { %v3135_v1 = vmax.f32 %v2879_v14, 0.0 }
 0x275   :  { %v3133_v8 = vmax.f32 %v2877_v15, 0.0  ;;  %v7623_v16 = vpop.f32.mrb[204].mxu0 }
 0x276   :  { %v9492_v21 = vpack.c.bf16 %v3135_v1, %v3134_v62  ;;  %v2619_v28 = vmul.f32 %v9334_v12, %v7623_v16  ;;  %v2199_v39 = vpop.f32.mrb[205].mxu0 }
 0x277   :  { %v9495_v34 = vpack.c.bf16 %v3133_v8, %v3132_v19  ;;  %v2617_v25 = vmul.f32 %v9334_v12, %v2199_v39  ;;  %v7624_v33 = vpop.f32.mrb[206].mxu0 }
 0x278   :  { %v2882_v13 = vadd.f32 %v9342_v10, %v2619_v28  ;;  %v2620_v30 = vmul.f32 %v9334_v12, %v7624_v33  ;;  %v2202_v32 = vpop.f32.mrb[207].mxu0 }
 0x279   :  { %v2880_v26 = vadd.f32 %v9342_v10, %v2617_v25  ;;  %v2618_v35 = vmul.f32 %v9334_v12, %v2202_v32 }
 0x27a   :  { %v2883_v22 = vadd.f32 %v9342_v10, %v2620_v30  ;;  %v3138_v37 = vmax.f32 %v2882_v13, 0.0 }
 0x27b   :  { %v2881_v52 = vadd.f32 %v9342_v10, %v2618_v35  ;;  %v3136_v23 = vmax.f32 %v2880_v26, 0.0 }
 0x27c   :  { %v3139_v40 = vmax.f32 %v2883_v22, 0.0  ;;  %v7165_v41 = vpop.f32.mrb[8].mxu1 }
 0x27d   :  { %v3137_v47 = vmax.f32 %v2881_v52, 0.0  ;;  %v7627_v54 = vpop.f32.mrb[208].mxu0  ;;  %v7166_v49 = vpop.f32.mrb[9].mxu1 }
 0x27e   :  { %v9504_v7 = vpack.c.bf16 %v3139_v40, %v3138_v37  ;;  %v2623_v46 = vmul.f32 %v9334_v12, %v7627_v54  ;;  %v2215_v48 = vpop.f32.mrb[209].mxu0  ;;  %v7167_v55 = vadd.f32 %v7166_v49, %v7165_v41  ;;  %v7168_v3 = vpop.f32.mrb[10].mxu1 }
 0x27f   :  { %v9507_v42 = vpack.c.bf16 %v3137_v47, %v3136_v23  ;;  %v2621_v44 = vmul.f32 %v9334_v12, %v2215_v48  ;;  %v7628_v53 = vpop.f32.mrb[210].mxu0  ;;  %v7169_v45 = vpop.f32.mrb[11].mxu1 }
 0x280   :  { %v2886_v56 = vadd.f32 %v9342_v10, %v2623_v46  ;;  %v2624_v57 = vmul.f32 %v9334_v12, %v7628_v53  ;;  %v2218_v18 = vpop.f32.mrb[211].mxu0  ;;  %v9513_v0 = vadd.f32 %v7167_v55, %v9444_v11 }
 0x281   :  { %v2884_v50 = vadd.f32 %v9342_v10, %v2621_v44  ;;  %v2622_v58 = vmul.f32 %v9334_v12, %v2218_v18 }
 0x282   :  { %v2887_v61 = vadd.f32 %v9342_v10, %v2624_v57  ;;  %v3142_v24 = vmax.f32 %v2886_v56, 0.0 }
 0x283   :  { %v2885_v2 = vadd.f32 %v9342_v10, %v2622_v58  ;;  %v3140_v4 = vmax.f32 %v2884_v50, 0.0 }
 0x284   :  { %v3143_v51 = vmax.f32 %v2887_v61, 0.0 }
 0x285   :  { %v3141_v5 = vmax.f32 %v2885_v2, 0.0  ;;  %v7631_v29 = vpop.f32.mrb[212].mxu0 }
 0x286   :  { %v2627_v63 = vmul.f32 %v9334_v12, %v7631_v29  ;;  %v2231_v43 = vpop.f32.mrb[213].mxu0  ;;  %v3293_v9 = vpack.c.bf16 %v3143_v51, %v3142_v24 }
 0x287   :  { %v2625_v11 = vmul.f32 %v9334_v12, %v2231_v43  ;;  %v7632_v27 = vpop.f32.mrb[214].mxu0  ;;  %v3292_v14 = vpack.c.bf16 %v3141_v5, %v3140_v4 }
 0x288   :  { %v2890_v15 = vadd.f32 %v9342_v10, %v2627_v63  ;;  %v2628_v62 = vmul.f32 %v9334_v12, %v7632_v27  ;;  %v2234_v1 = vpop.f32.mrb[215].mxu0 }
 0x289   :  { %v2888_v19 = vadd.f32 %v9342_v10, %v2625_v11  ;;  %v2626_v8 = vmul.f32 %v9334_v12, %v2234_v1  ;;  %7237 = vmatprep.subr.bf16.mxu1 %v3292_v14 }
 0x28a   :  { %v2891_v16 = vadd.f32 %v9342_v10, %v2628_v62  ;;  %7238 = vmatpush3.bf16.msra.mxu1 %v9457_v60  ;;  %v3146_v39 = vmax.f32 %v2890_v15, 0.0 }
 0x28b   :  { %v2889_v28 = vadd.f32 %v9342_v10, %v2626_v8  ;;  %7239 = vmatprep.subr.bf16.mxu1 %v3293_v9  ;;  %v3144_v33 = vmax.f32 %v2888_v19, 0.0 }
 0x28c   :  { %v3147_v25 = vmax.f32 %v2891_v16, 0.0 }
 0x28d   :  { %v3145_v13 = vmax.f32 %v2889_v28, 0.0  ;;  %v7635_v30 = vpop.f32.mrb[216].mxu0 }
 0x28e   :  { %v2631_v32 = vmul.f32 %v9334_v12, %v7635_v30  ;;  %v2247_v26 = vpop.f32.mrb[217].mxu0  ;;  %7240 = vmatpush3.bf16.msra.mxu1 %v9453_v36  ;;  %v3295_v35 = vpack.c.bf16 %v3147_v25, %v3146_v39 }
 0x28f   :  { %v2629_v22 = vmul.f32 %v9334_v12, %v2247_v26  ;;  %v7636_v52 = vpop.f32.mrb[218].mxu0  ;;  %v3294_v37 = vpack.c.bf16 %v3145_v13, %v3144_v33 }
 0x290   :  { %v2894_v60 = vadd.f32 %v9342_v10, %v2631_v32  ;;  %v2632_v40 = vmul.f32 %v9334_v12, %v7636_v52  ;;  %v2250_v41 = vpop.f32.mrb[219].mxu0 }
 0x291   :  { %v2892_v23 = vadd.f32 %v9342_v10, %v2629_v22  ;;  %v2630_v47 = vmul.f32 %v9334_v12, %v2250_v41  ;;  %7241 = vmatprep.subr.bf16.mxu1 %v3294_v37 }
 0x292   :  { %v2895_v54 = vadd.f32 %v9342_v10, %v2632_v40  ;;  %7242 = vmatpush3.bf16.msra.mxu1 %v9483_v17  ;;  %v3150_v49 = vmax.f32 %v2894_v60, 0.0 }
 0x293   :  { %v2893_v36 = vadd.f32 %v9342_v10, %v2630_v47  ;;  %7243 = vmatprep.subr.bf16.mxu1 %v3295_v35  ;;  %v3148_v48 = vmax.f32 %v2892_v23, 0.0 }
 0x294   :  { %v3151_v46 = vmax.f32 %v2895_v54, 0.0 }
 0x295   :  { %v3149_v55 = vmax.f32 %v2893_v36, 0.0  ;;  %v7639_v3 = vpop.f32.mrb[220].mxu0 }
 0x296   :  { %v2635_v44 = vmul.f32 %v9334_v12, %v7639_v3  ;;  %v2263_v53 = vpop.f32.mrb[221].mxu0  ;;  %7244 = vmatpush3.bf16.msra.mxu1 %v9480_v38  ;;  %v3297_v45 = vpack.c.bf16 %v3151_v46, %v3150_v49 }
 0x297   :  { %v2633_v56 = vmul.f32 %v9334_v12, %v2263_v53  ;;  %v7640_v57 = vpop.f32.mrb[222].mxu0  ;;  %v3296_v18 = vpack.c.bf16 %v3149_v55, %v3148_v48 }
 0x298   :  { %v2898_v17 = vadd.f32 %v9342_v10, %v2635_v44  ;;  %v2636_v50 = vmul.f32 %v9334_v12, %v7640_v57  ;;  %v2266_v58 = vpop.f32.mrb[223].mxu0 }
 0x299   :  { %v2896_v61 = vadd.f32 %v9342_v10, %v2633_v56  ;;  %v2634_v2 = vmul.f32 %v9334_v12, %v2266_v58  ;;  %7245 = vmatprep.subr.bf16.mxu1 %v3296_v18 }
 0x29a   :  { %v2899_v24 = vadd.f32 %v9342_v10, %v2636_v50  ;;  %7246 = vmatpush3.bf16.msra.mxu1 %v9495_v34  ;;  %v3154_v51 = vmax.f32 %v2898_v17, 0.0 }
 0x29b   :  { %v2897_v38 = vadd.f32 %v9342_v10, %v2634_v2  ;;  %7247 = vmatprep.subr.bf16.mxu1 %v3297_v45  ;;  %v3152_v5 = vmax.f32 %v2896_v61, 0.0 }
 0x29c   :  { %v3155_v4 = vmax.f32 %v2899_v24, 0.0 }
 0x29d   :  { %v3153_v29 = vmax.f32 %v2897_v38, 0.0  ;;  %v7643_v63 = vpop.f32.mrb[224].mxu0 }
 0x29e   :  { %v2639_v43 = vmul.f32 %v9334_v12, %v7643_v63  ;;  %v2279_v9 = vpop.f32.mrb[225].mxu0  ;;  %7248 = vmatpush3.bf16.msra.mxu1 %v9492_v21  ;;  %v3299_v11 = vpack.c.bf16 %v3155_v4, %v3154_v51 }
 0x29f   :  { %v2637_v27 = vmul.f32 %v9334_v12, %v2279_v9  ;;  %v7644_v14 = vpop.f32.mrb[226].mxu0  ;;  %v3298_v15 = vpack.c.bf16 %v3153_v29, %v3152_v5 }
 0x2a0   :  { %v2902_v34 = vadd.f32 %v9342_v10, %v2639_v43  ;;  %v2640_v62 = vmul.f32 %v9334_v12, %v7644_v14  ;;  %v2282_v1 = vpop.f32.mrb[227].mxu0 }
 0x2a1   :  { %v2900_v19 = vadd.f32 %v9342_v10, %v2637_v27  ;;  %v2638_v8 = vmul.f32 %v9334_v12, %v2282_v1  ;;  %7249 = vmatprep.subr.bf16.mxu1 %v3298_v15 }
 0x2a2   :  { %v2903_v16 = vadd.f32 %v9342_v10, %v2640_v62  ;;  %7250 = vmatpush3.bf16.msra.mxu1 %v9507_v42  ;;  %v3158_v28 = vmax.f32 %v2902_v34, 0.0 }
 0x2a3   :  { %v2901_v21 = vadd.f32 %v9342_v10, %v2638_v8  ;;  %7251 = vmatprep.subr.bf16.mxu1 %v3299_v11  ;;  %v3156_v25 = vmax.f32 %v2900_v19, 0.0 }
 0x2a4   :  { %v3159_v39 = vmax.f32 %v2903_v16, 0.0 }
 0x2a5   :  { %v3157_v33 = vmax.f32 %v2901_v21, 0.0  ;;  %v7647_v13 = vpop.f32.mrb[228].mxu0 }
 0x2a6   :  { %v9558_v30 = vpack.c.bf16 %v3159_v39, %v3158_v28  ;;  %v2643_v32 = vmul.f32 %v9334_v12, %v7647_v13  ;;  %v2295_v26 = vpop.f32.mrb[229].mxu0  ;;  %7252 = vmatpush3.bf16.msra.mxu1 %v9504_v7 }
 0x2a7   :  { %v9562_v35 = vpack.c.bf16 %v3157_v33, %v3156_v25  ;;  %v2641_v22 = vmul.f32 %v9334_v12, %v2295_v26  ;;  %v7648_v42 = vpop.f32.mrb[230].mxu0 }
 0x2a8   :  { %v2906_v52 = vadd.f32 %v9342_v10, %v2643_v32  ;;  %v2644_v37 = vmul.f32 %v9334_v12, %v7648_v42  ;;  %v2298_v60 = vpop.f32.mrb[231].mxu0 }
 0x2a9   :  { %v2904_v40 = vadd.f32 %v9342_v10, %v2641_v22  ;;  %v2642_v41 = vmul.f32 %v9334_v12, %v2298_v60  ;;  %3635 = vmatmul.mubr.bf16.vlgmr.msra.gmra.mrb[24].mxu1 %v8898_v20 }
 0x2aa   :  { %v2907_v23 = vadd.f32 %v9342_v10, %v2644_v37  ;;  %3674 = vmatprep.mubr.bf16.mxu1 %v9084_v6  ;;  %v3162_v47 = vmax.f32 %v2906_v52, 0.0 }
 0x2ab   :  { %v2905_v7 = vadd.f32 %v9342_v10, %v2642_v41  ;;  %v3160_v36 = vmax.f32 %v2904_v40, 0.0 }
 0x2ac   :  { %v3163_v54 = vmax.f32 %v2907_v23, 0.0 }
 0x2ad   :  { %v3161_v49 = vmax.f32 %v2905_v7, 0.0  ;;  %v7651_v46 = vpop.f32.mrb[232].mxu0  ;;  %v7815_v7 = vld [vmem:[%s10630_s8 + $0xd8] ss:$48 sps:$4 sm:$0xff]  }
 0x2ae   :  { %v9573_v48 = vpack.c.bf16 %v3163_v54, %v3162_v47  ;;  %v2647_v55 = vmul.f32 %v9334_v12, %v7651_v46  ;;  %v2311_v3 = vpop.f32.mrb[233].mxu0  ;;  %v7817_v47 = vld [vmem:[%s10630_s8 + $0xdc] ss:$48 sps:$4 sm:$0xff]  }
 0x2af   :  { %v9576_v44 = vpack.c.bf16 %v3161_v49, %v3160_v36  ;;  %v2645_v20 = vmul.f32 %v9334_v12, %v2311_v3  ;;  %v7652_v53 = vpop.f32.mrb[234].mxu0  ;;  %5055 = vmatprep.subr.bf16.mxu0 %v7817_v47 }
 0x2b0   :  { %v2910_v45 = vadd.f32 %v9342_v10, %v2647_v55  ;;  %v2648_v6 = vmul.f32 %v9334_v12, %v7652_v53  ;;  %v2314_v56 = vpop.f32.mrb[235].mxu0  ;;  %5056 = vmatpush1.bf16.msra.mxu0 %v7815_v7 }
 0x2b1   :  { %v2908_v57 = vadd.f32 %v9342_v10, %v2645_v20  ;;  %v2646_v18 = vmul.f32 %v9334_v12, %v2314_v56 }
 0x2b2   :  { %v2911_v17 = vadd.f32 %v9342_v10, %v2648_v6  ;;  %v3166_v58 = vmax.f32 %v2910_v45, 0.0 }
 0x2b3   :  { %v2909_v50 = vadd.f32 %v9342_v10, %v2646_v18  ;;  %v3164_v2 = vmax.f32 %v2908_v57, 0.0 }
 0x2b4   :  { %v3167_v61 = vmax.f32 %v2911_v17, 0.0 }
 0x2b5   :  { %v3165_v24 = vmax.f32 %v2909_v50, 0.0  ;;  %v7655_v38 = vpop.f32.mrb[236].mxu0 }
 0x2b6   :  { %v9585_v51 = vpack.c.bf16 %v3167_v61, %v3166_v58  ;;  %v2651_v4 = vmul.f32 %v9334_v12, %v7655_v38  ;;  %v2327_v5 = vpop.f32.mrb[237].mxu0 }
 0x2b7   :  { %v9588_v29 = vpack.c.bf16 %v3165_v24, %v3164_v2  ;;  %v2649_v63 = vmul.f32 %v9334_v12, %v2327_v5  ;;  %v7656_v43 = vpop.f32.mrb[238].mxu0 }
 0x2b8   :  { %v2914_v9 = vadd.f32 %v9342_v10, %v2651_v4  ;;  %v2652_v11 = vmul.f32 %v9334_v12, %v7656_v43  ;;  %v2330_v27 = vpop.f32.mrb[239].mxu0 }
 0x2b9   :  { %v2912_v14 = vadd.f32 %v9342_v10, %v2649_v63  ;;  %v2650_v15 = vmul.f32 %v9334_v12, %v2330_v27 }
 0x2ba   :  { %v2915_v34 = vadd.f32 %v9342_v10, %v2652_v11  ;;  %v3170_v1 = vmax.f32 %v2914_v9, 0.0 }
 0x2bb   :  { %v2913_v62 = vadd.f32 %v9342_v10, %v2650_v15  ;;  %v3168_v16 = vmax.f32 %v2912_v14, 0.0 }
 0x2bc   :  { %v3171_v19 = vmax.f32 %v2915_v34, 0.0  ;;  %v7187_v8 = vpop.f32.mrb[12].mxu1 }
 0x2bd   :  { %v3169_v21 = vmax.f32 %v2913_v62, 0.0  ;;  %v7659_v28 = vpop.f32.mrb[240].mxu0  ;;  %v7188_v39 = vpop.f32.mrb[13].mxu1 }
 0x2be   :  { %v9597_v25 = vpack.c.bf16 %v3171_v19, %v3170_v1  ;;  %v2655_v33 = vmul.f32 %v9334_v12, %v7659_v28  ;;  %v2343_v13 = vpop.f32.mrb[241].mxu0  ;;  %v7189_v32 = vadd.f32 %v7188_v39, %v7187_v8  ;;  %v7190_v26 = vpop.f32.mrb[14].mxu1 }
 0x2bf   :  { %v9600_v22 = vpack.c.bf16 %v3169_v21, %v3168_v16  ;;  %v2653_v42 = vmul.f32 %v9334_v12, %v2343_v13  ;;  %v7660_v52 = vpop.f32.mrb[242].mxu0  ;;  %v7191_v37 = vpop.f32.mrb[15].mxu1 }
 0x2c0   :  { %v2918_v60 = vadd.f32 %v9342_v10, %v2655_v33  ;;  %v2656_v40 = vmul.f32 %v9334_v12, %v7660_v52  ;;  %v2346_v41 = vpop.f32.mrb[243].mxu0  ;;  %v9606_v23 = vadd.f32 %v7189_v32, %v9513_v0 }
 0x2c1   :  { %v2916_v54 = vadd.f32 %v9342_v10, %v2653_v42  ;;  %v2654_v36 = vmul.f32 %v9334_v12, %v2346_v41  ;;  %v8208_v42 = vld [vmem:[%s10625_s3] ss:$0 sm:$0xff]  ;;  %s8237_s3 = smov [#allocation2]  }
 0x2c2   :  { %v2919_v49 = vadd.f32 %v9342_v10, %v2656_v40  ;;  %v3174_v0 = vmax.f32 %v2918_v60, 0.0 }
 0x2c3   :  { %v2917_v46 = vadd.f32 %v9342_v10, %v2654_v36  ;;  %v3172_v3 = vmax.f32 %v2916_v54, 0.0 }
 0x2c4   :  { %v3175_v55 = vmax.f32 %v2919_v49, 0.0 }
 0x2c5   :  { %v3173_v20 = vmax.f32 %v2917_v46, 0.0  ;;  %v7663_v53 = vpop.f32.mrb[244].mxu0 }
 0x2c6   :  { %v2659_v45 = vmul.f32 %v9334_v12, %v7663_v53  ;;  %v2359_v6 = vpop.f32.mrb[245].mxu0  ;;  %v3309_v56 = vpack.c.bf16 %v3175_v55, %v3174_v0 }
 0x2c7   :  { %v2657_v57 = vmul.f32 %v9334_v12, %v2359_v6  ;;  %v7664_v18 = vpop.f32.mrb[246].mxu0  ;;  %v3308_v17 = vpack.c.bf16 %v3173_v20, %v3172_v3 }
 0x2c8   :  { %v2922_v50 = vadd.f32 %v9342_v10, %v2659_v45  ;;  %v2660_v58 = vmul.f32 %v9334_v12, %v7664_v18  ;;  %v2362_v61 = vpop.f32.mrb[247].mxu0  ;;  %v7818_v18 = vld [vmem:[%s10630_s8 + $0x138] ss:$48 sps:$4 sm:$0xff]  }
 0x2c9   :  { %v2920_v2 = vadd.f32 %v9342_v10, %v2657_v57  ;;  %v2658_v24 = vmul.f32 %v9334_v12, %v2362_v61  ;;  %7259 = vmatprep.subr.bf16.mxu1 %v3308_v17 }
 0x2ca   :  { %v2923_v38 = vadd.f32 %v9342_v10, %v2660_v58  ;;  %7260 = vmatpush3.bf16.msra.mxu1 %v9562_v35  ;;  %v3178_v5 = vmax.f32 %v2922_v50, 0.0 }
 0x2cb   :  { %v2921_v4 = vadd.f32 %v9342_v10, %v2658_v24  ;;  %7261 = vmatprep.subr.bf16.mxu1 %v3309_v56  ;;  %v3176_v43 = vmax.f32 %v2920_v2, 0.0  ;;  %v7826_v24 = vld [vmem:[%s10627_s5 + $0x4] ss:$8 sps:$4 sm:$0xff]  }
 0x2cc   :  { %v3179_v63 = vmax.f32 %v2923_v38, 0.0  ;;  %v7824_v38 = vld [vmem:[%s10627_s5] ss:$8 sps:$4 sm:$0xff]  }
 0x2cd   :  { %v3177_v9 = vmax.f32 %v2921_v4, 0.0  ;;  %v7667_v11 = vpop.f32.mrb[248].mxu0  ;;  %v7827_v4 = vld [vmem:[%s10630_s8 + $0x1f8] ss:$48 sps:$4 sm:$0xff]  }
 0x2ce   :  { %v2663_v27 = vmul.f32 %v9334_v12, %v7667_v11  ;;  %v2375_v14 = vpop.f32.mrb[249].mxu0  ;;  %7262 = vmatpush3.bf16.msra.mxu1 %v9558_v30  ;;  %v3311_v15 = vpack.c.bf16 %v3179_v63, %v3178_v5  ;;  %v7829_v5 = vld [vmem:[%s10630_s8 + $0x1fc] ss:$48 sps:$4 sm:$0xff]   ;;  %v8236_v63 = vmov 0  }
 0x2cf   :  { %v2661_v34 = vmul.f32 %v9334_v12, %v2375_v14  ;;  %v7668_v62 = vpop.f32.mrb[250].mxu0  ;;  %v3310_v1 = vpack.c.bf16 %v3177_v9, %v3176_v43  ;;  %v7832_v43 = vld [vmem:[%s10630_s8 + $0x25c] ss:$48 sps:$4 sm:$0xff]   ;;  %v7830_v9 = vld [vmem:[%s10630_s8 + $0x258] ss:$48 sps:$4 sm:$0xff]  }
 0x2d0   :  { %v2926_v35 = vadd.f32 %v9342_v10, %v2663_v27  ;;  %v2664_v19 = vmul.f32 %v9334_v12, %v7668_v62  ;;  %v2378_v8 = vpop.f32.mrb[251].mxu0  ;;  %v7835_v11 = vld [vmem:[%s10630_s8 + $0x2bc] ss:$48 sps:$4 sm:$0xff]   ;;  %v7844_v27 = vld [vmem:[%s10630_s8 + $0x4] ss:$48 sps:$4 sm:$0xff]  }
 0x2d1   :  { %v2924_v16 = vadd.f32 %v9342_v10, %v2661_v34  ;;  %v2662_v21 = vmul.f32 %v9334_v12, %v2378_v8  ;;  %7263 = vmatprep.subr.bf16.mxu1 %v3310_v1  ;;  %v7833_v14 = vld [vmem:[%s10630_s8 + $0x2b8] ss:$48 sps:$4 sm:$0xff]   ;;  %v7841_v62 = vld [vmem:[%s10630_s8 + $0x37c] ss:$48 sps:$4 sm:$0xff]  }
 0x2d2   :  { %v2927_v28 = vadd.f32 %v9342_v10, %v2664_v19  ;;  %7264 = vmatpush3.bf16.msra.mxu1 %v9576_v44  ;;  %v3182_v39 = vmax.f32 %v2926_v35, 0.0  ;;  %v7836_v34 = vld [vmem:[%s10630_s8 + $0x318] ss:$48 sps:$4 sm:$0xff]   ;;  %v7847_v35 = vld [vmem:[%s10630_s8 + $0x3dc] ss:$48 sps:$4 sm:$0xff]  }
 0x2d3   :  { %v2925_v30 = vadd.f32 %v9342_v10, %v2662_v21  ;;  %7265 = vmatprep.subr.bf16.mxu1 %v3311_v15  ;;  %v3180_v13 = vmax.f32 %v2924_v16, 0.0  ;;  %v8209_v10 = vld [vmem:[%s10626_s4] ss:$0 sm:$0xff]  ;;  %v7838_v15 = vld [vmem:[%s10630_s8 + $0x31c] ss:$48 sps:$4 sm:$0xff]   ;;  %s6413_s4 = sshll.u32 %s8237_s3, 4  ;;  %s6414_s4 = int_to_ptr.vmem [resolvable:$true] %s6413_s4 }
 0x2d4   :  { %v3183_v33 = vmax.f32 %v2927_v28, 0.0  ;;  %v7839_v1 = vld [vmem:[%s10630_s8 + $0x378] ss:$48 sps:$4 sm:$0xff]   ;;  %v7874_v16 = vld [vmem:[%s10630_s8 + $0x43c] ss:$48 sps:$4 sm:$0xff]   ;;  %p8215_p1 = scmp.lt.s32.totalorder %s6414_s4, %s6414_s4 }
 0x2d5   :  { %v3181_v32 = vmax.f32 %v2925_v30, 0.0  ;;  %v7671_v26 = vpop.f32.mrb[252].mxu0  ;;  %v7845_v19 = vld [vmem:[%s10630_s8 + $0x3d8] ss:$48 sps:$4 sm:$0xff]   ;;  %v7889_v28 = vld [vmem:[%s10630_s8 + $0x49c] ss:$48 sps:$4 sm:$0xff]  }
 0x2d6   :  { %v2667_v52 = vmul.f32 %v8208_v42, %v7671_v26  ;;  %v2391_v37 = vpop.f32.mrb[253].mxu0  ;;  %7266 = vmatpush3.bf16.msra.mxu1 %v9573_v48  ;;  %v3313_v12 = vpack.c.bf16 %v3183_v33, %v3182_v39  ;;  %v7872_v8 = vld [vmem:[%s10630_s8 + $0x438] ss:$48 sps:$4 sm:$0xff]   ;;  %v7895_v39 = vld [vmem:[%s10630_s8 + $0x4fc] ss:$48 sps:$4 sm:$0xff]  }
 0x2d7   :  { %v2665_v60 = vmul.f32 %v8208_v42, %v2391_v37  ;;  %v7672_v40 = vpop.f32.mrb[254].mxu0  ;;  %v3312_v44 = vpack.c.bf16 %v3181_v32, %v3180_v13  ;;  %v7887_v21 = vld [vmem:[%s10630_s8 + $0x498] ss:$48 sps:$4 sm:$0xff]  }
 0x2d8   :  { %v2930_v41 = vadd.f32 %v8209_v10, %v2667_v52  ;;  %v2668_v7 = vmul.f32 %v8208_v42, %v7672_v40  ;;  %v2394_v47 = vpop.f32.mrb[255].mxu0  ;;  %v7893_v30 = vld [vmem:[%s10630_s8 + $0x4f8] ss:$48 sps:$4 sm:$0xff]  }
 0x2d9   :  { %v2928_v54 = vadd.f32 %v8209_v10, %v2665_v60  ;;  %v2666_v36 = vmul.f32 %v8208_v42, %v2394_v47  ;;  %7267 = vmatprep.subr.bf16.mxu1 %v3312_v44 }
 0x2da   :  { %v2931_v49 = vadd.f32 %v8209_v10, %v2668_v7  ;;  %7268 = vmatpush3.bf16.msra.mxu1 %v9588_v29  ;;  %v3186_v48 = vmax.f32 %v2930_v41, 0.0  ;;  %v7842_v7 = vld [vmem:[%s10630_s8] ss:$48 sps:$4 sm:$0xff]  }
 0x2db   :  { %v2929_v46 = vadd.f32 %v8209_v10, %v2666_v36  ;;  %7269 = vmatprep.subr.bf16.mxu1 %v3313_v12  ;;  %v3184_v55 = vmax.f32 %v2928_v54, 0.0  ;;  %v7850_v54 = vld [vmem:[%s10630_s8 + $0x64] ss:$48 sps:$4 sm:$0xff]   ;;  %v7848_v36 = vld [vmem:[%s10630_s8 + $0x60] ss:$48 sps:$4 sm:$0xff]  }
 0x2dc   :  { %v3187_v0 = vmax.f32 %v2931_v49, 0.0  ;;  %v7851_v49 = vld [vmem:[%s10630_s8 + $0xc0] ss:$48 sps:$4 sm:$0xff]  }
 0x2dd   :  { %v3185_v3 = vmax.f32 %v2929_v46, 0.0  ;;  %v7856_v46 = vld [vmem:[%s10630_s8 + $0x124] ss:$48 sps:$4 sm:$0xff]  }
 0x2de   :  { %7270 = vmatpush3.bf16.msra.mxu1 %v9585_v51  ;;  %v3315_v20 = vpack.c.bf16 %v3187_v0, %v3186_v48  ;;  %v7820_v51 = vld [vmem:[%s10630_s8 + $0x13c] ss:$48 sps:$4 sm:$0xff]   ;;  %v7854_v48 = vld [vmem:[%s10630_s8 + $0x120] ss:$48 sps:$4 sm:$0xff]   ;;  %v7859_v0 = vld [vmem:[%s10630_s8 + $0x184] ss:$48 sps:$4 sm:$0xff]  }
 0x2df   :  { %v3314_v53 = vpack.c.bf16 %v3185_v3, %v3184_v55  ;;  %5057 = vmatprep.subr.bf16.mxu0 %v7820_v51  ;;  %v7857_v55 = vld [vmem:[%s10630_s8 + $0x180] ss:$48 sps:$4 sm:$0xff]   ;;  %v7862_v3 = vld [vmem:[%s10630_s8 + $0x1e4] ss:$48 sps:$4 sm:$0xff]  }
 0x2e0   :  { %5058 = vmatpush1.bf16.msra.mxu0 %v7818_v18  ;;  %v7877_v18 = vld [vmem:[%s10630_s8 + $0x364] ss:$48 sps:$4 sm:$0xff]   ;;  %v7875_v51 = vld [vmem:[%s10630_s8 + $0x360] ss:$48 sps:$4 sm:$0xff]  }
 0x2e1   :  { %7271 = vmatprep.subr.bf16.mxu1 %v3314_v53  ;;  %v7865_v53 = vld [vmem:[%s10630_s8 + $0x244] ss:$48 sps:$4 sm:$0xff]  }
 0x2e2   :  { %7272 = vmatpush3.bf16.msra.mxu1 %v9600_v22  ;;  %v7823_v22 = vld [vmem:[%s10630_s8 + $0x19c] ss:$48 sps:$4 sm:$0xff]  }
 0x2e3   :  { %7273 = vmatprep.subr.bf16.mxu1 %v3315_v20  ;;  %5059 = vmatprep.subr.bf16.mxu0 %v7823_v22  ;;  %v7860_v20 = vld [vmem:[%s10630_s8 + $0x1e0] ss:$48 sps:$4 sm:$0xff]   ;;  %v7880_v22 = vld [vmem:[%s10630_s8 + $0x3c4] ss:$48 sps:$4 sm:$0xff]  }
 0x2e6   :  { %7274 = vmatpush3.bf16.msra.mxu1 %v9597_v25 }
 0x2e7   :  { %3703 = vmatprep.subr.bf16.mxu1 %v7826_v24  ;;  %v7898_v24 = vld [vmem:[%s10630_s8 + $0x544] ss:$48 sps:$4 sm:$0xff]  }
 0x2e9   :  { %3675 = vmatmul.mubr.bf16.vlgmr.msra.gmra.mrb[28].mxu1 %v9071_v31  ;;  %v7821_v31 = vld [vmem:[%s10630_s8 + $0x198] ss:$48 sps:$4 sm:$0xff]  }
 0x2ea   :  { %5060 = vmatpush1.bf16.msra.mxu0 %v7821_v31  ;;  %3704 = vmatpush1.bf16.msra.mxu1 %v7824_v38  ;;  %v7878_v31 = vld [vmem:[%s10630_s8 + $0x3c0] ss:$48 sps:$4 sm:$0xff]   ;;  %v7901_v38 = vld [vmem:[%s10630_s8 + $0x55c] ss:$48 sps:$4 sm:$0xff]  }
 0x2eb   :  { %3735 = vmatprep.mubr.bf16.mxu1 %v8236_v63  ;;  %5061 = vmatprep.subr.bf16.mxu0 %v7829_v5  ;;  %v7899_v5 = vld [vmem:[%s10630_s8 + $0x558] ss:$48 sps:$4 sm:$0xff]   ;;  %v7904_v63 = vld [vmem:[%s10630_s8 + $0x5a4] ss:$48 sps:$4 sm:$0xff]  }
 0x2ec   :  { %4928 = vmatprep.subr.bf16.mxu1 %v7844_v27  ;;  %v7910_v27 = vld [vmem:[%s10630_s8 + $0xc] ss:$48 sps:$4 sm:$0xff]  }
 0x2ee   :  { %5062 = vmatpush1.bf16.msra.mxu0 %v7827_v4  ;;  %v7896_v4 = vld [vmem:[%s10630_s8 + $0x540] ss:$48 sps:$4 sm:$0xff]  }
 0x2ef   :  { %5063 = vmatprep.subr.bf16.mxu0 %v7832_v43  ;;  %v7907_v43 = vld [vmem:[%s10630_s8 + $0x5bc] ss:$48 sps:$4 sm:$0xff]  }
 0x2f2   :  { %5064 = vmatpush1.bf16.msra.mxu0 %v7830_v9  ;;  %v7902_v9 = vld [vmem:[%s10630_s8 + $0x5a0] ss:$48 sps:$4 sm:$0xff]  }
 0x2f3   :  { %5065 = vmatprep.subr.bf16.mxu0 %v7835_v11  ;;  %v7905_v11 = vld [vmem:[%s10630_s8 + $0x5b8] ss:$48 sps:$4 sm:$0xff]  }
 0x2f6   :  { %5066 = vmatpush1.bf16.msra.mxu0 %v7833_v14  ;;  %v7913_v14 = vld [vmem:[%s10630_s8 + $0x2c] ss:$48 sps:$4 sm:$0xff]  }
 0x2f7   :  { %5067 = vmatprep.subr.bf16.mxu0 %v7838_v15  ;;  %v9837_v15 = vsub.s32 0, %v8508_v59 }
 0x2fa   :  { %5068 = vmatpush1.bf16.msra.mxu0 %v7836_v34  ;;  %v3744_v34 = vld [vmem:[%s10628_s6] sm:$0x3] }
 0x2fb   :  { %5069 = vmatprep.subr.bf16.mxu0 %v7841_v62  ;;  %v9843_v62 = vsub.s32 1, %v8508_v59 }
 0x2fc   :  { %v7209_v45 = vpop.f32.mrb[16].mxu1 }
 0x2fd   :  { %v7210_v29 = vpop.f32.mrb[17].mxu1 }
 0x2fe   :  { %v7211_v6 = vadd.f32 %v7210_v29, %v7209_v45  ;;  %v7212_v56 = vpop.f32.mrb[18].mxu1  ;;  %5070 = vmatpush1.bf16.msra.mxu0 %v7839_v1  ;;  %v7863_v45 = vld [vmem:[%s10630_s8 + $0x240] ss:$48 sps:$4 sm:$0xff]   ;;  %v7868_v29 = vld [vmem:[%s10630_s8 + $0x2a4] ss:$48 sps:$4 sm:$0xff]  }
 0x2ff   :  { %v7213_v57 = vpop.f32.mrb[19].mxu1  ;;  %5071 = vmatprep.subr.bf16.mxu0 %v7847_v35  ;;  %v7871_v56 = vld [vmem:[%s10630_s8 + $0x304] ss:$48 sps:$4 sm:$0xff]   ;;  %v3758_v1 = vld [vmem:[%s10629_s7] sm:$0x3]  ;;  %v3749_v35 = vrot.slane %v3744_v34, %v9837_v15 }
 0x300   :  { %v7869_v57 = vld [vmem:[%s10630_s8 + $0x300] ss:$48 sps:$4 sm:$0xff]  }
 0x302   :  { %5072 = vmatpush1.bf16.msra.mxu0 %v7845_v19  ;;  %v3753_v19 = vrot.slane %v3744_v34, %v9843_v62  ;;  %v7979_v34 = vld [vmem:[%s10630_s8 + $0x44c] ss:$48 sps:$4 sm:$0xff]  }
 0x303   :  { %5073 = vmatprep.subr.bf16.mxu0 %v7874_v16 }
 0x306   :  { %5074 = vmatpush1.bf16.msra.mxu0 %v7872_v8  ;;  %v3763_v8 = vrot.slane %v3758_v1, %v9837_v15 }
 0x307   :  { %5075 = vmatprep.subr.bf16.mxu0 %v7889_v28 }
 0x30a   :  { %5076 = vmatpush1.bf16.msra.mxu0 %v7887_v21  ;;  %v3767_v21 = vrot.slane %v3758_v1, %v9843_v62  ;;  %v7974_v1 = vld [vmem:[%s10630_s8 + $0x428] ss:$48 sps:$4 sm:$0xff]  }
 0x30b   :  { %5077 = vmatprep.subr.bf16.mxu0 %v7895_v39 }
 0x30e   :  { %5078 = vmatpush1.bf16.msra.mxu0 %v7893_v30 }
 0x30f   :  { %5079 = vmatprep.subr.bf16.mxu0 %v7901_v38  ;;  %v7964_v38 = vld [vmem:[%s10630_s8 + $0x36c] ss:$48 sps:$4 sm:$0xff]  }
 0x312   :  { %5080 = vmatpush1.bf16.msra.mxu0 %v7899_v5  ;;  %v7962_v5 = vld [vmem:[%s10630_s8 + $0x368] ss:$48 sps:$4 sm:$0xff]  }
 0x313   :  { %5081 = vmatprep.subr.bf16.mxu0 %v7907_v43  ;;  %v7970_v43 = vld [vmem:[%s10630_s8 + $0x3cc] ss:$48 sps:$4 sm:$0xff]  }
 0x316   :  { %5082 = vmatpush1.bf16.msra.mxu0 %v7905_v11  ;;  %v7968_v11 = vld [vmem:[%s10630_s8 + $0x3c8] ss:$48 sps:$4 sm:$0xff]  }
 0x317   :  { %5133 = vmatprep.subr.bf16.mxu0 %v7913_v14  ;;  %v7976_v14 = vld [vmem:[%s10630_s8 + $0x42c] ss:$48 sps:$4 sm:$0xff]  }
 0x33c   :  { %v7231_v25 = vpop.f32.mrb[20].mxu1 }
 0x33d   :  { %v7232_v17 = vpop.f32.mrb[21].mxu1 }
 0x33e   :  { %v7233_v50 = vadd.f32 %v7232_v17, %v7231_v25  ;;  %v7234_v58 = vpop.f32.mrb[22].mxu1  ;;  %v7883_v25 = vld [vmem:[%s10630_s8 + $0x424] ss:$48 sps:$4 sm:$0xff]   ;;  %v7881_v17 = vld [vmem:[%s10630_s8 + $0x420] ss:$48 sps:$4 sm:$0xff]  }
 0x33f   :  { %v7235_v61 = vpop.f32.mrb[23].mxu1  ;;  %v7884_v58 = vld [vmem:[%s10630_s8 + $0x480] ss:$48 sps:$4 sm:$0xff]  }
 0x340   :  { %v3597_v2 = vadd.f32 %v7233_v50, %v7211_v6  ;;  %v7866_v6 = vld [vmem:[%s10630_s8 + $0x2a0] ss:$48 sps:$4 sm:$0xff]   ;;  %v7886_v50 = vld [vmem:[%s10630_s8 + $0x484] ss:$48 sps:$4 sm:$0xff]  }
 0x341   :  { %v7892_v61 = vld [vmem:[%s10630_s8 + $0x4e4] ss:$48 sps:$4 sm:$0xff]  }
 0x37c   :  { %v7253_v33 = vpop.f32.mrb[24].mxu1 }
 0x37d   :  { %v7254_v13 = vpop.f32.mrb[25].mxu1 }
 0x37e   :  { %v7255_v32 = vadd.f32 %v7254_v13, %v7253_v33  ;;  %v7256_v26 = vpop.f32.mrb[26].mxu1 }
 0x37f   :  { %v7257_v42 = vpop.f32.mrb[27].mxu1 }
 0x380   :  { %v3637_v52 = vadd.f32 %v7255_v32, %v3597_v2  ;;  %v7890_v2 = vld [vmem:[%s10630_s8 + $0x4e0] ss:$48 sps:$4 sm:$0xff]  }
 0x3bc   :  { %v7275_v37 = vpop.f32.mrb[28].mxu1 }
 0x3bd   :  { %v7276_v12 = vpop.f32.mrb[29].mxu1 }
 0x3be   :  { %v7277_v60 = vadd.f32 %v7276_v12, %v7275_v37  ;;  %v7278_v40 = vpop.f32.mrb[30].mxu1  ;;  %v7908_v12 = vld [vmem:[%s10630_s8 + $0x8] ss:$48 sps:$4 sm:$0xff]  }
 0x3bf   :  { %v7279_v44 = vpop.f32.mrb[31].mxu1 }
 0x3c0   :  { %v3677_v10 = vadd.f32 %v7277_v60, %v3637_v52  ;;  %v7911_v60 = vld [vmem:[%s10630_s8 + $0x28] ss:$48 sps:$4 sm:$0xff]   ;;  %v7916_v44 = vld [vmem:[%s10630_s8 + $0x6c] ss:$48 sps:$4 sm:$0xff]  }
 0x3c2   :  { %v3684_v41 = vcombine.low %v9606_v23, %v3677_v10  ;;  %v7853_v23 = vld [vmem:[%s10630_s8 + $0xc4] ss:$48 sps:$4 sm:$0xff]   ;;  %v7919_v10 = vld [vmem:[%s10630_s8 + $0x8c] ss:$48 sps:$4 sm:$0xff]  }
 0x3c4   :  { %v3686_v47 = vpack.c.bf16 %v3684_v41, %v3684_v41  ;;  %v7914_v41 = vld [vmem:[%s10630_s8 + $0x68] ss:$48 sps:$4 sm:$0xff]  }
 0x3c6   :  { %6683 = vmatmul.mubr.msk.bf16.vlgmr.msra.gmra.mrb[32].mxu1 %vm3699_vm3, %v3686_v47  ;;  %v7922_v47 = vld [vmem:[%s10630_s8 + $0xcc] ss:$48 sps:$4 sm:$0xff]  }
 0x3c7   :  { %4929 = vmatpush1.bf16.msra.mxu1 %v7842_v7  ;;  %v7917_v7 = vld [vmem:[%s10630_s8 + $0x88] ss:$48 sps:$4 sm:$0xff]  }
 0x3c8   :  { %4930 = vmatprep.subr.bf16.mxu1 %v7850_v54  ;;  %v7925_v54 = vld [vmem:[%s10630_s8 + $0xec] ss:$48 sps:$4 sm:$0xff]  }
 0x3cb   :  { %4931 = vmatpush1.bf16.msra.mxu1 %v7848_v36  ;;  %v7920_v36 = vld [vmem:[%s10630_s8 + $0xc8] ss:$48 sps:$4 sm:$0xff]  }
 0x3cc   :  { %4932 = vmatprep.subr.bf16.mxu1 %v7853_v23  ;;  %v7923_v23 = vld [vmem:[%s10630_s8 + $0xe8] ss:$48 sps:$4 sm:$0xff]  }
 0x3cf   :  { %4933 = vmatpush1.bf16.msra.mxu1 %v7851_v49  ;;  %v7928_v49 = vld [vmem:[%s10630_s8 + $0x12c] ss:$48 sps:$4 sm:$0xff]  }
 0x3d0   :  { %4934 = vmatprep.subr.bf16.mxu1 %v7856_v46  ;;  %v7931_v46 = vld [vmem:[%s10630_s8 + $0x14c] ss:$48 sps:$4 sm:$0xff]  }
 0x3d3   :  { %4935 = vmatpush1.bf16.msra.mxu1 %v7854_v48  ;;  %v7926_v48 = vld [vmem:[%s10630_s8 + $0x128] ss:$48 sps:$4 sm:$0xff]  }
 0x3d4   :  { %4936 = vmatprep.subr.bf16.mxu1 %v7859_v0  ;;  %v7929_v0 = vld [vmem:[%s10630_s8 + $0x148] ss:$48 sps:$4 sm:$0xff]  }
 0x3d7   :  { %4937 = vmatpush1.bf16.msra.mxu1 %v7857_v55  ;;  %v7934_v55 = vld [vmem:[%s10630_s8 + $0x18c] ss:$48 sps:$4 sm:$0xff]  }
 0x3d8   :  { %4938 = vmatprep.subr.bf16.mxu1 %v7862_v3  ;;  %v7937_v3 = vld [vmem:[%s10630_s8 + $0x1ac] ss:$48 sps:$4 sm:$0xff]  }
 0x3db   :  { %4939 = vmatpush1.bf16.msra.mxu1 %v7860_v20  ;;  %v7932_v20 = vld [vmem:[%s10630_s8 + $0x188] ss:$48 sps:$4 sm:$0xff]  }
 0x3dc   :  { %4940 = vmatprep.subr.bf16.mxu1 %v7865_v53  ;;  %v7935_v53 = vld [vmem:[%s10630_s8 + $0x1a8] ss:$48 sps:$4 sm:$0xff]  }
 0x3df   :  { %4941 = vmatpush1.bf16.msra.mxu1 %v7863_v45  ;;  %v7940_v45 = vld [vmem:[%s10630_s8 + $0x1ec] ss:$48 sps:$4 sm:$0xff]  }
 0x3e0   :  { %4942 = vmatprep.subr.bf16.mxu1 %v7868_v29  ;;  %v7943_v29 = vld [vmem:[%s10630_s8 + $0x20c] ss:$48 sps:$4 sm:$0xff]  }
 0x3e3   :  { %4943 = vmatpush1.bf16.msra.mxu1 %v7866_v6  ;;  %v7938_v6 = vld [vmem:[%s10630_s8 + $0x1e8] ss:$48 sps:$4 sm:$0xff]  }
 0x3e4   :  { %4944 = vmatprep.subr.bf16.mxu1 %v7871_v56  ;;  %v7941_v56 = vld [vmem:[%s10630_s8 + $0x208] ss:$48 sps:$4 sm:$0xff]  }
 0x3e7   :  { %4945 = vmatpush1.bf16.msra.mxu1 %v7869_v57  ;;  %v7946_v57 = vld [vmem:[%s10630_s8 + $0x24c] ss:$48 sps:$4 sm:$0xff]  }
 0x3e8   :  { %4946 = vmatprep.subr.bf16.mxu1 %v7877_v18  ;;  %v7949_v18 = vld [vmem:[%s10630_s8 + $0x26c] ss:$48 sps:$4 sm:$0xff]  }
 0x3eb   :  { %4947 = vmatpush1.bf16.msra.mxu1 %v7875_v51  ;;  %v7944_v51 = vld [vmem:[%s10630_s8 + $0x248] ss:$48 sps:$4 sm:$0xff]  }
 0x3ec   :  { %4948 = vmatprep.subr.bf16.mxu1 %v7880_v22  ;;  %v7947_v22 = vld [vmem:[%s10630_s8 + $0x268] ss:$48 sps:$4 sm:$0xff]  }
 0x3ef   :  { %4949 = vmatpush1.bf16.msra.mxu1 %v7878_v31  ;;  %v7952_v31 = vld [vmem:[%s10630_s8 + $0x2ac] ss:$48 sps:$4 sm:$0xff]  }
 0x3f0   :  { %4950 = vmatprep.subr.bf16.mxu1 %v7883_v25  ;;  %v7955_v25 = vld [vmem:[%s10630_s8 + $0x2cc] ss:$48 sps:$4 sm:$0xff]  }
 0x3f3   :  { %4951 = vmatpush1.bf16.msra.mxu1 %v7881_v17  ;;  %v7950_v17 = vld [vmem:[%s10630_s8 + $0x2a8] ss:$48 sps:$4 sm:$0xff]  }
 0x3f4   :  { %4952 = vmatprep.subr.bf16.mxu1 %v7886_v50  ;;  %v7953_v50 = vld [vmem:[%s10630_s8 + $0x2c8] ss:$48 sps:$4 sm:$0xff]  }
 0x3f7   :  { %4953 = vmatpush1.bf16.msra.mxu1 %v7884_v58  ;;  %v7958_v58 = vld [vmem:[%s10630_s8 + $0x30c] ss:$48 sps:$4 sm:$0xff]  }
 0x3f8   :  { %4954 = vmatprep.subr.bf16.mxu1 %v7892_v61  ;;  %v7961_v61 = vld [vmem:[%s10630_s8 + $0x32c] ss:$48 sps:$4 sm:$0xff]  }
 0x3fb   :  { %4955 = vmatpush1.bf16.msra.mxu1 %v7890_v2  ;;  %v7956_v2 = vld [vmem:[%s10630_s8 + $0x308] ss:$48 sps:$4 sm:$0xff]  }
 0x3fc   :  { %4956 = vmatprep.subr.bf16.mxu1 %v7898_v24  ;;  %v7959_v24 = vld [vmem:[%s10630_s8 + $0x328] ss:$48 sps:$4 sm:$0xff]  }
 0x3ff   :  { %4957 = vmatpush1.bf16.msra.mxu1 %v7896_v4  ;;  %v7967_v4 = vld [vmem:[%s10630_s8 + $0x38c] ss:$48 sps:$4 sm:$0xff]  }
 0x400   :  { %4958 = vmatprep.subr.bf16.mxu1 %v7904_v63  ;;  %v7965_v63 = vld [vmem:[%s10630_s8 + $0x388] ss:$48 sps:$4 sm:$0xff]  }
 0x403   :  { %4959 = vmatpush1.bf16.msra.mxu1 %v7902_v9  ;;  %v7973_v9 = vld [vmem:[%s10630_s8 + $0x3ec] ss:$48 sps:$4 sm:$0xff]  }
 0x404   :  { %4969 = vmatprep.subr.bf16.mxu1 %v7910_v27  ;;  %v7971_v27 = vld [vmem:[%s10630_s8 + $0x3e8] ss:$48 sps:$4 sm:$0xff]  }
 0x499   :  { %v3737_v16 = vpop.f32.mrb[32].mxu1 }
 0x49a   :  { %v3756_v28 = vmul.f32 %v3749_v35, %v3737_v16  ;;  %v3739_v30 = vpop.f32.mrb[33].mxu1  ;;  %v7977_v35 = vld [vmem:[%s10630_s8 + $0x448] ss:$48 sps:$4 sm:$0xff]  }
 0x49b   :  { %v3757_v39 = vmul.f32 %v3753_v19, %v3739_v30  ;;  %v3741_v33 = vpop.f32.mrb[34].mxu1  ;;  %v7982_v19 = vld [vmem:[%s10630_s8 + $0x48c] ss:$48 sps:$4 sm:$0xff]   ;;  %v7980_v16 = vld [vmem:[%s10630_s8 + $0x488] ss:$48 sps:$4 sm:$0xff]  }
 0x49c   :  { %v3770_v13 = vadd.f32 %v3763_v8, %v3756_v28  ;;  %v3742_v32 = vpop.f32.mrb[35].mxu1  ;;  %v7985_v8 = vld [vmem:[%s10630_s8 + $0x4ac] ss:$48 sps:$4 sm:$0xff]   ;;  %v7989_v33 = vld [vmem:[%s10630_s8 + $0x508] ss:$48 sps:$4 sm:$0xff]  }
 0x49d   :  { %v3771_v26 = vadd.f32 %v3767_v21, %v3757_v39  ;;  %v7983_v21 = vld [vmem:[%s10630_s8 + $0x4a8] ss:$48 sps:$4 sm:$0xff]   ;;  %v7988_v28 = vld [vmem:[%s10630_s8 + $0x4ec] ss:$48 sps:$4 sm:$0xff]  }
 0x49e   :  { %v3772_v42 = vmax.f32 %v3770_v13, 0.0  ;;  %v7991_v30 = vld [vmem:[%s10630_s8 + $0x50c] ss:$48 sps:$4 sm:$0xff]   ;;  %v7986_v39 = vld [vmem:[%s10630_s8 + $0x4e8] ss:$48 sps:$4 sm:$0xff]  }
 0x49f   :  { %v3773_v52 = vmax.f32 %v3771_v26, 0.0  ;;  %v7994_v13 = vld [vmem:[%s10630_s8 + $0x54c] ss:$48 sps:$4 sm:$0xff]   ;;  %v7992_v26 = vld [vmem:[%s10630_s8 + $0x548] ss:$48 sps:$4 sm:$0xff]  }
 0x4a0   :  { %v9860_v40 = vpack.c.bf16 %v3772_v42, %v3772_v42  ;;  %v7997_v32 = vld [vmem:[%s10630_s8 + $0x56c] ss:$48 sps:$4 sm:$0xff]   ;;  %v7995_v42 = vld [vmem:[%s10630_s8 + $0x568] ss:$48 sps:$4 sm:$0xff]  }
 0x4a1   :  { %v9852_v37 = vpack.c.bf16 %v3773_v52, %v3773_v52  ;;  %v8000_v52 = vld [vmem:[%s10630_s8 + $0x5ac] ss:$48 sps:$4 sm:$0xff]  }
 0x4a3   :  { %4960 = vmatprep.mubr.bf16.mxu1 %v9852_v37  ;;  %5083 = vmatprep.mubr.bf16.mxu0 %v9852_v37 }
 0x4a4   :  { %4961 = vmatmul.mubr.bf16.vlgmr.msra.gmra.mrb[36].mxu1 %v9860_v40  ;;  %5084 = vmatmul.mubr.bf16.vlgmr.msra.gmra.mrb[0].mxu0 %v9860_v40 }
 0x4a5   :  { %4970 = vmatpush1.bf16.msra.mxu1 %v7908_v12  ;;  %5134 = vmatpush1.bf16.msra.mxu0 %v7911_v60  ;;  %v8003_v12 = vld [vmem:[%s10630_s8 + $0x5cc] ss:$48 sps:$4 sm:$0xff]   ;;  %v7998_v60 = vld [vmem:[%s10630_s8 + $0x5a8] ss:$48 sps:$4 sm:$0xff]  }
 0x4a6   :  { %5001 = vmatprep.mubr.bf16.mxu1 %v9852_v37  ;;  %5165 = vmatprep.mubr.bf16.mxu0 %v9852_v37 }
 0x4a7   :  { %4971 = vmatprep.subr.bf16.mxu1 %v7916_v44  ;;  %5135 = vmatprep.subr.bf16.mxu0 %v7919_v10  ;;  %v8001_v44 = vld [vmem:[%s10630_s8 + $0x5c8] ss:$48 sps:$4 sm:$0xff]   ;;  %v8006_v10 = vld [vmem:[%s10630_s8 + $0x14] ss:$48 sps:$4 sm:$0xff]  }
 0x4a9   :  { %4972 = vmatpush1.bf16.msra.mxu1 %v7914_v41  ;;  %5136 = vmatpush1.bf16.msra.mxu0 %v7917_v7  ;;  %v8004_v41 = vld [vmem:[%s10630_s8 + $0x10] ss:$48 sps:$4 sm:$0xff]   ;;  %v8009_v7 = vld [vmem:[%s10630_s8 + $0x74] ss:$48 sps:$4 sm:$0xff]  }
 0x4aa   :  { %4973 = vmatprep.subr.bf16.mxu1 %v7922_v47  ;;  %5137 = vmatprep.subr.bf16.mxu0 %v7925_v54  ;;  %v8007_v47 = vld [vmem:[%s10630_s8 + $0x70] ss:$48 sps:$4 sm:$0xff]   ;;  %v8012_v54 = vld [vmem:[%s10630_s8 + $0xd4] ss:$48 sps:$4 sm:$0xff]  }
 0x4ad   :  { %4974 = vmatpush1.bf16.msra.mxu1 %v7920_v36  ;;  %5138 = vmatpush1.bf16.msra.mxu0 %v7923_v23  ;;  %v8010_v36 = vld [vmem:[%s10630_s8 + $0xd0] ss:$48 sps:$4 sm:$0xff]   ;;  %v8015_v23 = vld [vmem:[%s10630_s8 + $0x134] ss:$48 sps:$4 sm:$0xff]  }
 0x4ae   :  { %4975 = vmatprep.subr.bf16.mxu1 %v7928_v49  ;;  %5139 = vmatprep.subr.bf16.mxu0 %v7931_v46  ;;  %v8013_v49 = vld [vmem:[%s10630_s8 + $0x130] ss:$48 sps:$4 sm:$0xff]   ;;  %v8018_v46 = vld [vmem:[%s10630_s8 + $0x194] ss:$48 sps:$4 sm:$0xff]  }
 0x4b1   :  { %4976 = vmatpush1.bf16.msra.mxu1 %v7926_v48  ;;  %5140 = vmatpush1.bf16.msra.mxu0 %v7929_v0  ;;  %v8016_v48 = vld [vmem:[%s10630_s8 + $0x190] ss:$48 sps:$4 sm:$0xff]   ;;  %v8021_v0 = vld [vmem:[%s10630_s8 + $0x1f4] ss:$48 sps:$4 sm:$0xff]  }
 0x4b2   :  { %4977 = vmatprep.subr.bf16.mxu1 %v7934_v55  ;;  %5141 = vmatprep.subr.bf16.mxu0 %v7937_v3  ;;  %v8019_v55 = vld [vmem:[%s10630_s8 + $0x1f0] ss:$48 sps:$4 sm:$0xff]   ;;  %v8024_v3 = vld [vmem:[%s10630_s8 + $0x254] ss:$48 sps:$4 sm:$0xff]  }
 0x4b5   :  { %4978 = vmatpush1.bf16.msra.mxu1 %v7932_v20  ;;  %5142 = vmatpush1.bf16.msra.mxu0 %v7935_v53  ;;  %v8022_v20 = vld [vmem:[%s10630_s8 + $0x250] ss:$48 sps:$4 sm:$0xff]   ;;  %v8027_v53 = vld [vmem:[%s10630_s8 + $0x2b4] ss:$48 sps:$4 sm:$0xff]  }
 0x4b6   :  { %4979 = vmatprep.subr.bf16.mxu1 %v7940_v45  ;;  %5143 = vmatprep.subr.bf16.mxu0 %v7943_v29  ;;  %v8025_v45 = vld [vmem:[%s10630_s8 + $0x2b0] ss:$48 sps:$4 sm:$0xff]   ;;  %v8030_v29 = vld [vmem:[%s10630_s8 + $0x314] ss:$48 sps:$4 sm:$0xff]  }
 0x4b9   :  { %4980 = vmatpush1.bf16.msra.mxu1 %v7938_v6  ;;  %5144 = vmatpush1.bf16.msra.mxu0 %v7941_v56  ;;  %v8028_v6 = vld [vmem:[%s10630_s8 + $0x310] ss:$48 sps:$4 sm:$0xff]   ;;  %v8033_v56 = vld [vmem:[%s10630_s8 + $0x374] ss:$48 sps:$4 sm:$0xff]  }
 0x4ba   :  { %4981 = vmatprep.subr.bf16.mxu1 %v7946_v57  ;;  %5145 = vmatprep.subr.bf16.mxu0 %v7949_v18  ;;  %v8031_v57 = vld [vmem:[%s10630_s8 + $0x370] ss:$48 sps:$4 sm:$0xff]   ;;  %v8036_v18 = vld [vmem:[%s10630_s8 + $0x3d4] ss:$48 sps:$4 sm:$0xff]  }
 0x4bd   :  { %4982 = vmatpush1.bf16.msra.mxu1 %v7944_v51  ;;  %5146 = vmatpush1.bf16.msra.mxu0 %v7947_v22  ;;  %v8034_v51 = vld [vmem:[%s10630_s8 + $0x3d0] ss:$48 sps:$4 sm:$0xff]   ;;  %v8039_v22 = vld [vmem:[%s10630_s8 + $0x434] ss:$48 sps:$4 sm:$0xff]  }
 0x4be   :  { %4983 = vmatprep.subr.bf16.mxu1 %v7952_v31  ;;  %5147 = vmatprep.subr.bf16.mxu0 %v7955_v25  ;;  %v8037_v31 = vld [vmem:[%s10630_s8 + $0x430] ss:$48 sps:$4 sm:$0xff]   ;;  %v8042_v25 = vld [vmem:[%s10630_s8 + $0x494] ss:$48 sps:$4 sm:$0xff]  }
 0x4c1   :  { %4984 = vmatpush1.bf16.msra.mxu1 %v7950_v17  ;;  %5148 = vmatpush1.bf16.msra.mxu0 %v7953_v50  ;;  %v8040_v17 = vld [vmem:[%s10630_s8 + $0x490] ss:$48 sps:$4 sm:$0xff]   ;;  %v8045_v50 = vld [vmem:[%s10630_s8 + $0x4f4] ss:$48 sps:$4 sm:$0xff]  }
 0x4c2   :  { %4985 = vmatprep.subr.bf16.mxu1 %v7958_v58  ;;  %5149 = vmatprep.subr.bf16.mxu0 %v7961_v61  ;;  %v8043_v58 = vld [vmem:[%s10630_s8 + $0x4f0] ss:$48 sps:$4 sm:$0xff]   ;;  %v8048_v61 = vld [vmem:[%s10630_s8 + $0x554] ss:$48 sps:$4 sm:$0xff]  }
 0x4c5   :  { %4986 = vmatpush1.bf16.msra.mxu1 %v7956_v2  ;;  %5150 = vmatpush1.bf16.msra.mxu0 %v7959_v24  ;;  %v8046_v2 = vld [vmem:[%s10630_s8 + $0x550] ss:$48 sps:$4 sm:$0xff]   ;;  %v8051_v24 = vld [vmem:[%s10630_s8 + $0x5b4] ss:$48 sps:$4 sm:$0xff]  }
 0x4c6   :  { %4987 = vmatprep.subr.bf16.mxu1 %v7964_v38  ;;  %5151 = vmatprep.subr.bf16.mxu0 %v7967_v4  ;;  %v8049_v38 = vld [vmem:[%s10630_s8 + $0x5b0] ss:$48 sps:$4 sm:$0xff]   ;;  %v8054_v4 = vld [vmem:[%s10630_s8 + $0x24] ss:$48 sps:$4 sm:$0xff]  }
 0x4c9   :  { %4988 = vmatpush1.bf16.msra.mxu1 %v7962_v5  ;;  %5152 = vmatpush1.bf16.msra.mxu0 %v7965_v63  ;;  %v8052_v5 = vld [vmem:[%s10630_s8 + $0x20] ss:$48 sps:$4 sm:$0xff]   ;;  %v8057_v63 = vld [vmem:[%s10630_s8 + $0x84] ss:$48 sps:$4 sm:$0xff]  }
 0x4ca   :  { %4989 = vmatprep.subr.bf16.mxu1 %v7970_v43  ;;  %5153 = vmatprep.subr.bf16.mxu0 %v7973_v9  ;;  %v8055_v43 = vld [vmem:[%s10630_s8 + $0x80] ss:$48 sps:$4 sm:$0xff]   ;;  %v8060_v9 = vld [vmem:[%s10630_s8 + $0xe4] ss:$48 sps:$4 sm:$0xff]  }
 0x4cd   :  { %4990 = vmatpush1.bf16.msra.mxu1 %v7968_v11  ;;  %5154 = vmatpush1.bf16.msra.mxu0 %v7971_v27  ;;  %v8058_v11 = vld [vmem:[%s10630_s8 + $0xe0] ss:$48 sps:$4 sm:$0xff]   ;;  %v8063_v27 = vld [vmem:[%s10630_s8 + $0x144] ss:$48 sps:$4 sm:$0xff]  }
 0x4ce   :  { %4991 = vmatprep.subr.bf16.mxu1 %v7976_v14  ;;  %5155 = vmatprep.subr.bf16.mxu0 %v7979_v34  ;;  %v8066_v14 = vld [vmem:[%s10630_s8 + $0x1a4] ss:$48 sps:$4 sm:$0xff]   ;;  %v8064_v34 = vld [vmem:[%s10630_s8 + $0x1a0] ss:$48 sps:$4 sm:$0xff]  }
 0x4d1   :  { %4992 = vmatpush1.bf16.msra.mxu1 %v7974_v1  ;;  %5156 = vmatpush1.bf16.msra.mxu0 %v7977_v35  ;;  %v8069_v1 = vld [vmem:[%s10630_s8 + $0x204] ss:$48 sps:$4 sm:$0xff]   ;;  %v8067_v35 = vld [vmem:[%s10630_s8 + $0x200] ss:$48 sps:$4 sm:$0xff]  }
 0x4d2   :  { %4993 = vmatprep.subr.bf16.mxu1 %v7982_v19  ;;  %5157 = vmatprep.subr.bf16.mxu0 %v7985_v8  ;;  %v8072_v19 = vld [vmem:[%s10630_s8 + $0x264] ss:$48 sps:$4 sm:$0xff]   ;;  %v8070_v8 = vld [vmem:[%s10630_s8 + $0x260] ss:$48 sps:$4 sm:$0xff]  }
 0x4d5   :  { %4994 = vmatpush1.bf16.msra.mxu1 %v7980_v16  ;;  %5158 = vmatpush1.bf16.msra.mxu0 %v7983_v21  ;;  %v8075_v16 = vld [vmem:[%s10630_s8 + $0x2c4] ss:$48 sps:$4 sm:$0xff]   ;;  %v8073_v21 = vld [vmem:[%s10630_s8 + $0x2c0] ss:$48 sps:$4 sm:$0xff]  }
 0x4d6   :  { %4995 = vmatprep.subr.bf16.mxu1 %v7988_v28  ;;  %5159 = vmatprep.subr.bf16.mxu0 %v7991_v30  ;;  %v8078_v28 = vld [vmem:[%s10630_s8 + $0x324] ss:$48 sps:$4 sm:$0xff]   ;;  %v8076_v30 = vld [vmem:[%s10630_s8 + $0x320] ss:$48 sps:$4 sm:$0xff]  }
 0x4d9   :  { %4996 = vmatpush1.bf16.msra.mxu1 %v7986_v39  ;;  %5160 = vmatpush1.bf16.msra.mxu0 %v7989_v33  ;;  %v8081_v39 = vld [vmem:[%s10630_s8 + $0x384] ss:$48 sps:$4 sm:$0xff]   ;;  %v8079_v33 = vld [vmem:[%s10630_s8 + $0x380] ss:$48 sps:$4 sm:$0xff]  }
 0x4da   :  { %4997 = vmatprep.subr.bf16.mxu1 %v7994_v13  ;;  %5161 = vmatprep.subr.bf16.mxu0 %v7997_v32  ;;  %v8084_v13 = vld [vmem:[%s10630_s8 + $0x3e4] ss:$48 sps:$4 sm:$0xff]   ;;  %v8082_v32 = vld [vmem:[%s10630_s8 + $0x3e0] ss:$48 sps:$4 sm:$0xff]  }
 0x4dd   :  { %4998 = vmatpush1.bf16.msra.mxu1 %v7992_v26  ;;  %5162 = vmatpush1.bf16.msra.mxu0 %v7995_v42  ;;  %v8087_v26 = vld [vmem:[%s10630_s8 + $0x444] ss:$48 sps:$4 sm:$0xff]   ;;  %v8085_v42 = vld [vmem:[%s10630_s8 + $0x440] ss:$48 sps:$4 sm:$0xff]  }
 0x4de   :  { %4999 = vmatprep.subr.bf16.mxu1 %v8000_v52  ;;  %5163 = vmatprep.subr.bf16.mxu0 %v8003_v12  ;;  %v8090_v52 = vld [vmem:[%s10630_s8 + $0x4a4] ss:$48 sps:$4 sm:$0xff]   ;;  %v8088_v12 = vld [vmem:[%s10630_s8 + $0x4a0] ss:$48 sps:$4 sm:$0xff]  }
 0x4e1   :  { %5000 = vmatpush1.bf16.msra.mxu1 %v7998_v60  ;;  %5164 = vmatpush1.bf16.msra.mxu0 %v8001_v44  ;;  %v8093_v60 = vld [vmem:[%s10630_s8 + $0x504] ss:$48 sps:$4 sm:$0xff]   ;;  %v8091_v44 = vld [vmem:[%s10630_s8 + $0x500] ss:$48 sps:$4 sm:$0xff]  }
 0x4e2   :  { %5010 = vmatprep.subr.bf16.mxu1 %v8006_v10  ;;  %v8096_v10 = vld [vmem:[%s10630_s8 + $0x564] ss:$48 sps:$4 sm:$0xff]  }
 0x4e4   :  { %5002 = vmatmul.mubr.bf16.vlgmr.msra.gmra.mrb[40].mxu1 %v9860_v40  ;;  %5166 = vmatmul.mubr.bf16.vlgmr.msra.gmra.mrb[4].mxu0 %v9860_v40 }
 0x4e5   :  { %5011 = vmatpush1.bf16.msra.mxu1 %v8004_v41  ;;  %5042 = vmatprep.mubr.bf16.mxu1 %v9852_v37  ;;  %v8094_v41 = vld [vmem:[%s10630_s8 + $0x560] ss:$48 sps:$4 sm:$0xff]  }
 0x4e6   :  { %5012 = vmatprep.subr.bf16.mxu1 %v8009_v7  ;;  %v8099_v7 = vld [vmem:[%s10630_s8 + $0x5c4] ss:$48 sps:$4 sm:$0xff]  }
 0x4e9   :  { %5013 = vmatpush1.bf16.msra.mxu1 %v8007_v47  ;;  %v8097_v47 = vld [vmem:[%s10630_s8 + $0x5c0] ss:$48 sps:$4 sm:$0xff]  }
 0x4ea   :  { %5014 = vmatprep.subr.bf16.mxu1 %v8012_v54  ;;  %v8100_v54 = vld [vmem:[%s10633_s11 + $0x40] sm:$0xff]  }
 0x4ed   :  { %5015 = vmatpush1.bf16.msra.mxu1 %v8010_v36  ;;  %v8101_v36 = vld [vmem:[%s10633_s11] sm:$0xff]  }
 0x4ee   :  { %5016 = vmatprep.subr.bf16.mxu1 %v8015_v23  ;;  %v8149_v23 = vld [vmem:[%s10633_s11 + $0x140] sm:$0xff]  }
 0x4ef   :  { %7325 = vmatprep.subr.bf16.mxu0 %v8149_v23  ;;  %v8124_v23 = vld [vmem:[%s10633_s11 + $0xe0] sm:$0xff]  }
 0x4f1   :  { %5017 = vmatpush1.bf16.msra.mxu1 %v8013_v49  ;;  %v8102_v49 = vld [vmem:[%s10633_s11 + $0x48] sm:$0xff]  }
 0x4f2   :  { %5018 = vmatprep.subr.bf16.mxu1 %v8018_v46  ;;  %v8151_v46 = vld [vmem:[%s10633_s11 + $0x100] sm:$0xff]  }
 0x4f3   :  { %7326 = vmatpush3.bf16.msra.mxu0 %v8151_v46  ;;  %v8126_v46 = vld [vmem:[%s10633_s11 + $0xe8] sm:$0xff]  }
 0x4f5   :  { %5019 = vmatpush1.bf16.msra.mxu1 %v8016_v48  ;;  %v8153_v48 = vld [vmem:[%s10633_s11 + $0x148] sm:$0xff]  }
 0x4f6   :  { %5020 = vmatprep.subr.bf16.mxu1 %v8021_v0  ;;  %v8103_v0 = vld [vmem:[%s10633_s11 + $0x8] sm:$0xff]   ;;  %7327 = vmatprep.subr.bf16.mxu0 %v8153_v48 }
 0x4f7   :  { %v8127_v48 = vld [vmem:[%s10633_s11 + $0xa8] sm:$0xff]  }
 0x4f9   :  { %5021 = vmatpush1.bf16.msra.mxu1 %v8019_v55  ;;  %v8104_v55 = vld [vmem:[%s10633_s11 + $0x50] sm:$0xff]  }
 0x4fa   :  { %5022 = vmatprep.subr.bf16.mxu1 %v8024_v3  ;;  %v8157_v3 = vld [vmem:[%s10633_s11 + $0x150] sm:$0xff]  }
 0x4fd   :  { %5023 = vmatpush1.bf16.msra.mxu1 %v8022_v20  ;;  %v8105_v20 = vld [vmem:[%s10633_s11 + $0x10] sm:$0xff]  }
 0x4fe   :  { %5024 = vmatprep.subr.bf16.mxu1 %v8027_v53  ;;  %v8106_v53 = vld [vmem:[%s10633_s11 + $0x58] sm:$0xff]  }
 0x501   :  { %5025 = vmatpush1.bf16.msra.mxu1 %v8025_v45  ;;  %v8159_v45 = vld [vmem:[%s10633_s11 + $0x110] sm:$0xff]  }
 0x502   :  { %5026 = vmatprep.subr.bf16.mxu1 %v8030_v29  ;;  %v8161_v29 = vld [vmem:[%s10633_s11 + $0x158] sm:$0xff]  }
 0x505   :  { %5027 = vmatpush1.bf16.msra.mxu1 %v8028_v6  ;;  %v8107_v6 = vld [vmem:[%s10633_s11 + $0x18] sm:$0xff]  }
 0x506   :  { %5028 = vmatprep.subr.bf16.mxu1 %v8033_v56  ;;  %v8108_v56 = vld [vmem:[%s10633_s11 + $0x60] sm:$0xff]  }
 0x509   :  { %5029 = vmatpush1.bf16.msra.mxu1 %v8031_v57  ;;  %v8163_v57 = vld [vmem:[%s10633_s11 + $0x118] sm:$0xff]  }
 0x50a   :  { %5030 = vmatprep.subr.bf16.mxu1 %v8036_v18  ;;  %v8165_v18 = vld [vmem:[%s10633_s11 + $0x160] sm:$0xff]  }
 0x50d   :  { %5031 = vmatpush1.bf16.msra.mxu1 %v8034_v51  ;;  %v8109_v51 = vld [vmem:[%s10633_s11 + $0x20] sm:$0xff]  }
 0x50e   :  { %5032 = vmatprep.subr.bf16.mxu1 %v8039_v22  ;;  %v10306_v22 = vld [vmem:[%s10631_s9] sm:$0xff] }
 0x511   :  { %5033 = vmatpush1.bf16.msra.mxu1 %v8037_v31  ;;  %v8110_v31 = vld [vmem:[%s10633_s11 + $0x68] sm:$0xff]  }
 0x512   :  { %5034 = vmatprep.subr.bf16.mxu1 %v8042_v25  ;;  %v8167_v25 = vld [vmem:[%s10633_s11 + $0x120] sm:$0xff]  }
 0x515   :  { %5035 = vmatpush1.bf16.msra.mxu1 %v8040_v17  ;;  %v10317_v17 = vld [vmem:[%s10632_s10] sm:$0xff] }
 0x516   :  { %5036 = vmatprep.subr.bf16.mxu1 %v8045_v50  ;;  %v5181_v50 = vrot.slane %v10306_v22, %v9837_v15 }
 0x519   :  { %5037 = vmatpush1.bf16.msra.mxu1 %v8043_v58  ;;  %v8169_v58 = vld [vmem:[%s10633_s11 + $0x168] sm:$0xff]  }
 0x51a   :  { %5038 = vmatprep.subr.bf16.mxu1 %v8048_v61  ;;  %v5185_v61 = vrot.slane %v10306_v22, %v9843_v62 }
 0x51d   :  { %5039 = vmatpush1.bf16.msra.mxu1 %v8046_v2  ;;  %v8111_v2 = vld [vmem:[%s10633_s11 + $0x28] sm:$0xff]  }
 0x51e   :  { %5040 = vmatprep.subr.bf16.mxu1 %v8051_v24  ;;  %v5257_v24 = vrot.slane %v10317_v17, %v9837_v15 }
 0x521   :  { %5041 = vmatpush1.bf16.msra.mxu1 %v8049_v38  ;;  %v8112_v38 = vld [vmem:[%s10633_s11 + $0x70] sm:$0xff]  }
 0x522   :  { %5092 = vmatprep.subr.bf16.mxu1 %v8054_v4  ;;  %v8171_v4 = vld [vmem:[%s10633_s11 + $0x128] sm:$0xff]  }
 0x524   :  { %5043 = vmatmul.mubr.bf16.vlgmr.msra.gmra.mrb[44].mxu1 %v9860_v40 }
 0x525   :  { %5093 = vmatpush1.bf16.msra.mxu1 %v8052_v5  ;;  %5124 = vmatprep.mubr.bf16.mxu1 %v9852_v37  ;;  %v8061_v37 = vld [vmem:[%s10630_s8 + $0x140] ss:$48 sps:$4 sm:$0xff]  }
 0x526   :  { %5094 = vmatprep.subr.bf16.mxu1 %v8057_v63 }
 0x529   :  { %5095 = vmatpush1.bf16.msra.mxu1 %v8055_v43  ;;  %v5261_v43 = vrot.slane %v10317_v17, %v9843_v62 }
 0x52a   :  { %5096 = vmatprep.subr.bf16.mxu1 %v8060_v9 }
 0x52d   :  { %5097 = vmatpush1.bf16.msra.mxu1 %v8058_v11 }
 0x52e   :  { %5098 = vmatprep.subr.bf16.mxu1 %v8063_v27 }
 0x531   :  { %5099 = vmatpush1.bf16.msra.mxu1 %v8061_v37 }
 0x532   :  { %5100 = vmatprep.subr.bf16.mxu1 %v8066_v14 }
 0x535   :  { %5101 = vmatpush1.bf16.msra.mxu1 %v8064_v34 }
 0x536   :  { %5102 = vmatprep.subr.bf16.mxu1 %v8069_v1  ;;  %v8113_v1 = vld [vmem:[%s10633_s11 + $0x30] sm:$0xff]  }
 0x539   :  { %5103 = vmatpush1.bf16.msra.mxu1 %v8067_v35  ;;  %v8173_v35 = vld [vmem:[%s10633_s11 + $0x170] sm:$0xff]  }
 0x53a   :  { %5104 = vmatprep.subr.bf16.mxu1 %v8072_v19 }
 0x53d   :  { %5105 = vmatpush1.bf16.msra.mxu1 %v8070_v8 }
 0x53e   :  { %5106 = vmatprep.subr.bf16.mxu1 %v8075_v16 }
 0x541   :  { %5107 = vmatpush1.bf16.msra.mxu1 %v8073_v21  ;;  %v8114_v21 = vld [vmem:[%s10633_s11 + $0x78] sm:$0xff]  }
 0x542   :  { %5108 = vmatprep.subr.bf16.mxu1 %v8078_v28  ;;  %v8175_v28 = vld [vmem:[%s10633_s11 + $0x130] sm:$0xff]  }
 0x545   :  { %5109 = vmatpush1.bf16.msra.mxu1 %v8076_v30 }
 0x546   :  { %5110 = vmatprep.subr.bf16.mxu1 %v8081_v39 }
 0x549   :  { %5111 = vmatpush1.bf16.msra.mxu1 %v8079_v33  ;;  %v8115_v33 = vld [vmem:[%s10633_s11 + $0x38] sm:$0xff]  }
 0x54a   :  { %5112 = vmatprep.subr.bf16.mxu1 %v8084_v13  ;;  %v8177_v13 = vld [vmem:[%s10633_s11 + $0x178] sm:$0xff]  }
 0x54d   :  { %5113 = vmatpush1.bf16.msra.mxu1 %v8082_v32 }
 0x54e   :  { %5114 = vmatprep.subr.bf16.mxu1 %v8087_v26  ;;  %v8116_v26 = vld [vmem:[%s10633_s11 + $0xc0] sm:$0xff]  }
 0x551   :  { %5115 = vmatpush1.bf16.msra.mxu1 %v8085_v42  ;;  %v8179_v42 = vld [vmem:[%s10633_s11 + $0x138] sm:$0xff]  }
 0x552   :  { %5116 = vmatprep.subr.bf16.mxu1 %v8090_v52 }
 0x555   :  { %5117 = vmatpush1.bf16.msra.mxu1 %v8088_v12  ;;  %v8117_v12 = vld [vmem:[%s10633_s11 + $0x80] sm:$0xff]  }
 0x556   :  { %5118 = vmatprep.subr.bf16.mxu1 %v8093_v60 }
 0x559   :  { %5119 = vmatpush1.bf16.msra.mxu1 %v8091_v44  ;;  %v8118_v44 = vld [vmem:[%s10633_s11 + $0xc8] sm:$0xff]  }
 0x55a   :  { %5120 = vmatprep.subr.bf16.mxu1 %v8096_v10  ;;  %v8180_v10 = vld [vmem:[%s10633_s11 + $0x240] sm:$0xff]  }
 0x55d   :  { %5121 = vmatpush1.bf16.msra.mxu1 %v8094_v41  ;;  %v8119_v41 = vld [vmem:[%s10633_s11 + $0x88] sm:$0xff]  }
 0x55e   :  { %5122 = vmatprep.subr.bf16.mxu1 %v8099_v7  ;;  %v8120_v7 = vld [vmem:[%s10633_s11 + $0xd0] sm:$0xff]  }
 0x561   :  { %5123 = vmatpush1.bf16.msra.mxu1 %v8097_v47  ;;  %v8121_v47 = vld [vmem:[%s10633_s11 + $0x90] sm:$0xff]  }
 0x562   :  { %7281 = vmatprep.subr.bf16.mxu1 %v8100_v54  ;;  %v8122_v54 = vld [vmem:[%s10633_s11 + $0xd8] sm:$0xff]  }
 0x564   :  { %5125 = vmatmul.mubr.bf16.vlgmr.msra.gmra.mrb[48].mxu1 %v9860_v40  ;;  %v8155_v40 = vld [vmem:[%s10633_s11 + $0x108] sm:$0xff]  }
 0x565   :  { %7282 = vmatpush3.bf16.msra.mxu1 %v8101_v36  ;;  %7328 = vmatpush3.bf16.msra.mxu0 %v8155_v40  ;;  %v8123_v36 = vld [vmem:[%s10633_s11 + $0x98] sm:$0xff]  }
 0x566   :  { %7283 = vmatprep.subr.bf16.mxu1 %v8102_v49  ;;  %7329 = vmatprep.subr.bf16.mxu0 %v8157_v3  ;;  %v8125_v49 = vld [vmem:[%s10633_s11 + $0xa0] sm:$0xff]   ;;  %v8130_v40 = vld [vmem:[%s10633_s11 + $0xf8] sm:$0xff]  }
 0x567   :  { %v8131_v3 = vld [vmem:[%s10633_s11 + $0xb8] sm:$0xff]  }
 0x569   :  { %7284 = vmatpush3.bf16.msra.mxu1 %v8103_v0  ;;  %7330 = vmatpush3.bf16.msra.mxu0 %v8159_v45  ;;  %v8128_v0 = vld [vmem:[%s10633_s11 + $0xf0] sm:$0xff]   ;;  %v5188_v45 = vsub.s32 2, %v8508_v59 }
 0x56a   :  { %7285 = vmatprep.subr.bf16.mxu1 %v8104_v55  ;;  %7331 = vmatprep.subr.bf16.mxu0 %v8161_v29  ;;  %v8129_v55 = vld [vmem:[%s10633_s11 + $0xb0] sm:$0xff]  }
 0x56d   :  { %7286 = vmatpush3.bf16.msra.mxu1 %v8105_v20  ;;  %7332 = vmatpush3.bf16.msra.mxu0 %v8163_v57  ;;  %v8132_v20 = vld [vmem:[%s10633_s11 + $0x1c0] sm:$0xff]   ;;  %v10432_v57 = vld [vmem:[%s10632_s10 + $0x8] sm:$0xf] }
 0x56e   :  { %7287 = vmatprep.subr.bf16.mxu1 %v8106_v53  ;;  %7333 = vmatprep.subr.bf16.mxu0 %v8165_v18  ;;  %v5208_v53 = vsub.s32 7, %v8508_v59  ;;  %v5189_v18 = vrot.slane %v10306_v22, %v5188_v45 }
 0x570   :  { %v5209_v29 = vrot.slane %v10306_v22, %v5208_v53 }
 0x571   :  { %7288 = vmatpush3.bf16.msra.mxu1 %v8107_v6  ;;  %7334 = vmatpush3.bf16.msra.mxu0 %v8167_v25  ;;  %v10424_v6 = vld [vmem:[%s10631_s9 + $0x8] sm:$0xf]  ;;  %v5285_v25 = vrot.slane %v10317_v17, %v5208_v53 }
 0x572   :  { %7289 = vmatprep.subr.bf16.mxu1 %v8108_v56  ;;  %7335 = vmatprep.subr.bf16.mxu0 %v8169_v58  ;;  %v10427_v56 = vsub.s32 3, %v8508_v59  ;;  %v5265_v58 = vrot.slane %v10317_v17, %v5188_v45 }
 0x575   :  { %7290 = vmatpush3.bf16.msra.mxu1 %v8109_v51  ;;  %7336 = vmatpush3.bf16.msra.mxu0 %v8171_v4  ;;  %v5221_v51 = vrot.slane %v10424_v6, %v5188_v45 }
 0x576   :  { %7291 = vmatprep.subr.bf16.mxu1 %v8110_v31  ;;  %7337 = vmatprep.subr.bf16.mxu0 %v8173_v35 }
 0x577   :  { %v4962_v5 = vpop.f32.mrb[36].mxu1  ;;  %v10337_v63 = vpop.f32.mrb[0].mxu0 }
 0x578   :  { %v5238_v9 = vmul.f32 %v5181_v50, %v4962_v5  ;;  %v4964_v11 = vpop.f32.mrb[37].mxu1  ;;  %v10341_v27 = vpop.f32.mrb[1].mxu0  ;;  %v5193_v50 = vrot.slane %v10306_v22, %v10427_v56 }
 0x579   :  { %v5239_v37 = vmul.f32 %v5185_v61, %v4964_v11  ;;  %7292 = vmatpush3.bf16.msra.mxu1 %v8111_v2  ;;  %v4966_v14 = vpop.f32.mrb[38].mxu1  ;;  %v5089_v34 = vpop.f32.mrb[2].mxu0  ;;  %7338 = vmatpush3.bf16.msra.mxu0 %v8175_v28  ;;  %v5245_v31 = vmul.f32 %v5209_v29, %v10341_v27  ;;  %v5297_v61 = vrot.slane %v10432_v57, %v5188_v45  ;;  %v8148_v45 = vld [vmem:[%s10633_s11 + $0x2c0] sm:$0xff]  }
 0x57a   :  { %v5314_v19 = vadd.f32 %v5257_v24, %v5238_v9  ;;  %v4967_v8 = vpop.f32.mrb[39].mxu1  ;;  %v5090_v16 = vpop.f32.mrb[3].mxu0  ;;  %7293 = vmatprep.subr.bf16.mxu1 %v8112_v38  ;;  %7339 = vmatprep.subr.bf16.mxu0 %v8177_v13  ;;  %v5269_v38 = vrot.slane %v10317_v17, %v10427_v56  ;;  %v8134_v13 = vld [vmem:[%s10633_s11 + $0x1c8] sm:$0xff]  }
 0x57b   :  { %v5315_v30 = vadd.f32 %v5261_v43, %v5239_v37  ;;  %v5321_v11 = vadd.f32 %v5285_v25, %v5245_v31  ;;  %v8154_v25 = vld [vmem:[%s10633_s11 + $0x288] sm:$0xff]  }
 0x57c   :  { %v5326_v32 = vmax.f32 %v5314_v19, 0.0 }
 0x57d   :  { %v5327_v39 = vmax.f32 %v5315_v30, 0.0  ;;  %7294 = vmatpush3.bf16.msra.mxu1 %v8113_v1  ;;  %7340 = vmatpush3.bf16.msra.mxu0 %v8179_v42  ;;  %v8136_v42 = vld [vmem:[%s10633_s11 + $0x1d0] sm:$0xff]  }
 0x57e   :  { %7295 = vmatprep.subr.bf16.mxu1 %v8114_v21  ;;  %v5338_v60 = vpack.c.bf16 %v5326_v32, %v5326_v32  ;;  %7369 = vmatprep.subr.bf16.mxu0 %v8180_v10  ;;  %v5333_v21 = vmax.f32 %v5321_v11, 0.0  ;;  %v8140_v10 = vld [vmem:[%s10633_s11 + $0x1e0] sm:$0xff]  }
 0x57f   :  { %v5339_v52 = vpack.c.bf16 %v5327_v39, %v5327_v39  ;;  %v8133_v39 = vld [vmem:[%s10633_s11 + $0x180] sm:$0xff]  }
 0x580   :  { %v5345_v32 = vpack.c.bf16 %v5333_v21, %v5333_v21 }
 0x581   :  { %7296 = vmatpush3.bf16.msra.mxu1 %v8115_v33  ;;  %6150 = vmatprep.mubr.bf16.mxu1 %v5339_v52  ;;  %v8137_v52 = vld [vmem:[%s10633_s11 + $0x190] sm:$0xff]  }
 0x582   :  { %7303 = vmatprep.subr.bf16.mxu1 %v8116_v26  ;;  %v8135_v26 = vld [vmem:[%s10633_s11 + $0x188] sm:$0xff]  }
 0x584   :  { %6151 = vmatmul.mubr.bf16.vlgmr.msra.gmra.mrb[52].mxu1 %v5338_v60  ;;  %v8139_v60 = vld [vmem:[%s10633_s11 + $0x198] sm:$0xff]  }
 0x585   :  { %7304 = vmatpush3.bf16.msra.mxu1 %v8117_v12  ;;  %v8138_v12 = vld [vmem:[%s10633_s11 + $0x1d8] sm:$0xff]  }
 0x586   :  { %7305 = vmatprep.subr.bf16.mxu1 %v8118_v44  ;;  %v5204_v44 = vsub.s32 6, %v8508_v59 }
 0x589   :  { %7306 = vmatpush3.bf16.msra.mxu1 %v8119_v41  ;;  %v8141_v41 = vld [vmem:[%s10633_s11 + $0x1a0] sm:$0xff]  }
 0x58a   :  { %7307 = vmatprep.subr.bf16.mxu1 %v8120_v7  ;;  %v5205_v7 = vrot.slane %v10306_v22, %v5204_v44 }
 0x58d   :  { %7308 = vmatpush3.bf16.msra.mxu1 %v8121_v47  ;;  %v8142_v47 = vld [vmem:[%s10633_s11 + $0x1e8] sm:$0xff]  }
 0x58e   :  { %7309 = vmatprep.subr.bf16.mxu1 %v8122_v54  ;;  %v5225_v54 = vrot.slane %v10424_v6, %v10427_v56 }
 0x591   :  { %7310 = vmatpush3.bf16.msra.mxu1 %v8123_v36  ;;  %v8143_v36 = vld [vmem:[%s10633_s11 + $0x1a8] sm:$0xff]  }
 0x592   :  { %7311 = vmatprep.subr.bf16.mxu1 %v8124_v23  ;;  %v5244_v23 = vmul.f32 %v5205_v7, %v10337_v63  ;;  %v8146_v63 = vld [vmem:[%s10633_s11 + $0x1f8] sm:$0xff]  }
 0x593   :  { %v8187_v7 = vld [vmem:[%s10633_s11 + $0x218] sm:$0xff]  }
 0x595   :  { %7312 = vmatpush3.bf16.msra.mxu1 %v8125_v49  ;;  %v5281_v49 = vrot.slane %v10317_v17, %v5204_v44  ;;  %v8184_v44 = vld [vmem:[%s10633_s11 + $0x250] sm:$0xff]  }
 0x596   :  { %7313 = vmatprep.subr.bf16.mxu1 %v8126_v46  ;;  %v8144_v46 = vld [vmem:[%s10633_s11 + $0x1f0] sm:$0xff]  }
 0x599   :  { %7314 = vmatpush3.bf16.msra.mxu1 %v8127_v48 }
 0x59a   :  { %7315 = vmatprep.subr.bf16.mxu1 %v8128_v0  ;;  %v5301_v0 = vrot.slane %v10432_v57, %v10427_v56  ;;  %v8150_v56 = vld [vmem:[%s10633_s11 + $0x280] sm:$0xff]  }
 0x59d   :  { %7316 = vmatpush3.bf16.msra.mxu1 %v8129_v55  ;;  %v8145_v55 = vld [vmem:[%s10633_s11 + $0x1b0] sm:$0xff]  }
 0x59e   :  { %7317 = vmatprep.subr.bf16.mxu1 %v8130_v40  ;;  %v5320_v40 = vadd.f32 %v5281_v49, %v5244_v23  ;;  %v8191_v23 = vld [vmem:[%s10633_s11 + $0x228] sm:$0xff]   ;;  %v8192_v49 = vld [vmem:[%s10633_s11 + $0x270] sm:$0xff]  }
 0x5a0   :  { %v5332_v53 = vmax.f32 %v5320_v40, 0.0  ;;  %v5217_v40 = vrot.slane %v10424_v6, %v9843_v62 }
 0x5a1   :  { %7318 = vmatpush3.bf16.msra.mxu1 %v8131_v3 }
 0x5a2   :  { %7347 = vmatprep.subr.bf16.mxu1 %v8132_v20  ;;  %v8147_v20 = vld [vmem:[%s10633_s11 + $0x1b8] sm:$0xff]  }
 0x5b7   :  { %v5003_v2 = vpop.f32.mrb[40].mxu1  ;;  %v5167_v24 = vpop.f32.mrb[4].mxu0 }
 0x5b8   :  { %v5240_v4 = vmul.f32 %v5189_v18, %v5003_v2  ;;  %v5248_v5 = vmul.f32 %v5221_v51, %v5167_v24  ;;  %v5005_v43 = vpop.f32.mrb[41].mxu1  ;;  %v5169_v9 = vpop.f32.mrb[5].mxu0  ;;  %v5344_v18 = vpack.c.bf16 %v5332_v53, %v5332_v53  ;;  %v8152_v51 = vld [vmem:[%s10633_s11 + $0x2c8] sm:$0xff]   ;;  %v8162_v2 = vld [vmem:[%s10633_s11 + $0x298] sm:$0xff]   ;;  %v8164_v24 = vld [vmem:[%s10633_s11 + $0x2e0] sm:$0xff]  }
 0x5b9   :  { %v5241_v27 = vmul.f32 %v5193_v50, %v5005_v43  ;;  %v5007_v37 = vpop.f32.mrb[42].mxu1  ;;  %v5171_v14 = vpop.f32.mrb[6].mxu0  ;;  %v5249_v48 = vmul.f32 %v5225_v54, %v5169_v9  ;;  %v8156_v50 = vld [vmem:[%s10633_s11 + $0x2d0] sm:$0xff]   ;;  %v5200_v43 = vsub.s32 5, %v8508_v59  ;;  %v8170_v9 = vld [vmem:[%s10633_s11 + $0x2a8] sm:$0xff]   ;;  %v8189_v54 = vld [vmem:[%s10633_s11 + $0x220] sm:$0xff]  }
 0x5ba   :  { %v5316_v34 = vadd.f32 %v5265_v58, %v5240_v4  ;;  %v10444_v1 = vadd.f32 %v5297_v61, %v5248_v5  ;;  %v5008_v35 = vpop.f32.mrb[43].mxu1  ;;  %v5172_v19 = vpop.f32.mrb[7].mxu0  ;;  %v8158_v58 = vld [vmem:[%s10633_s11 + $0x290] sm:$0xff]   ;;  %v8160_v61 = vld [vmem:[%s10633_s11 + $0x2d8] sm:$0xff]   ;;  %v8168_v4 = vld [vmem:[%s10633_s11 + $0x2e8] sm:$0xff]   ;;  %v5196_v5 = vsub.s32 4, %v8508_v59 }
 0x5bb   :  { %v5317_v8 = vadd.f32 %v5269_v38, %v5241_v27  ;;  %v5325_v3 = vadd.f32 %v5301_v0, %v5249_v48  ;;  %v8166_v38 = vld [vmem:[%s10633_s11 + $0x2a0] sm:$0xff]   ;;  %v8172_v27 = vld [vmem:[%s10633_s11 + $0x2f0] sm:$0xff]   ;;  %v5201_v37 = vrot.slane %v10306_v22, %v5200_v43  ;;  %v5277_v59 = vrot.slane %v10317_v17, %v5200_v43  ;;  %v8194_v48 = vld [vmem:[%s10633_s11 + $0x278] sm:$0xff]  }
 0x5bc   :  { %v5328_v16 = vmax.f32 %v5316_v34, 0.0  ;;  %v5197_v11 = vrot.slane %v10306_v22, %v5196_v5  ;;  %v5273_v14 = vrot.slane %v10317_v17, %v5196_v5  ;;  %v8174_v35 = vld [vmem:[%s10633_s11 + $0x2b0] sm:$0xff]   ;;  %v8178_v17 = vld [vmem:[%s10633_s11 + $0x2b8] sm:$0xff]  }
 0x5bd   :  { %v5329_v28 = vmax.f32 %v5317_v8, 0.0  ;;  %v5337_v29 = vmax.f32 %v5325_v3, 0.0  ;;  %v8195_v0 = vld [vmem:[%s10633_s11 + $0x238] sm:$0xff]  }
 0x5be   :  { %v5340_v33 = vpack.c.bf16 %v5328_v16, %v5328_v16  ;;  %v8176_v16 = vld [vmem:[%s10633_s11 + $0x2f8] sm:$0xff]  }
 0x5bf   :  { %v5341_v30 = vpack.c.bf16 %v5329_v28, %v5329_v28  ;;  %v5349_v31 = vpack.c.bf16 %v5337_v29, %v5337_v29 }
 0x5c1   :  { %6190 = vmatprep.mubr.bf16.mxu1 %v5341_v30 }
 0x5c2   :  { %6191 = vmatmul.mubr.bf16.vlgmr.msra.gmra.mrb[56].mxu1 %v5340_v33  ;;  %v5336_v33 = vmax.f32 %v10444_v1, 0.0  ;;  %v8183_v1 = vld [vmem:[%s10633_s11 + $0x208] sm:$0xff]  }
 0x5c3   :  { %7348 = vmatpush3.bf16.msra.mxu1 %v8133_v39  ;;  %6270 = vmatprep.mubr.bf16.mxu1 %v5345_v32 }
 0x5c4   :  { %7349 = vmatprep.subr.bf16.mxu1 %v8134_v13 }
 0x5c7   :  { %7350 = vmatpush3.bf16.msra.mxu1 %v8135_v26 }
 0x5c8   :  { %7351 = vmatprep.subr.bf16.mxu1 %v8136_v42  ;;  %v8181_v42 = vld [vmem:[%s10633_s11 + $0x200] sm:$0xff]  }
 0x5cb   :  { %7352 = vmatpush3.bf16.msra.mxu1 %v8137_v52  ;;  %v5348_v52 = vpack.c.bf16 %v5336_v33, %v5336_v33 }
 0x5cc   :  { %7353 = vmatprep.subr.bf16.mxu1 %v8138_v12 }
 0x5cf   :  { %7354 = vmatpush3.bf16.msra.mxu1 %v8139_v60  ;;  %v8182_v60 = vld [vmem:[%s10633_s11 + $0x248] sm:$0xff]  }
 0x5d0   :  { %7355 = vmatprep.subr.bf16.mxu1 %v8140_v10  ;;  %v8185_v10 = vld [vmem:[%s10633_s11 + $0x210] sm:$0xff]  }
 0x5d3   :  { %7356 = vmatpush3.bf16.msra.mxu1 %v8141_v41  ;;  %v8186_v41 = vld [vmem:[%s10633_s11 + $0x258] sm:$0xff]  }
 0x5d4   :  { %7357 = vmatprep.subr.bf16.mxu1 %v8142_v47  ;;  %v8188_v47 = vld [vmem:[%s10633_s11 + $0x260] sm:$0xff]  }
 0x5d7   :  { %7358 = vmatpush3.bf16.msra.mxu1 %v8143_v36  ;;  %v8190_v36 = vld [vmem:[%s10633_s11 + $0x268] sm:$0xff]  }
 0x5d8   :  { %7359 = vmatprep.subr.bf16.mxu1 %v8144_v46  ;;  %v8193_v46 = vld [vmem:[%s10633_s11 + $0x230] sm:$0xff]  }
 0x5db   :  { %7360 = vmatpush3.bf16.msra.mxu1 %v8145_v55  ;;  %v5213_v55 = vrot.slane %v10424_v6, %v9837_v15 }
 0x5dc   :  { %7361 = vmatprep.subr.bf16.mxu1 %v8146_v63  ;;  %v5289_v63 = vrot.slane %v10432_v57, %v9837_v15 }
 0x5df   :  { %7362 = vmatpush3.bf16.msra.mxu1 %v8147_v20  ;;  %v5293_v20 = vrot.slane %v10432_v57, %v9843_v62 }
 0x5e0   :  { %7391 = vmatprep.subr.bf16.mxu1 %v8148_v45 }
 0x5e2   :  { %6271 = vmatmul.mubr.bf16.vlgmr.msra.gmra.mrb[60].mxu1 %v5344_v18 }
 0x5e3   :  { %7392 = vmatpush3.bf16.msra.mxu1 %v8150_v56  ;;  %6350 = vmatprep.mubr.bf16.mxu1 %v5349_v31 }
 0x5e4   :  { %7393 = vmatprep.subr.bf16.mxu1 %v8152_v51 }
 0x5e7   :  { %7394 = vmatpush3.bf16.msra.mxu1 %v8154_v25 }
 0x5e8   :  { %7395 = vmatprep.subr.bf16.mxu1 %v8156_v50 }
 0x5eb   :  { %7396 = vmatpush3.bf16.msra.mxu1 %v8158_v58 }
 0x5ec   :  { %7397 = vmatprep.subr.bf16.mxu1 %v8160_v61 }
 0x5ef   :  { %7398 = vmatpush3.bf16.msra.mxu1 %v8162_v2 }
 0x5f0   :  { %7399 = vmatprep.subr.bf16.mxu1 %v8164_v24 }
 0x5f3   :  { %7400 = vmatpush3.bf16.msra.mxu1 %v8166_v38 }
 0x5f4   :  { %7401 = vmatprep.subr.bf16.mxu1 %v8168_v4 }
 0x5f7   :  { %7402 = vmatpush3.bf16.msra.mxu1 %v8170_v9  ;;  %v5044_v34 = vpop.f32.mrb[44].mxu1 }
 0x5f8   :  { %v5242_v19 = vmul.f32 %v5197_v11, %v5044_v34  ;;  %v5046_v8 = vpop.f32.mrb[45].mxu1  ;;  %7403 = vmatprep.subr.bf16.mxu1 %v8172_v27 }
 0x5f9   :  { %v5243_v21 = vmul.f32 %v5201_v37, %v5046_v8  ;;  %v5048_v28 = vpop.f32.mrb[46].mxu1 }
 0x5fa   :  { %v5318_v22 = vadd.f32 %v5273_v14, %v5242_v19  ;;  %v5049_v30 = vpop.f32.mrb[47].mxu1 }
 0x5fb   :  { %v5319_v39 = vadd.f32 %v5277_v59, %v5243_v21  ;;  %7404 = vmatpush3.bf16.msra.mxu1 %v8174_v35 }
 0x5fc   :  { %v5330_v13 = vmax.f32 %v5318_v22, 0.0  ;;  %7405 = vmatprep.subr.bf16.mxu1 %v8176_v16 }
 0x5fd   :  { %v5331_v32 = vmax.f32 %v5319_v39, 0.0 }
 0x5fe   :  { %v5342_v12 = vpack.c.bf16 %v5330_v13, %v5330_v13 }
 0x5ff   :  { %v5343_v26 = vpack.c.bf16 %v5331_v32, %v5331_v32  ;;  %7406 = vmatpush3.bf16.msra.mxu1 %v8178_v17 }
 0x601   :  { %6230 = vmatprep.mubr.bf16.mxu0 %v5343_v26 }
 0x602   :  { %6351 = vmatmul.mubr.bf16.vlgmr.msra.gmra.mrb[64].mxu1 %v5348_v52  ;;  %6231 = vmatmul.mubr.bf16.vlgmr.msra.gmra.mrb[8].mxu0 %v5342_v12 }
 0x603   :  { %7370 = vmatpush3.bf16.msra.mxu0 %v8181_v42 }
 0x604   :  { %7371 = vmatprep.subr.bf16.mxu0 %v8182_v60 }
 0x607   :  { %7372 = vmatpush3.bf16.msra.mxu0 %v8183_v1 }
 0x608   :  { %7373 = vmatprep.subr.bf16.mxu0 %v8184_v44 }
 0x60b   :  { %7374 = vmatpush3.bf16.msra.mxu0 %v8185_v10 }
 0x60c   :  { %7375 = vmatprep.subr.bf16.mxu0 %v8186_v41 }
 0x60f   :  { %7376 = vmatpush3.bf16.msra.mxu0 %v8187_v7 }
 0x610   :  { %7377 = vmatprep.subr.bf16.mxu0 %v8188_v47 }
 0x613   :  { %7378 = vmatpush3.bf16.msra.mxu0 %v8189_v54 }
 0x614   :  { %7379 = vmatprep.subr.bf16.mxu0 %v8190_v36 }
 0x617   :  { %7380 = vmatpush3.bf16.msra.mxu0 %v8191_v23 }
 0x618   :  { %7381 = vmatprep.subr.bf16.mxu0 %v8192_v49 }
 0x61b   :  { %7382 = vmatpush3.bf16.msra.mxu0 %v8193_v46 }
 0x61c   :  { %7383 = vmatprep.subr.bf16.mxu0 %v8194_v48 }
 0x61f   :  { %7384 = vmatpush3.bf16.msra.mxu0 %v8195_v0 }
 0x637   :  { %v5126_v3 = vpop.f32.mrb[48].mxu1 }
 0x638   :  { %v5246_v53 = vmul.f32 %v5213_v55, %v5126_v3  ;;  %v5128_v45 = vpop.f32.mrb[49].mxu1 }
 0x639   :  { %v5247_v29 = vmul.f32 %v5217_v40, %v5128_v45  ;;  %v5130_v56 = vpop.f32.mrb[50].mxu1  ;;  %v6972_v40 = vld [vmem:[%s10634_s12] ss:$0 sm:$0xff]  ;;  %s8210_s12 = scalar_lea.vmem %s6414_s4, 32 }
 0x63a   :  { %v5322_v18 = vadd.f32 %v5289_v63, %v5246_v53  ;;  %v5131_v51 = vpop.f32.mrb[51].mxu1  ;;  %p8211_p0 = scmp.ne.s32.totalorder %s6414_s4, %s8210_s12  ;;  %p8216_p2 = scmp.lt.s32.totalorder %s8210_s12, %s8210_s12 }
 0x63b   :  { %v5323_v31 = vadd.f32 %v5293_v20, %v5247_v29 }
 0x63c   :  { %v5334_v25 = vmax.f32 %v5322_v18, 0.0  ;;  %p8217_p3 = por %p8216_p2, %p8215_p1 }
 0x63d   :  { %v5335_v50 = vmax.f32 %v5323_v31, 0.0 }
 0x63e   :  { %v5346_v61 = vpack.c.bf16 %v5334_v25, %v5334_v25  ;;  %p8218_p4 = pnand %p8217_p3, %p8211_p0 }
 0x63f   :  { %v5347_v58 = vpack.c.bf16 %v5335_v50, %v5335_v50 }
 0x641   :  { %6310 = vmatprep.mubr.bf16.mxu0 %v5347_v58 }
 0x642   :  { %6311 = vmatmul.mubr.bf16.vlgmr.msra.gmra.mrb[12].mxu0 %v5346_v61 }
 0x657   :  { %v7297_v6 = vpop.f32.mrb[52].mxu1 }
 0x658   :  { %v7298_v2 = vpop.f32.mrb[53].mxu1 }
 0x659   :  { %v7299_v15 = vadd.f32 %v7298_v2, %v7297_v6  ;;  %v7300_v24 = vpop.f32.mrb[54].mxu1 }
 0x65a   :  { %v7301_v38 = vpop.f32.mrb[55].mxu1 }
 0x695   :  { %v7319_v4 = vpop.f32.mrb[56].mxu1 }
 0x696   :  { %v7320_v62 = vpop.f32.mrb[57].mxu1 }
 0x697   :  { %v7321_v57 = vadd.f32 %v7320_v62, %v7319_v4  ;;  %v7322_v5 = vpop.f32.mrb[58].mxu1 }
 0x698   :  { %v7323_v43 = vpop.f32.mrb[59].mxu1 }
 0x699   :  { %v6193_v9 = vadd.f32 %v7321_v57, %v7299_v15 }
 0x6b5   :  { %v7363_v11 = vpop.f32.mrb[60].mxu1 }
 0x6b6   :  { %v7364_v27 = vpop.f32.mrb[61].mxu1 }
 0x6b7   :  { %v7365_v37 = vadd.f32 %v7364_v27, %v7363_v11  ;;  %v7366_v14 = vpop.f32.mrb[62].mxu1 }
 0x6b8   :  { %v7367_v34 = vpop.f32.mrb[63].mxu1 }
 0x6d5   :  { %v7407_v59 = vpop.f32.mrb[64].mxu1  ;;  %v7341_v35 = vpop.f32.mrb[8].mxu0 }
 0x6d6   :  { %v7408_v19 = vpop.f32.mrb[65].mxu1  ;;  %v7342_v8 = vpop.f32.mrb[9].mxu0 }
 0x6d7   :  { %v7409_v16 = vadd.f32 %v7408_v19, %v7407_v59  ;;  %v7343_v21 = vadd.f32 %v7342_v8, %v7341_v35  ;;  %v7410_v28 = vpop.f32.mrb[66].mxu1  ;;  %v7344_v22 = vpop.f32.mrb[10].mxu0 }
 0x6d8   :  { %v7411_v30 = vpop.f32.mrb[67].mxu1  ;;  %v7345_v39 = vpop.f32.mrb[11].mxu0 }
 0x6d9   :  { %v6233_v17 = vadd.f32 %v7343_v21, %v6193_v9 }
 0x6db   :  { %v6273_v33 = vadd.f32 %v7365_v37, %v6233_v17 }
 0x715   :  { %v7385_v13 = vpop.f32.mrb[12].mxu0 }
 0x716   :  { %v7386_v32 = vpop.f32.mrb[13].mxu0 }
 0x717   :  { %v7387_v26 = vadd.f32 %v7386_v32, %v7385_v13  ;;  %v7388_v42 = vpop.f32.mrb[14].mxu0 }
 0x718   :  { %v7389_v52 = vpop.f32.mrb[15].mxu0 }
 0x719   :  { %v6313_v12 = vadd.f32 %v7387_v26, %v6273_v33 }
 0x71b   :  { %v6353_v60 = vadd.f32 %v7409_v16, %v6313_v12 }
 0x71d   :  { %v6359_v1 = vcombine.high %v6353_v60, %v6353_v60  ;;  %v6362_v44 = vsel %vm6361_vm4, %v6353_v60, 0.0 }
 0x71e   :  { %v6363_v10 = vrot.slane %v6362_v44, 4 }
 0x71f   :  { %v6369_v41 = vsel %vm6361_vm4, %v6359_v1, 0.0 }
 0x720   :  { %v6364_v7 = vadd.f32 %v6363_v10, %v6362_v44  ;;  %v6370_v47 = vrot.slane %v6369_v41, 4 }
 0x722   :  { %v6365_v54 = vrot.slane %v6364_v7, 2  ;;  %v6371_v36 = vadd.f32 %v6370_v47, %v6369_v41 }
 0x724   :  { %v6366_v23 = vadd.f32 %v6365_v54, %v6364_v7  ;;  %v6372_v49 = vrot.slane %v6371_v36, 2 }
 0x726   :  { %v6367_v46 = vrot.slane %v6366_v23, 1  ;;  %v6373_v48 = vadd.f32 %v6372_v49, %v6371_v36 }
 0x728   :  { %v6368_v0 = vadd.f32 %v6367_v46, %v6366_v23  ;;  %v6374_v55 = vrot.slane %v6373_v48, 1 }
 0x72a   :  { %v6375_v63 = vadd.f32 %v6374_v55, %v6373_v48  ;;  %v6377_v3 = vmul.f32 0.25, %v6368_v0 }
 0x72c   :  { %v6378_v20 = vmul.f32 0.25, %v6375_v63  ;;  %v6386_v53 = vadd.f32 %v6972_v40, %v6377_v3 }
 0x72e   :  { %v6973_v45 = vmul.f32 -1.442695, %v6386_v53  ;;  %v6387_v29 = vadd.f32 %v6972_v40, %v6378_v20 }
 0x730   :  { %8196 = vpow2.f32 %v6973_v45  ;;  %v6974_v56 = vmul.f32 -1.442695, %v6387_v29 }
 0x732   :  { %8198 = vpow2.f32 %v6974_v56 }
 0x73a   :  { %v8197_v18 = vpop.eup %8196 }
 0x73b   :  { %v6394_v31 = vadd.f32 1.0, %v8197_v18 }
 0x73c   :  { %v8199_v51 = vpop.eup %8198 }
 0x73d   :  { %v6395_v25 = vadd.f32 1.0, %v8199_v51 }
 0x73f   :  { %8200 = vrcp.f32 %v6395_v25 }
 0x740   :  { %8202 = vrcp.f32 %v6394_v31 }
 0x749   :  { %v8201_v50 = vpop.eup %8200 }
 0x74a   :  { %v6402_v58 = vrot.slane %v8201_v50, 7  ;;  %v8203_v61 = vpop.eup %8202 }
 0x74c   :  { %v6404_v6 = vsel %vm6403_vm5, %v6402_v58, %v8203_v61 }
 0x74d   :  { %6406 = vst [vmem:[#allocation2] sm:$0x3] %v6404_v6 }
 0x74e   :  { %8221 = shalt.err (!%p8218_p4)
}
 0x74f   :  { %s8222_s23 = scalar_lea.hbm %s10635_s13, 32 }
 0x750   :  { %p8223_p5 = scmp.ne.s32.totalorder %s10635_s13, %s8222_s23  ;;  %p8226_p6 = scmp.lt.u32.totalorder %s8222_s23, %s10635_s13 }
 0x752   :  { %p8228_p7 = pnand %p8226_p6, %p8223_p5 }
 0x754   :  { %8231 = shalt.err (!%p8228_p7)
}
 0x755   :  { %6416 = dma.vmem_to_hbm [thread:$0]  %s6414_s4, 32, %s10635_s13, [#allocation3]  }
 0x756   :  { %8232 = dma.done.wait [#allocation3], 32  }
 0x757   :  { %8233 = vsyncadd [#allocation3], 4294967264 }
 0x758   :  { %6420 = vsyncpa [#allocation3], 1 }

</bundles_post_ra>
